<compile_context>
chip_gen: v6e
topology: v6e:2x2x1
jax: 0.10.0
libtpu: 0.0.40
codegen_flags: <defaults>
</compile_context>

<pallas_src>
import numpy as np
import jax
import jax.numpy as jnp
from jax.experimental import pallas as pl
from jax.experimental.pallas import tpu as pltpu

LEAK = 0.2          # LeakyReLU(0.2)
BN_EPS = 1e-5       # nn.BatchNorm2d default eps
VMEM_LIMIT = 64 * 1024 * 1024   # above 16/32 MiB scoped defaults, <= v7x physical


def _round_up(x, m):
    return ((x + m - 1) // m) * m


def _pick_tile_m(m, k, cout):
    """Pick an M tile so streamed buffers stay ~2 MiB; avoid padding M when
    a clean divisor exists. Returns (tile_m, padded_m)."""
    m8 = _round_up(m, 8)
    budget = 2 * 1024 * 1024
    t = budget // max(1, k * 2 + cout * 4)      # bf16 patches + f32 output rows
    t = max(128, min(1024, (t // 8) * 8))
    if m8 <= t:
        return m8, m8
    for cand in range(t, t // 2 - 1, -8):       # prefer exact divisor of m8
        if m8 % cand == 0:
            return cand, m8
    return t, _round_up(m8, t)


# ---------------------------------------------------------------------------
# Pallas kernels
# ---------------------------------------------------------------------------
def _matmul_act_kernel(mode):
    """Fused (patches @ W + b) -> LeakyReLU or Sigmoid. Gridded over M."""

    def kernel(p_ref, w_ref, b_ref, o_ref):
        z = jnp.dot(p_ref[...], w_ref[...], preferred_element_type=jnp.float32)
        z = z + b_ref[...]
        if mode == "lrelu":
            z = jnp.where(z > 0, z, LEAK * z)
        else:  # "sigmoid": EUP reciprocal is a free VLIW slot
            z = pl.reciprocal(1.0 + jnp.exp(-z), approx=True)
        o_ref[...] = z

    return kernel


def _matmul_stats_kernel(m_valid, tile_m):
    """Sweep 1 of BN layers: matmul+bias, write conv output, accumulate masked
    per-channel sum / sum-of-squares into a resident (2, C) accumulator."""

    def kernel(p_ref, w_ref, b_ref, z_ref, stats_ref):
        i = pl.program_id(0)
        z = jnp.dot(p_ref[...], w_ref[...], preferred_element_type=jnp.float32)
        z = z + b_ref[...]
        z_ref[...] = z

        # Row-validity mask (padded rows must not contaminate batch stats).
        row = i * tile_m + jax.lax.broadcasted_iota(jnp.int32, z.shape, 0)
        zm = jnp.where(row < m_valid, z, 0.0)
        s = jnp.sum(zm, axis=0, keepdims=True)
        ss = jnp.sum(zm * zm, axis=0, keepdims=True)

        @pl.when(i == 0)
        def _():
            stats_ref[...] = jnp.zeros_like(stats_ref)

        stats_ref[...] += jnp.concatenate([s, ss], axis=0)

    return kernel


def _bn_lrelu_kernel(m_valid):
    """Sweep 2 of BN layers: normalize with global batch stats + LeakyReLU."""
    inv_m = 1.0 / float(m_valid)

    def kernel(z_ref, stats_ref, g_ref, bb_ref, o_ref):
        z = z_ref[...]
        st = stats_ref[...]
        mean = st[0:1, :] * inv_m
        var = st[1:2, :] * inv_m - mean * mean        # biased variance (PyTorch)
        y = (z - mean) * jax.lax.rsqrt(var + BN_EPS)
        y = y * g_ref[...] + bb_ref[...]
        o_ref[...] = jnp.where(y > 0, y, LEAK * y)

    return kernel


# ---------------------------------------------------------------------------
# im2col glue (plain JAX, static strided slices only, bf16 patches)
# ---------------------------------------------------------------------------
def _im2col(x_nhwc, kh, kw, stride, pad):
    n, h, w, c = x_nhwc.shape
    xp = jnp.pad(x_nhwc, ((0, 0), (pad, pad), (pad, pad), (0, 0)))
    ho = (h + 2 * pad - kh) // stride + 1
    wo = (w + 2 * pad - kw) // stride + 1
    cols = []
    for i in range(kh):
        for j in range(kw):
            sl = xp[:, i:i + stride * ho:stride, j:j + stride * wo:stride, :]
            cols.append(sl)                       # (N, Ho, Wo, C)
    patches = jnp.stack(cols, axis=3)             # (N, Ho, Wo, KH*KW, C)
    patches = patches.reshape(n * ho * wo, kh * kw * c)
    return patches, ho, wo


# ---------------------------------------------------------------------------
# One conv layer = im2col + gridded Pallas kernel(s)
# ---------------------------------------------------------------------------
def pallas_conv_layer(x_nhwc, layer_params, stride, pad, mode):
    w_hwio, b, gamma, beta = layer_params
    kh, kw, cin, cout = w_hwio.shape
    n = x_nhwc.shape[0]

    # bf16 operands for the MXU (halves patch HBM traffic, 2x MXU throughput).
    patches, ho, wo = _im2col(x_nhwc.astype(jnp.bfloat16), kh, kw, stride, pad)
    m, k = patches.shape
    tile_m, mp = _pick_tile_m(m, k, cout)
    if mp != m:
        patches = jnp.pad(patches, ((0, mp - m), (0, 0)))

    w_mat = w_hwio.reshape(kh * kw * cin, cout).astype(jnp.bfloat16)
    b2 = b.reshape(1, cout).astype(jnp.float32)

    grid = (mp // tile_m,)
    cp_parallel = pltpu.CompilerParams(
        dimension_semantics=("parallel",), vmem_limit_bytes=VMEM_LIMIT)
    cp_arbitrary = pltpu.CompilerParams(
        dimension_semantics=("arbitrary",), vmem_limit_bytes=VMEM_LIMIT)

    p_spec = pl.BlockSpec((tile_m, k), lambda i: (i, 0))
    w_spec = pl.BlockSpec((k, cout), lambda i: (0, 0))
    vec_spec = pl.BlockSpec((1, cout), lambda i: (0, 0))
    z_spec = pl.BlockSpec((tile_m, cout), lambda i: (i, 0))
    st_spec = pl.BlockSpec((2, cout), lambda i: (0, 0))

    if mode in ("lrelu", "sigmoid"):
        out = pl.pallas_call(
            _matmul_act_kernel(mode),
            out_shape=jax.ShapeDtypeStruct((mp, cout), jnp.float32),
            grid_spec=pltpu.PrefetchScalarGridSpec(
                num_scalar_prefetch=0, grid=grid,
                in_specs=[p_spec, w_spec, vec_spec],
                out_specs=z_spec),
            compiler_params=cp_parallel,
        )(patches, w_mat, b2)
    else:  # "bn_lrelu": two sweeps with global batch statistics
        z, stats = pl.pallas_call(
            _matmul_stats_kernel(m, tile_m),
            out_shape=(jax.ShapeDtypeStruct((mp, cout), jnp.float32),
                       jax.ShapeDtypeStruct((2, cout), jnp.float32)),
            grid_spec=pltpu.PrefetchScalarGridSpec(
                num_scalar_prefetch=0, grid=grid,
                in_specs=[p_spec, w_spec, vec_spec],
                out_specs=(z_spec, st_spec)),
            compiler_params=cp_arbitrary,      # resident accumulator => sequential
        )(patches, w_mat, b2)

        g2 = gamma.reshape(1, cout).astype(jnp.float32)
        bb2 = beta.reshape(1, cout).astype(jnp.float32)
        out = pl.pallas_call(
            _bn_lrelu_kernel(m),
            out_shape=jax.ShapeDtypeStruct((mp, cout), jnp.float32),
            grid_spec=pltpu.PrefetchScalarGridSpec(
                num_scalar_prefetch=0, grid=grid,
                in_specs=[z_spec, st_spec, vec_spec, vec_spec],
                out_specs=z_spec),
            compiler_params=cp_parallel,
        )(z, stats, g2, bb2)

    return out[:m, :].reshape(n, ho, wo, cout)


# ---------------------------------------------------------------------------
# Discriminator forward (Pallas) and parameter init
# ---------------------------------------------------------------------------
def discriminator_forward(x_nchw, params):
    x = jnp.transpose(x_nchw, (0, 2, 3, 1))                       # NCHW -> NHWC
    x = pallas_conv_layer(x, params[0], stride=2, pad=2, mode="lrelu")
    x = pallas_conv_layer(x, params[1], stride=2, pad=2, mode="bn_lrelu")
    x = pallas_conv_layer(x, params[2], stride=2, pad=2, mode="bn_lrelu")
    x = pallas_conv_layer(x, params[3], stride=2, pad=2, mode="bn_lrelu")
    x = pallas_conv_layer(x, params[4], stride=1, pad=0, mode="sigmoid")
    return x.reshape(-1)                                          # y.view(-1)


def init_params(key, in_dim, dim):
    """Mirrors weights_init: conv w ~ N(0,0.02), BN gamma ~ N(1,0.02),
    BN beta = 0, conv bias ~ PyTorch default U(-1/sqrt(fan_in), 1/sqrt(fan_in))."""
    cfg = [(in_dim, dim, 5), (dim, 2 * dim, 5), (2 * dim, 4 * dim, 5),
           (4 * dim, 8 * dim, 5), (8 * dim, 1, 4)]
    params = []
    for idx, (ci, co, k) in enumerate(cfg):
        key, k1, k2, k3 = jax.random.split(key, 4)
        w = 0.02 * jax.random.normal(k1, (k, k, ci, co), jnp.float32)  # HWIO
        bound = 1.0 / np.sqrt(ci * k * k)
        b = jax.random.uniform(k2, (co,), jnp.float32, -bound, bound)
        if idx in (1, 2, 3):  # layers with BatchNorm
            gamma = 1.0 + 0.02 * jax.random.normal(k3, (co,), jnp.float32)
        else:
            gamma = jnp.ones((co,), jnp.float32)
        beta = jnp.zeros((co,), jnp.float32)
        params.append((w, b, gamma, beta))
    return params


# ---------------------------------------------------------------------------
# Pure-JAX reference (for correctness check)
# ---------------------------------------------------------------------------
def reference_forward(x_nchw, params):
    def conv(x, w_hwio, b, stride, pad):
        y = jax.lax.conv_general_dilated(
            x, w_hwio, (stride, stride), [(pad, pad), (pad, pad)],
            dimension_numbers=("NCHW", "HWIO", "NCHW"))
        return y + b.reshape(1, -1, 1, 1)

    def bn(x, gamma, beta):
        mean = jnp.mean(x, axis=(0, 2, 3), keepdims=True)
        var = jnp.mean((x - mean) ** 2, axis=(0, 2, 3), keepdims=True)
        xn = (x - mean) / jnp.sqrt(var + BN_EPS)
        return xn * gamma.reshape(1, -1, 1, 1) + beta.reshape(1, -1, 1, 1)

    lrelu = lambda t: jnp.where(t > 0, t, LEAK * t)

    w, b, _, _ = params[0]
    x = lrelu(conv(x_nchw, w, b, 2, 2))
    for i in (1, 2, 3):
        w, b, g, bb = params[i]
        x = lrelu(bn(conv(x, w, b, 2, 2), g, bb))
    w, b, _, _ = params[4]
    x = 1.0 / (1.0 + jnp.exp(-conv(x, w, b, 1, 0)))
    return x.reshape(-1)


if __name__ == "__main__":
    # DCGAN geometry: 64x64 input -> 4 stride-2 convs -> 4x4 -> final 4x4 conv -> 1x1.
    in_dim, dim, batch, hw = 3, 8, 2, 64

    key = jax.random.PRNGKey(0)
    key, xk = jax.random.split(key)
    x = jax.random.normal(xk, (batch, in_dim, hw, hw), jnp.float32)  # NCHW like PyTorch
    params = init_params(key, in_dim, dim)

    fwd = jax.jit(discriminator_forward)
    y = jax.block_until_ready(fwd(x, params))
    y_ref = jax.block_until_ready(reference_forward(x, params))

    assert y.shape == (batch,), y.shape
    assert np.all(np.isfinite(np.asarray(y)))
    np.testing.assert_allclose(np.asarray(y), np.asarray(y_ref), rtol=5e-2, atol=5e-2)
    print("KERNEL_OK")
</pallas_src>

<mosaic_0001>
module attributes {stable_mosaic.version = 11 : i64} {
  func.func @kernel(%arg0: i32, %arg1: memref<1024x75xbf16, #tpu.memory_space<vmem>>, %arg2: memref<75x8xbf16, #tpu.memory_space<vmem>>, %arg3: memref<1x8xf32, #tpu.memory_space<vmem>>, %arg4: memref<1024x8xf32, #tpu.memory_space<vmem>>) attributes {dimension_semantics = [#tpu.dimension_semantics<parallel>], iteration_bounds = array<i64: 2>, scalar_prefetch = 0 : i64, scratch_operands = 0 : i64, tpu.core_type = #tpu.core_type<tc>, window_params = [{transform_indices = @transform_0, window_bounds = array<i64: 1024, 75>}, {pipeline_mode = #tpu.pipeline_mode<synchronous>, transform_indices = @transform_1, window_bounds = array<i64: 75, 8>}, {pipeline_mode = #tpu.pipeline_mode<synchronous>, transform_indices = @transform_2, window_bounds = array<i64: 1, 8>}, {transform_indices = @transform_3, window_bounds = array<i64: 1024, 8>}]} {
    %c0 = arith.constant 0 : index
    %c0_0 = arith.constant 0 : index
    %0 = vector.load %arg1[%c0, %c0_0] : memref<1024x75xbf16, #tpu.memory_space<vmem>>, vector<1024x75xbf16>
    %c0_1 = arith.constant 0 : index
    %c0_2 = arith.constant 0 : index
    %1 = vector.load %arg2[%c0_1, %c0_2] : memref<75x8xbf16, #tpu.memory_space<vmem>>, vector<75x8xbf16>
    %cst = arith.constant dense<0.000000e+00> : vector<1024x8xf32>
    %2 = tpu.matmul %0, %1, %cst {dimension_numbers = #tpu.dot_dimension_numbers<[1], [0], [0], [1], [0, 0, 1, 1], [], []>} : vector<1024x75xbf16>, vector<75x8xbf16>, vector<1024x8xf32> -> vector<1024x8xf32>
    %c0_3 = arith.constant 0 : index
    %c0_4 = arith.constant 0 : index
    %3 = vector.load %arg3[%c0_3, %c0_4] : memref<1x8xf32, #tpu.memory_space<vmem>>, vector<1x8xf32>
    %4 = vector.broadcast %3 : vector<1x8xf32> to vector<1024x8xf32>
    %5 = arith.addf %2, %4 : vector<1024x8xf32>
    %cst_5 = arith.constant 0.000000e+00 : f32
    %6 = vector.broadcast %cst_5 : f32 to vector<1024x8xf32>
    %7 = arith.cmpf ogt, %5, %6 : vector<1024x8xf32>
    %cst_6 = arith.constant 2.000000e-01 : f32
    %8 = vector.broadcast %cst_6 : f32 to vector<1024x8xf32>
    %9 = arith.mulf %8, %5 : vector<1024x8xf32>
    %10 = arith.select %7, %5, %9 : vector<1024x8xi1>, vector<1024x8xf32>
    %c0_7 = arith.constant 0 : index
    %c0_8 = arith.constant 0 : index
    %11 = vector.load %arg4[%c0_7, %c0_8] : memref<1024x8xf32, #tpu.memory_space<vmem>>, vector<1024x8xf32>
    tpu.vector_store %arg4[%c0_7, %c0_8], %10 {strides = array<i32>} : memref<1024x8xf32, #tpu.memory_space<vmem>>, vector<1024x8xf32>,
    return
  }
  func.func @transform_0(%arg0: i32) -> (i32, i32) {
    %c0_i32 = arith.constant 0 : i32
    %c0_i32_0 = arith.constant 0 : i32
    return %arg0, %c0_i32 : i32, i32
  }
  func.func @transform_1(%arg0: i32) -> (i32, i32) {
    %c0_i32 = arith.constant 0 : i32
    %c0_i32_0 = arith.constant 0 : i32
    %c0_i32_1 = arith.constant 0 : i32
    return %c0_i32, %c0_i32_0 : i32, i32
  }
  func.func @transform_2(%arg0: i32) -> (i32, i32) {
    %c0_i32 = arith.constant 0 : i32
    %c0_i32_0 = arith.constant 0 : i32
    %c0_i32_1 = arith.constant 0 : i32
    return %c0_i32, %c0_i32_0 : i32, i32
  }
  func.func @transform_3(%arg0: i32) -> (i32, i32) {
    %c0_i32 = arith.constant 0 : i32
    %c0_i32_0 = arith.constant 0 : i32
    return %arg0, %c0_i32 : i32, i32
  }
}

module attributes {stable_mosaic.version = 11 : i64} {
  func.func @kernel(%arg0: i32, %arg1: memref<512x200xbf16, #tpu.memory_space<vmem>>, %arg2: memref<200x16xbf16, #tpu.memory_space<vmem>>, %arg3: memref<1x16xf32, #tpu.memory_space<vmem>>, %arg4: memref<512x16xf32, #tpu.memory_space<vmem>>, %arg5: memref<2x16xf32, #tpu.memory_space<vmem>>) attributes {dimension_semantics = [#tpu.dimension_semantics<arbitrary>], iteration_bounds = array<i64: 1>, scalar_prefetch = 0 : i64, scratch_operands = 0 : i64, tpu.core_type = #tpu.core_type<tc>, window_params = [{transform_indices = @transform_0, window_bounds = array<i64: 512, 200>}, {pipeline_mode = #tpu.pipeline_mode<synchronous>, transform_indices = @transform_1, window_bounds = array<i64: 200, 16>}, {pipeline_mode = #tpu.pipeline_mode<synchronous>, transform_indices = @transform_2, window_bounds = array<i64: 1, 16>}, {transform_indices = @transform_3, window_bounds = array<i64: 512, 16>}, {pipeline_mode = #tpu.pipeline_mode<synchronous>, transform_indices = @transform_4, window_bounds = array<i64: 2, 16>}]} {
    %c0 = arith.constant 0 : index
    %c0_0 = arith.constant 0 : index
    %0 = vector.load %arg1[%c0, %c0_0] : memref<512x200xbf16, #tpu.memory_space<vmem>>, vector<512x200xbf16>
    %c0_1 = arith.constant 0 : index
    %c0_2 = arith.constant 0 : index
    %1 = vector.load %arg2[%c0_1, %c0_2] : memref<200x16xbf16, #tpu.memory_space<vmem>>, vector<200x16xbf16>
    %cst = arith.constant dense<0.000000e+00> : vector<512x16xf32>
    %2 = tpu.matmul %0, %1, %cst {dimension_numbers = #tpu.dot_dimension_numbers<[1], [0], [0], [1], [0, 0, 1, 1], [], []>} : vector<512x200xbf16>, vector<200x16xbf16>, vector<512x16xf32> -> vector<512x16xf32>
    %c0_3 = arith.constant 0 : index
    %c0_4 = arith.constant 0 : index
    %3 = vector.load %arg3[%c0_3, %c0_4] : memref<1x16xf32, #tpu.memory_space<vmem>>, vector<1x16xf32>
    %4 = vector.broadcast %3 : vector<1x16xf32> to vector<512x16xf32>
    %5 = arith.addf %2, %4 : vector<512x16xf32>
    %c0_5 = arith.constant 0 : index
    %c0_6 = arith.constant 0 : index
    %6 = vector.load %arg4[%c0_5, %c0_6] : memref<512x16xf32, #tpu.memory_space<vmem>>, vector<512x16xf32>
    tpu.vector_store %arg4[%c0_5, %c0_6], %5 {strides = array<i32>} : memref<512x16xf32, #tpu.memory_space<vmem>>, vector<512x16xf32>,
    %c512_i32 = arith.constant 512 : i32
    %7 = arith.muli %arg0, %c512_i32 : i32
    %8 = tpu.iota {dimensions = array<i32: 0>} : vector<512x16xi32>
    %9 = vector.broadcast %7 : i32 to vector<512x16xi32>
    %10 = arith.addi %9, %8 : vector<512x16xi32>
    %c512_i32_7 = arith.constant 512 : i32
    %11 = vector.broadcast %c512_i32_7 : i32 to vector<512x16xi32>
    %12 = arith.cmpi slt, %10, %11 : vector<512x16xi32>
    %cst_8 = arith.constant 0.000000e+00 : f32
    %13 = vector.broadcast %cst_8 : f32 to vector<512x16xf32>
    %14 = arith.select %12, %5, %13 : vector<512x16xi1>, vector<512x16xf32>
    %cst_9 = arith.constant dense<0.000000e+00> : vector<16xf32>
    %15 = vector.multi_reduction <add>, %14, %cst_9 [0] : vector<512x16xf32> to vector<16xf32>
    %16 = vector.shape_cast %15 : vector<16xf32> to vector<1x16xf32>
    %17 = arith.mulf %14, %14 : vector<512x16xf32>
    %cst_10 = arith.constant dense<0.000000e+00> : vector<16xf32>
    %18 = vector.multi_reduction <add>, %17, %cst_10 [0] : vector<512x16xf32> to vector<16xf32>
    %19 = vector.shape_cast %18 : vector<16xf32> to vector<1x16xf32>
    %c0_i32 = arith.constant 0 : i32
    %20 = arith.cmpi eq, %arg0, %c0_i32 : i32
    %21 = arith.extui %20 : i1 to i32
    %c0_i32_11 = arith.constant 0 : i32
    %22 = arith.cmpi ne, %21, %c0_i32_11 : i32
    scf.if %22 {
      %cst_16 = arith.constant 0.000000e+00 : f32
      %27 = vector.broadcast %cst_16 : f32 to vector<2x16xf32>
      %c0_17 = arith.constant 0 : index
      %c0_18 = arith.constant 0 : index
      %28 = vector.load %arg5[%c0_17, %c0_18] : memref<2x16xf32, #tpu.memory_space<vmem>>, vector<2x16xf32>
      tpu.vector_store %arg5[%c0_17, %c0_18], %27 {strides = array<i32>} : memref<2x16xf32, #tpu.memory_space<vmem>>, vector<2x16xf32>,
    } else {
    }
    %c0_12 = arith.constant 0 : index
    %c0_13 = arith.constant 0 : index
    %23 = vector.load %arg5[%c0_12, %c0_13] : memref<2x16xf32, #tpu.memory_space<vmem>>, vector<2x16xf32>
    %24 = tpu.concatenate %16, %19 in 0 : vector<1x16xf32>, vector<1x16xf32> -> vector<2x16xf32>
    %25 = arith.addf %23, %24 : vector<2x16xf32>
    %c0_14 = arith.constant 0 : index
    %c0_15 = arith.constant 0 : index
    %26 = vector.load %arg5[%c0_14, %c0_15] : memref<2x16xf32, #tpu.memory_space<vmem>>, vector<2x16xf32>
    tpu.vector_store %arg5[%c0_14, %c0_15], %25 {strides = array<i32>} : memref<2x16xf32, #tpu.memory_space<vmem>>, vector<2x16xf32>,
    return
  }
  func.func @transform_0(%arg0: i32) -> (i32, i32) {
    %c0_i32 = arith.constant 0 : i32
    %c0_i32_0 = arith.constant 0 : i32
    return %arg0, %c0_i32 : i32, i32
  }
  func.func @transform_1(%arg0: i32) -> (i32, i32) {
    %c0_i32 = arith.constant 0 : i32
    %c0_i32_0 = arith.constant 0 : i32
    %c0_i32_1 = arith.constant 0 : i32
    return %c0_i32, %c0_i32_0 : i32, i32
  }
  func.func @transform_2(%arg0: i32) -> (i32, i32) {
    %c0_i32 = arith.constant 0 : i32
    %c0_i32_0 = arith.constant 0 : i32
    %c0_i32_1 = arith.constant 0 : i32
    return %c0_i32, %c0_i32_0 : i32, i32
  }
  func.func @transform_3(%arg0: i32) -> (i32, i32) {
    %c0_i32 = arith.constant 0 : i32
    %c0_i32_0 = arith.constant 0 : i32
    return %arg0, %c0_i32 : i32, i32
  }
  func.func @transform_4(%arg0: i32) -> (i32, i32) {
    %c0_i32 = arith.constant 0 : i32
    %c0_i32_0 = arith.constant 0 : i32
    %c0_i32_1 = arith.constant 0 : i32
    return %c0_i32, %c0_i32_0 : i32, i32
  }
}

module attributes {stable_mosaic.version = 11 : i64} {
  func.func @kernel(%arg0: i32, %arg1: memref<512x16xf32, #tpu.memory_space<vmem>>, %arg2: memref<2x16xf32, #tpu.memory_space<vmem>>, %arg3: memref<1x16xf32, #tpu.memory_space<vmem>>, %arg4: memref<1x16xf32, #tpu.memory_space<vmem>>, %arg5: memref<512x16xf32, #tpu.memory_space<vmem>>) attributes {dimension_semantics = [#tpu.dimension_semantics<parallel>], iteration_bounds = array<i64: 1>, scalar_prefetch = 0 : i64, scratch_operands = 0 : i64, tpu.core_type = #tpu.core_type<tc>, window_params = [{transform_indices = @transform_0, window_bounds = array<i64: 512, 16>}, {pipeline_mode = #tpu.pipeline_mode<synchronous>, transform_indices = @transform_1, window_bounds = array<i64: 2, 16>}, {pipeline_mode = #tpu.pipeline_mode<synchronous>, transform_indices = @transform_2, window_bounds = array<i64: 1, 16>}, {pipeline_mode = #tpu.pipeline_mode<synchronous>, transform_indices = @transform_3, window_bounds = array<i64: 1, 16>}, {transform_indices = @transform_4, window_bounds = array<i64: 512, 16>}]} {
    %c0 = arith.constant 0 : index
    %c0_0 = arith.constant 0 : index
    %0 = vector.load %arg1[%c0, %c0_0] : memref<512x16xf32, #tpu.memory_space<vmem>>, vector<512x16xf32>
    %c0_1 = arith.constant 0 : index
    %c0_2 = arith.constant 0 : index
    %1 = vector.load %arg2[%c0_1, %c0_2] : memref<2x16xf32, #tpu.memory_space<vmem>>, vector<2x16xf32>
    %2 = vector.extract_strided_slice %1 {offsets = [0, 0], sizes = [1, 16], strides = [1, 1]} : vector<2x16xf32> to vector<1x16xf32>
    %cst = arith.constant 0.001953125 : f32
    %3 = vector.broadcast %cst : f32 to vector<1x16xf32>
    %4 = arith.mulf %2, %3 : vector<1x16xf32>
    %5 = vector.extract_strided_slice %1 {offsets = [1, 0], sizes = [1, 16], strides = [1, 1]} : vector<2x16xf32> to vector<1x16xf32>
    %cst_3 = arith.constant 0.001953125 : f32
    %6 = vector.broadcast %cst_3 : f32 to vector<1x16xf32>
    %7 = arith.mulf %5, %6 : vector<1x16xf32>
    %8 = arith.mulf %4, %4 : vector<1x16xf32>
    %9 = arith.subf %7, %8 : vector<1x16xf32>
    %10 = vector.broadcast %4 : vector<1x16xf32> to vector<512x16xf32>
    %11 = arith.subf %0, %10 : vector<512x16xf32>
    %cst_4 = arith.constant 9.99999974E-6 : f32
    %12 = vector.broadcast %cst_4 : f32 to vector<1x16xf32>
    %13 = arith.addf %9, %12 : vector<1x16xf32>
    %14 = math.rsqrt %13 : vector<1x16xf32>
    %15 = vector.broadcast %14 : vector<1x16xf32> to vector<512x16xf32>
    %16 = arith.mulf %11, %15 : vector<512x16xf32>
    %c0_5 = arith.constant 0 : index
    %c0_6 = arith.constant 0 : index
    %17 = vector.load %arg3[%c0_5, %c0_6] : memref<1x16xf32, #tpu.memory_space<vmem>>, vector<1x16xf32>
    %18 = vector.broadcast %17 : vector<1x16xf32> to vector<512x16xf32>
    %19 = arith.mulf %16, %18 : vector<512x16xf32>
    %c0_7 = arith.constant 0 : index
    %c0_8 = arith.constant 0 : index
    %20 = vector.load %arg4[%c0_7, %c0_8] : memref<1x16xf32, #tpu.memory_space<vmem>>, vector<1x16xf32>
    %21 = vector.broadcast %20 : vector<1x16xf32> to vector<512x16xf32>
    %22 = arith.addf %19, %21 : vector<512x16xf32>
    %cst_9 = arith.constant 0.000000e+00 : f32
    %23 = vector.broadcast %cst_9 : f32 to vector<512x16xf32>
    %24 = arith.cmpf ogt, %22, %23 : vector<512x16xf32>
    %cst_10 = arith.constant 2.000000e-01 : f32
    %25 = vector.broadcast %cst_10 : f32 to vector<512x16xf32>
    %26 = arith.mulf %25, %22 : vector<512x16xf32>
    %27 = arith.select %24, %22, %26 : vector<512x16xi1>, vector<512x16xf32>
    %c0_11 = arith.constant 0 : index
    %c0_12 = arith.constant 0 : index
    %28 = vector.load %arg5[%c0_11, %c0_12] : memref<512x16xf32, #tpu.memory_space<vmem>>, vector<512x16xf32>
    tpu.vector_store %arg5[%c0_11, %c0_12], %27 {strides = array<i32>} : memref<512x16xf32, #tpu.memory_space<vmem>>, vector<512x16xf32>,
    return
  }
  func.func @transform_0(%arg0: i32) -> (i32, i32) {
    %c0_i32 = arith.constant 0 : i32
    %c0_i32_0 = arith.constant 0 : i32
    return %arg0, %c0_i32 : i32, i32
  }
  func.func @transform_1(%arg0: i32) -> (i32, i32) {
    %c0_i32 = arith.constant 0 : i32
    %c0_i32_0 = arith.constant 0 : i32
    %c0_i32_1 = arith.constant 0 : i32
    return %c0_i32, %c0_i32_0 : i32, i32
  }
  func.func @transform_2(%arg0: i32) -> (i32, i32) {
    %c0_i32 = arith.constant 0 : i32
    %c0_i32_0 = arith.constant 0 : i32
    %c0_i32_1 = arith.constant 0 : i32
    return %c0_i32, %c0_i32_0 : i32, i32
  }
  func.func @transform_3(%arg0: i32) -> (i32, i32) {
    %c0_i32 = arith.constant 0 : i32
    %c0_i32_0 = arith.constant 0 : i32
    %c0_i32_1 = arith.constant 0 : i32
    return %c0_i32, %c0_i32_0 : i32, i32
  }
  func.func @transform_4(%arg0: i32) -> (i32, i32) {
    %c0_i32 = arith.constant 0 : i32
    %c0_i32_0 = arith.constant 0 : i32
    return %arg0, %c0_i32 : i32, i32
  }
}

module attributes {stable_mosaic.version = 11 : i64} {
  func.func @kernel(%arg0: i32, %arg1: memref<128x400xbf16, #tpu.memory_space<vmem>>, %arg2: memref<400x32xbf16, #tpu.memory_space<vmem>>, %arg3: memref<1x32xf32, #tpu.memory_space<vmem>>, %arg4: memref<128x32xf32, #tpu.memory_space<vmem>>, %arg5: memref<2x32xf32, #tpu.memory_space<vmem>>) attributes {dimension_semantics = [#tpu.dimension_semantics<arbitrary>], iteration_bounds = array<i64: 1>, scalar_prefetch = 0 : i64, scratch_operands = 0 : i64, tpu.core_type = #tpu.core_type<tc>, window_params = [{transform_indices = @transform_0, window_bounds = array<i64: 128, 400>}, {pipeline_mode = #tpu.pipeline_mode<synchronous>, transform_indices = @transform_1, window_bounds = array<i64: 400, 32>}, {pipeline_mode = #tpu.pipeline_mode<synchronous>, transform_indices = @transform_2, window_bounds = array<i64: 1, 32>}, {transform_indices = @transform_3, window_bounds = array<i64: 128, 32>}, {pipeline_mode = #tpu.pipeline_mode<synchronous>, transform_indices = @transform_4, window_bounds = array<i64: 2, 32>}]} {
    %c0 = arith.constant 0 : index
    %c0_0 = arith.constant 0 : index
    %0 = vector.load %arg1[%c0, %c0_0] : memref<128x400xbf16, #tpu.memory_space<vmem>>, vector<128x400xbf16>
    %c0_1 = arith.constant 0 : index
    %c0_2 = arith.constant 0 : index
    %1 = vector.load %arg2[%c0_1, %c0_2] : memref<400x32xbf16, #tpu.memory_space<vmem>>, vector<400x32xbf16>
    %cst = arith.constant dense<0.000000e+00> : vector<128x32xf32>
    %2 = tpu.matmul %0, %1, %cst {dimension_numbers = #tpu.dot_dimension_numbers<[1], [0], [0], [1], [0, 0, 1, 1], [], []>} : vector<128x400xbf16>, vector<400x32xbf16>, vector<128x32xf32> -> vector<128x32xf32>
    %c0_3 = arith.constant 0 : index
    %c0_4 = arith.constant 0 : index
    %3 = vector.load %arg3[%c0_3, %c0_4] : memref<1x32xf32, #tpu.memory_space<vmem>>, vector<1x32xf32>
    %4 = vector.broadcast %3 : vector<1x32xf32> to vector<128x32xf32>
    %5 = arith.addf %2, %4 : vector<128x32xf32>
    %c0_5 = arith.constant 0 : index
    %c0_6 = arith.constant 0 : index
    %6 = vector.load %arg4[%c0_5, %c0_6] : memref<128x32xf32, #tpu.memory_space<vmem>>, vector<128x32xf32>
    tpu.vector_store %arg4[%c0_5, %c0_6], %5 {strides = array<i32>} : memref<128x32xf32, #tpu.memory_space<vmem>>, vector<128x32xf32>,
    %c128_i32 = arith.constant 128 : i32
    %7 = arith.muli %arg0, %c128_i32 : i32
    %8 = tpu.iota {dimensions = array<i32: 0>} : vector<128x32xi32>
    %9 = vector.broadcast %7 : i32 to vector<128x32xi32>
    %10 = arith.addi %9, %8 : vector<128x32xi32>
    %c128_i32_7 = arith.constant 128 : i32
    %11 = vector.broadcast %c128_i32_7 : i32 to vector<128x32xi32>
    %12 = arith.cmpi slt, %10, %11 : vector<128x32xi32>
    %cst_8 = arith.constant 0.000000e+00 : f32
    %13 = vector.broadcast %cst_8 : f32 to vector<128x32xf32>
    %14 = arith.select %12, %5, %13 : vector<128x32xi1>, vector<128x32xf32>
    %cst_9 = arith.constant dense<0.000000e+00> : vector<32xf32>
    %15 = vector.multi_reduction <add>, %14, %cst_9 [0] : vector<128x32xf32> to vector<32xf32>
    %16 = vector.shape_cast %15 : vector<32xf32> to vector<1x32xf32>
    %17 = arith.mulf %14, %14 : vector<128x32xf32>
    %cst_10 = arith.constant dense<0.000000e+00> : vector<32xf32>
    %18 = vector.multi_reduction <add>, %17, %cst_10 [0] : vector<128x32xf32> to vector<32xf32>
    %19 = vector.shape_cast %18 : vector<32xf32> to vector<1x32xf32>
    %c0_i32 = arith.constant 0 : i32
    %20 = arith.cmpi eq, %arg0, %c0_i32 : i32
    %21 = arith.extui %20 : i1 to i32
    %c0_i32_11 = arith.constant 0 : i32
    %22 = arith.cmpi ne, %21, %c0_i32_11 : i32
    scf.if %22 {
      %cst_16 = arith.constant 0.000000e+00 : f32
      %27 = vector.broadcast %cst_16 : f32 to vector<2x32xf32>
      %c0_17 = arith.constant 0 : index
      %c0_18 = arith.constant 0 : index
      %28 = vector.load %arg5[%c0_17, %c0_18] : memref<2x32xf32, #tpu.memory_space<vmem>>, vector<2x32xf32>
      tpu.vector_store %arg5[%c0_17, %c0_18], %27 {strides = array<i32>} : memref<2x32xf32, #tpu.memory_space<vmem>>, vector<2x32xf32>,
    } else {
    }
    %c0_12 = arith.constant 0 : index
    %c0_13 = arith.constant 0 : index
    %23 = vector.load %arg5[%c0_12, %c0_13] : memref<2x32xf32, #tpu.memory_space<vmem>>, vector<2x32xf32>
    %24 = tpu.concatenate %16, %19 in 0 : vector<1x32xf32>, vector<1x32xf32> -> vector<2x32xf32>
    %25 = arith.addf %23, %24 : vector<2x32xf32>
    %c0_14 = arith.constant 0 : index
    %c0_15 = arith.constant 0 : index
    %26 = vector.load %arg5[%c0_14, %c0_15] : memref<2x32xf32, #tpu.memory_space<vmem>>, vector<2x32xf32>
    tpu.vector_store %arg5[%c0_14, %c0_15], %25 {strides = array<i32>} : memref<2x32xf32, #tpu.memory_space<vmem>>, vector<2x32xf32>,
    return
  }
  func.func @transform_0(%arg0: i32) -> (i32, i32) {
    %c0_i32 = arith.constant 0 : i32
    %c0_i32_0 = arith.constant 0 : i32
    return %arg0, %c0_i32 : i32, i32
  }
  func.func @transform_1(%arg0: i32) -> (i32, i32) {
    %c0_i32 = arith.constant 0 : i32
    %c0_i32_0 = arith.constant 0 : i32
    %c0_i32_1 = arith.constant 0 : i32
    return %c0_i32, %c0_i32_0 : i32, i32
  }
  func.func @transform_2(%arg0: i32) -> (i32, i32) {
    %c0_i32 = arith.constant 0 : i32
    %c0_i32_0 = arith.constant 0 : i32
    %c0_i32_1 = arith.constant 0 : i32
    return %c0_i32, %c0_i32_0 : i32, i32
  }
  func.func @transform_3(%arg0: i32) -> (i32, i32) {
    %c0_i32 = arith.constant 0 : i32
    %c0_i32_0 = arith.constant 0 : i32
    return %arg0, %c0_i32 : i32, i32
  }
  func.func @transform_4(%arg0: i32) -> (i32, i32) {
    %c0_i32 = arith.constant 0 : i32
    %c0_i32_0 = arith.constant 0 : i32
    %c0_i32_1 = arith.constant 0 : i32
    return %c0_i32, %c0_i32_0 : i32, i32
  }
}

module attributes {stable_mosaic.version = 11 : i64} {
  func.func @kernel(%arg0: i32, %arg1: memref<128x32xf32, #tpu.memory_space<vmem>>, %arg2: memref<2x32xf32, #tpu.memory_space<vmem>>, %arg3: memref<1x32xf32, #tpu.memory_space<vmem>>, %arg4: memref<1x32xf32, #tpu.memory_space<vmem>>, %arg5: memref<128x32xf32, #tpu.memory_space<vmem>>) attributes {dimension_semantics = [#tpu.dimension_semantics<parallel>], iteration_bounds = array<i64: 1>, scalar_prefetch = 0 : i64, scratch_operands = 0 : i64, tpu.core_type = #tpu.core_type<tc>, window_params = [{transform_indices = @transform_0, window_bounds = array<i64: 128, 32>}, {pipeline_mode = #tpu.pipeline_mode<synchronous>, transform_indices = @transform_1, window_bounds = array<i64: 2, 32>}, {pipeline_mode = #tpu.pipeline_mode<synchronous>, transform_indices = @transform_2, window_bounds = array<i64: 1, 32>}, {pipeline_mode = #tpu.pipeline_mode<synchronous>, transform_indices = @transform_3, window_bounds = array<i64: 1, 32>}, {transform_indices = @transform_4, window_bounds = array<i64: 128, 32>}]} {
    %c0 = arith.constant 0 : index
    %c0_0 = arith.constant 0 : index
    %0 = vector.load %arg1[%c0, %c0_0] : memref<128x32xf32, #tpu.memory_space<vmem>>, vector<128x32xf32>
    %c0_1 = arith.constant 0 : index
    %c0_2 = arith.constant 0 : index
    %1 = vector.load %arg2[%c0_1, %c0_2] : memref<2x32xf32, #tpu.memory_space<vmem>>, vector<2x32xf32>
    %2 = vector.extract_strided_slice %1 {offsets = [0, 0], sizes = [1, 32], strides = [1, 1]} : vector<2x32xf32> to vector<1x32xf32>
    %cst = arith.constant 7.812500e-03 : f32
    %3 = vector.broadcast %cst : f32 to vector<1x32xf32>
    %4 = arith.mulf %2, %3 : vector<1x32xf32>
    %5 = vector.extract_strided_slice %1 {offsets = [1, 0], sizes = [1, 32], strides = [1, 1]} : vector<2x32xf32> to vector<1x32xf32>
    %cst_3 = arith.constant 7.812500e-03 : f32
    %6 = vector.broadcast %cst_3 : f32 to vector<1x32xf32>
    %7 = arith.mulf %5, %6 : vector<1x32xf32>
    %8 = arith.mulf %4, %4 : vector<1x32xf32>
    %9 = arith.subf %7, %8 : vector<1x32xf32>
    %10 = vector.broadcast %4 : vector<1x32xf32> to vector<128x32xf32>
    %11 = arith.subf %0, %10 : vector<128x32xf32>
    %cst_4 = arith.constant 9.99999974E-6 : f32
    %12 = vector.broadcast %cst_4 : f32 to vector<1x32xf32>
    %13 = arith.addf %9, %12 : vector<1x32xf32>
    %14 = math.rsqrt %13 : vector<1x32xf32>
    %15 = vector.broadcast %14 : vector<1x32xf32> to vector<128x32xf32>
    %16 = arith.mulf %11, %15 : vector<128x32xf32>
    %c0_5 = arith.constant 0 : index
    %c0_6 = arith.constant 0 : index
    %17 = vector.load %arg3[%c0_5, %c0_6] : memref<1x32xf32, #tpu.memory_space<vmem>>, vector<1x32xf32>
    %18 = vector.broadcast %17 : vector<1x32xf32> to vector<128x32xf32>
    %19 = arith.mulf %16, %18 : vector<128x32xf32>
    %c0_7 = arith.constant 0 : index
    %c0_8 = arith.constant 0 : index
    %20 = vector.load %arg4[%c0_7, %c0_8] : memref<1x32xf32, #tpu.memory_space<vmem>>, vector<1x32xf32>
    %21 = vector.broadcast %20 : vector<1x32xf32> to vector<128x32xf32>
    %22 = arith.addf %19, %21 : vector<128x32xf32>
    %cst_9 = arith.constant 0.000000e+00 : f32
    %23 = vector.broadcast %cst_9 : f32 to vector<128x32xf32>
    %24 = arith.cmpf ogt, %22, %23 : vector<128x32xf32>
    %cst_10 = arith.constant 2.000000e-01 : f32
    %25 = vector.broadcast %cst_10 : f32 to vector<128x32xf32>
    %26 = arith.mulf %25, %22 : vector<128x32xf32>
    %27 = arith.select %24, %22, %26 : vector<128x32xi1>, vector<128x32xf32>
    %c0_11 = arith.constant 0 : index
    %c0_12 = arith.constant 0 : index
    %28 = vector.load %arg5[%c0_11, %c0_12] : memref<128x32xf32, #tpu.memory_space<vmem>>, vector<128x32xf32>
    tpu.vector_store %arg5[%c0_11, %c0_12], %27 {strides = array<i32>} : memref<128x32xf32, #tpu.memory_space<vmem>>, vector<128x32xf32>,
    return
  }
  func.func @transform_0(%arg0: i32) -> (i32, i32) {
    %c0_i32 = arith.constant 0 : i32
    %c0_i32_0 = arith.constant 0 : i32
    return %arg0, %c0_i32 : i32, i32
  }
  func.func @transform_1(%arg0: i32) -> (i32, i32) {
    %c0_i32 = arith.constant 0 : i32
    %c0_i32_0 = arith.constant 0 : i32
    %c0_i32_1 = arith.constant 0 : i32
    return %c0_i32, %c0_i32_0 : i32, i32
  }
  func.func @transform_2(%arg0: i32) -> (i32, i32) {
    %c0_i32 = arith.constant 0 : i32
    %c0_i32_0 = arith.constant 0 : i32
    %c0_i32_1 = arith.constant 0 : i32
    return %c0_i32, %c0_i32_0 : i32, i32
  }
  func.func @transform_3(%arg0: i32) -> (i32, i32) {
    %c0_i32 = arith.constant 0 : i32
    %c0_i32_0 = arith.constant 0 : i32
    %c0_i32_1 = arith.constant 0 : i32
    return %c0_i32, %c0_i32_0 : i32, i32
  }
  func.func @transform_4(%arg0: i32) -> (i32, i32) {
    %c0_i32 = arith.constant 0 : i32
    %c0_i32_0 = arith.constant 0 : i32
    return %arg0, %c0_i32 : i32, i32
  }
}

module attributes {stable_mosaic.version = 11 : i64} {
  func.func @kernel(%arg0: i32, %arg1: memref<32x800xbf16, #tpu.memory_space<vmem>>, %arg2: memref<800x64xbf16, #tpu.memory_space<vmem>>, %arg3: memref<1x64xf32, #tpu.memory_space<vmem>>, %arg4: memref<32x64xf32, #tpu.memory_space<vmem>>, %arg5: memref<2x64xf32, #tpu.memory_space<vmem>>) attributes {dimension_semantics = [#tpu.dimension_semantics<arbitrary>], iteration_bounds = array<i64: 1>, scalar_prefetch = 0 : i64, scratch_operands = 0 : i64, tpu.core_type = #tpu.core_type<tc>, window_params = [{transform_indices = @transform_0, window_bounds = array<i64: 32, 800>}, {pipeline_mode = #tpu.pipeline_mode<synchronous>, transform_indices = @transform_1, window_bounds = array<i64: 800, 64>}, {pipeline_mode = #tpu.pipeline_mode<synchronous>, transform_indices = @transform_2, window_bounds = array<i64: 1, 64>}, {transform_indices = @transform_3, window_bounds = array<i64: 32, 64>}, {pipeline_mode = #tpu.pipeline_mode<synchronous>, transform_indices = @transform_4, window_bounds = array<i64: 2, 64>}]} {
    %c0 = arith.constant 0 : index
    %c0_0 = arith.constant 0 : index
    %0 = vector.load %arg1[%c0, %c0_0] : memref<32x800xbf16, #tpu.memory_space<vmem>>, vector<32x800xbf16>
    %c0_1 = arith.constant 0 : index
    %c0_2 = arith.constant 0 : index
    %1 = vector.load %arg2[%c0_1, %c0_2] : memref<800x64xbf16, #tpu.memory_space<vmem>>, vector<800x64xbf16>
    %cst = arith.constant dense<0.000000e+00> : vector<32x64xf32>
    %2 = tpu.matmul %0, %1, %cst {dimension_numbers = #tpu.dot_dimension_numbers<[1], [0], [0], [1], [0, 0, 1, 1], [], []>} : vector<32x800xbf16>, vector<800x64xbf16>, vector<32x64xf32> -> vector<32x64xf32>
    %c0_3 = arith.constant 0 : index
    %c0_4 = arith.constant 0 : index
    %3 = vector.load %arg3[%c0_3, %c0_4] : memref<1x64xf32, #tpu.memory_space<vmem>>, vector<1x64xf32>
    %4 = vector.broadcast %3 : vector<1x64xf32> to vector<32x64xf32>
    %5 = arith.addf %2, %4 : vector<32x64xf32>
    %c0_5 = arith.constant 0 : index
    %c0_6 = arith.constant 0 : index
    %6 = vector.load %arg4[%c0_5, %c0_6] : memref<32x64xf32, #tpu.memory_space<vmem>>, vector<32x64xf32>
    tpu.vector_store %arg4[%c0_5, %c0_6], %5 {strides = array<i32>} : memref<32x64xf32, #tpu.memory_space<vmem>>, vector<32x64xf32>,
    %c32_i32 = arith.constant 32 : i32
    %7 = arith.muli %arg0, %c32_i32 : i32
    %8 = tpu.iota {dimensions = array<i32: 0>} : vector<32x64xi32>
    %9 = vector.broadcast %7 : i32 to vector<32x64xi32>
    %10 = arith.addi %9, %8 : vector<32x64xi32>
    %c32_i32_7 = arith.constant 32 : i32
    %11 = vector.broadcast %c32_i32_7 : i32 to vector<32x64xi32>
    %12 = arith.cmpi slt, %10, %11 : vector<32x64xi32>
    %cst_8 = arith.constant 0.000000e+00 : f32
    %13 = vector.broadcast %cst_8 : f32 to vector<32x64xf32>
    %14 = arith.select %12, %5, %13 : vector<32x64xi1>, vector<32x64xf32>
    %cst_9 = arith.constant dense<0.000000e+00> : vector<64xf32>
    %15 = vector.multi_reduction <add>, %14, %cst_9 [0] : vector<32x64xf32> to vector<64xf32>
    %16 = vector.shape_cast %15 : vector<64xf32> to vector<1x64xf32>
    %17 = arith.mulf %14, %14 : vector<32x64xf32>
    %cst_10 = arith.constant dense<0.000000e+00> : vector<64xf32>
    %18 = vector.multi_reduction <add>, %17, %cst_10 [0] : vector<32x64xf32> to vector<64xf32>
    %19 = vector.shape_cast %18 : vector<64xf32> to vector<1x64xf32>
    %c0_i32 = arith.constant 0 : i32
    %20 = arith.cmpi eq, %arg0, %c0_i32 : i32
    %21 = arith.extui %20 : i1 to i32
    %c0_i32_11 = arith.constant 0 : i32
    %22 = arith.cmpi ne, %21, %c0_i32_11 : i32
    scf.if %22 {
      %cst_16 = arith.constant 0.000000e+00 : f32
      %27 = vector.broadcast %cst_16 : f32 to vector<2x64xf32>
      %c0_17 = arith.constant 0 : index
      %c0_18 = arith.constant 0 : index
      %28 = vector.load %arg5[%c0_17, %c0_18] : memref<2x64xf32, #tpu.memory_space<vmem>>, vector<2x64xf32>
      tpu.vector_store %arg5[%c0_17, %c0_18], %27 {strides = array<i32>} : memref<2x64xf32, #tpu.memory_space<vmem>>, vector<2x64xf32>,
    } else {
    }
    %c0_12 = arith.constant 0 : index
    %c0_13 = arith.constant 0 : index
    %23 = vector.load %arg5[%c0_12, %c0_13] : memref<2x64xf32, #tpu.memory_space<vmem>>, vector<2x64xf32>
    %24 = tpu.concatenate %16, %19 in 0 : vector<1x64xf32>, vector<1x64xf32> -> vector<2x64xf32>
    %25 = arith.addf %23, %24 : vector<2x64xf32>
    %c0_14 = arith.constant 0 : index
    %c0_15 = arith.constant 0 : index
    %26 = vector.load %arg5[%c0_14, %c0_15] : memref<2x64xf32, #tpu.memory_space<vmem>>, vector<2x64xf32>
    tpu.vector_store %arg5[%c0_14, %c0_15], %25 {strides = array<i32>} : memref<2x64xf32, #tpu.memory_space<vmem>>, vector<2x64xf32>,
    return
  }
  func.func @transform_0(%arg0: i32) -> (i32, i32) {
    %c0_i32 = arith.constant 0 : i32
    %c0_i32_0 = arith.constant 0 : i32
    return %arg0, %c0_i32 : i32, i32
  }
  func.func @transform_1(%arg0: i32) -> (i32, i32) {
    %c0_i32 = arith.constant 0 : i32
    %c0_i32_0 = arith.constant 0 : i32
    %c0_i32_1 = arith.constant 0 : i32
    return %c0_i32, %c0_i32_0 : i32, i32
  }
  func.func @transform_2(%arg0: i32) -> (i32, i32) {
    %c0_i32 = arith.constant 0 : i32
    %c0_i32_0 = arith.constant 0 : i32
    %c0_i32_1 = arith.constant 0 : i32
    return %c0_i32, %c0_i32_0 : i32, i32
  }
  func.func @transform_3(%arg0: i32) -> (i32, i32) {
    %c0_i32 = arith.constant 0 : i32
    %c0_i32_0 = arith.constant 0 : i32
    return %arg0, %c0_i32 : i32, i32
  }
  func.func @transform_4(%arg0: i32) -> (i32, i32) {
    %c0_i32 = arith.constant 0 : i32
    %c0_i32_0 = arith.constant 0 : i32
    %c0_i32_1 = arith.constant 0 : i32
    return %c0_i32, %c0_i32_0 : i32, i32
  }
}

module attributes {stable_mosaic.version = 11 : i64} {
  func.func @kernel(%arg0: i32, %arg1: memref<32x64xf32, #tpu.memory_space<vmem>>, %arg2: memref<2x64xf32, #tpu.memory_space<vmem>>, %arg3: memref<1x64xf32, #tpu.memory_space<vmem>>, %arg4: memref<1x64xf32, #tpu.memory_space<vmem>>, %arg5: memref<32x64xf32, #tpu.memory_space<vmem>>) attributes {dimension_semantics = [#tpu.dimension_semantics<parallel>], iteration_bounds = array<i64: 1>, scalar_prefetch = 0 : i64, scratch_operands = 0 : i64, tpu.core_type = #tpu.core_type<tc>, window_params = [{transform_indices = @transform_0, window_bounds = array<i64: 32, 64>}, {pipeline_mode = #tpu.pipeline_mode<synchronous>, transform_indices = @transform_1, window_bounds = array<i64: 2, 64>}, {pipeline_mode = #tpu.pipeline_mode<synchronous>, transform_indices = @transform_2, window_bounds = array<i64: 1, 64>}, {pipeline_mode = #tpu.pipeline_mode<synchronous>, transform_indices = @transform_3, window_bounds = array<i64: 1, 64>}, {transform_indices = @transform_4, window_bounds = array<i64: 32, 64>}]} {
    %c0 = arith.constant 0 : index
    %c0_0 = arith.constant 0 : index
    %0 = vector.load %arg1[%c0, %c0_0] : memref<32x64xf32, #tpu.memory_space<vmem>>, vector<32x64xf32>
    %c0_1 = arith.constant 0 : index
    %c0_2 = arith.constant 0 : index
    %1 = vector.load %arg2[%c0_1, %c0_2] : memref<2x64xf32, #tpu.memory_space<vmem>>, vector<2x64xf32>
    %2 = vector.extract_strided_slice %1 {offsets = [0, 0], sizes = [1, 64], strides = [1, 1]} : vector<2x64xf32> to vector<1x64xf32>
    %cst = arith.constant 3.125000e-02 : f32
    %3 = vector.broadcast %cst : f32 to vector<1x64xf32>
    %4 = arith.mulf %2, %3 : vector<1x64xf32>
    %5 = vector.extract_strided_slice %1 {offsets = [1, 0], sizes = [1, 64], strides = [1, 1]} : vector<2x64xf32> to vector<1x64xf32>
    %cst_3 = arith.constant 3.125000e-02 : f32
    %6 = vector.broadcast %cst_3 : f32 to vector<1x64xf32>
    %7 = arith.mulf %5, %6 : vector<1x64xf32>
    %8 = arith.mulf %4, %4 : vector<1x64xf32>
    %9 = arith.subf %7, %8 : vector<1x64xf32>
    %10 = vector.broadcast %4 : vector<1x64xf32> to vector<32x64xf32>
    %11 = arith.subf %0, %10 : vector<32x64xf32>
    %cst_4 = arith.constant 9.99999974E-6 : f32
    %12 = vector.broadcast %cst_4 : f32 to vector<1x64xf32>
    %13 = arith.addf %9, %12 : vector<1x64xf32>
    %14 = math.rsqrt %13 : vector<1x64xf32>
    %15 = vector.broadcast %14 : vector<1x64xf32> to vector<32x64xf32>
    %16 = arith.mulf %11, %15 : vector<32x64xf32>
    %c0_5 = arith.constant 0 : index
    %c0_6 = arith.constant 0 : index
    %17 = vector.load %arg3[%c0_5, %c0_6] : memref<1x64xf32, #tpu.memory_space<vmem>>, vector<1x64xf32>
    %18 = vector.broadcast %17 : vector<1x64xf32> to vector<32x64xf32>
    %19 = arith.mulf %16, %18 : vector<32x64xf32>
    %c0_7 = arith.constant 0 : index
    %c0_8 = arith.constant 0 : index
    %20 = vector.load %arg4[%c0_7, %c0_8] : memref<1x64xf32, #tpu.memory_space<vmem>>, vector<1x64xf32>
    %21 = vector.broadcast %20 : vector<1x64xf32> to vector<32x64xf32>
    %22 = arith.addf %19, %21 : vector<32x64xf32>
    %cst_9 = arith.constant 0.000000e+00 : f32
    %23 = vector.broadcast %cst_9 : f32 to vector<32x64xf32>
    %24 = arith.cmpf ogt, %22, %23 : vector<32x64xf32>
    %cst_10 = arith.constant 2.000000e-01 : f32
    %25 = vector.broadcast %cst_10 : f32 to vector<32x64xf32>
    %26 = arith.mulf %25, %22 : vector<32x64xf32>
    %27 = arith.select %24, %22, %26 : vector<32x64xi1>, vector<32x64xf32>
    %c0_11 = arith.constant 0 : index
    %c0_12 = arith.constant 0 : index
    %28 = vector.load %arg5[%c0_11, %c0_12] : memref<32x64xf32, #tpu.memory_space<vmem>>, vector<32x64xf32>
    tpu.vector_store %arg5[%c0_11, %c0_12], %27 {strides = array<i32>} : memref<32x64xf32, #tpu.memory_space<vmem>>, vector<32x64xf32>,
    return
  }
  func.func @transform_0(%arg0: i32) -> (i32, i32) {
    %c0_i32 = arith.constant 0 : i32
    %c0_i32_0 = arith.constant 0 : i32
    return %arg0, %c0_i32 : i32, i32
  }
  func.func @transform_1(%arg0: i32) -> (i32, i32) {
    %c0_i32 = arith.constant 0 : i32
    %c0_i32_0 = arith.constant 0 : i32
    %c0_i32_1 = arith.constant 0 : i32
    return %c0_i32, %c0_i32_0 : i32, i32
  }
  func.func @transform_2(%arg0: i32) -> (i32, i32) {
    %c0_i32 = arith.constant 0 : i32
    %c0_i32_0 = arith.constant 0 : i32
    %c0_i32_1 = arith.constant 0 : i32
    return %c0_i32, %c0_i32_0 : i32, i32
  }
  func.func @transform_3(%arg0: i32) -> (i32, i32) {
    %c0_i32 = arith.constant 0 : i32
    %c0_i32_0 = arith.constant 0 : i32
    %c0_i32_1 = arith.constant 0 : i32
    return %c0_i32, %c0_i32_0 : i32, i32
  }
  func.func @transform_4(%arg0: i32) -> (i32, i32) {
    %c0_i32 = arith.constant 0 : i32
    %c0_i32_0 = arith.constant 0 : i32
    return %arg0, %c0_i32 : i32, i32
  }
}

module attributes {stable_mosaic.version = 11 : i64} {
  func.func @kernel(%arg0: i32, %arg1: memref<8x1024xbf16, #tpu.memory_space<vmem>>, %arg2: memref<1024x1xbf16, #tpu.memory_space<vmem>>, %arg3: memref<1x1xf32, #tpu.memory_space<vmem>>, %arg4: memref<8x1xf32, #tpu.memory_space<vmem>>) attributes {dimension_semantics = [#tpu.dimension_semantics<parallel>], iteration_bounds = array<i64: 1>, scalar_prefetch = 0 : i64, scratch_operands = 0 : i64, tpu.core_type = #tpu.core_type<tc>, window_params = [{transform_indices = @transform_0, window_bounds = array<i64: 8, 1024>}, {pipeline_mode = #tpu.pipeline_mode<synchronous>, transform_indices = @transform_1, window_bounds = array<i64: 1024, 1>}, {pipeline_mode = #tpu.pipeline_mode<synchronous>, transform_indices = @transform_2, window_bounds = array<i64: 1, 1>}, {transform_indices = @transform_3, window_bounds = array<i64: 8, 1>}]} {
    %c0 = arith.constant 0 : index
    %c0_0 = arith.constant 0 : index
    %0 = vector.load %arg1[%c0, %c0_0] : memref<8x1024xbf16, #tpu.memory_space<vmem>>, vector<8x1024xbf16>
    %c0_1 = arith.constant 0 : index
    %c0_2 = arith.constant 0 : index
    %1 = vector.load %arg2[%c0_1, %c0_2] : memref<1024x1xbf16, #tpu.memory_space<vmem>>, vector<1024x1xbf16>
    %cst = arith.constant dense<0.000000e+00> : vector<8x1xf32>
    %2 = tpu.matmul %0, %1, %cst {dimension_numbers = #tpu.dot_dimension_numbers<[1], [0], [0], [1], [0, 0, 1, 1], [], []>} : vector<8x1024xbf16>, vector<1024x1xbf16>, vector<8x1xf32> -> vector<8x1xf32>
    %c0_3 = arith.constant 0 : index
    %c0_4 = arith.constant 0 : index
    %3 = vector.load %arg3[%c0_3, %c0_4] : memref<1x1xf32, #tpu.memory_space<vmem>>, vector<1x1xf32>
    %4 = vector.broadcast %3 : vector<1x1xf32> to vector<8x1xf32>
    %5 = arith.addf %2, %4 : vector<8x1xf32>
    %cst_5 = arith.constant 0.000000e+00 : f32
    %6 = vector.broadcast %cst_5 : f32 to vector<8x1xf32>
    %7 = arith.subf %6, %5 : vector<8x1xf32>
    %8 = math.exp %7 : vector<8x1xf32>
    %cst_6 = arith.constant 1.000000e+00 : f32
    %9 = vector.broadcast %cst_6 : f32 to vector<8x1xf32>
    %10 = arith.addf %9, %8 : vector<8x1xf32>
    %11 = tpu.reciprocal %10 {approx = true} : vector<8x1xf32> -> vector<8x1xf32>
    %c0_7 = arith.constant 0 : index
    %c0_8 = arith.constant 0 : index
    %12 = vector.load %arg4[%c0_7, %c0_8] : memref<8x1xf32, #tpu.memory_space<vmem>>, vector<8x1xf32>
    tpu.vector_store %arg4[%c0_7, %c0_8], %11 {strides = array<i32>} : memref<8x1xf32, #tpu.memory_space<vmem>>, vector<8x1xf32>,
    return
  }
  func.func @transform_0(%arg0: i32) -> (i32, i32) {
    %c0_i32 = arith.constant 0 : i32
    %c0_i32_0 = arith.constant 0 : i32
    return %arg0, %c0_i32 : i32, i32
  }
  func.func @transform_1(%arg0: i32) -> (i32, i32) {
    %c0_i32 = arith.constant 0 : i32
    %c0_i32_0 = arith.constant 0 : i32
    %c0_i32_1 = arith.constant 0 : i32
    return %c0_i32, %c0_i32_0 : i32, i32
  }
  func.func @transform_2(%arg0: i32) -> (i32, i32) {
    %c0_i32 = arith.constant 0 : i32
    %c0_i32_0 = arith.constant 0 : i32
    %c0_i32_1 = arith.constant 0 : i32
    return %c0_i32, %c0_i32_0 : i32, i32
  }
  func.func @transform_3(%arg0: i32) -> (i32, i32) {
    %c0_i32 = arith.constant 0 : i32
    %c0_i32_0 = arith.constant 0 : i32
    return %arg0, %c0_i32 : i32, i32
  }
}

</mosaic_0001>

<bundles_post_ra>
// kernel: discriminator_forward.8
= control target key start
LH: loop header
LB: loop body
LE: loop exit
PB: predicated region body
PF: predicated region fallthrough
CT: control target
= control target key end

     0   :  { %s2453_s12 = smov 0   ;;  %s3015_s0 = inlined_call_operand.vmem [shape: bf16[2048,75], index: 0, kind: input, shape index: {}]   ;;  %s3016_s1 = inlined_call_operand.vmem [shape: bf16[75,8], index: 1, kind: input, shape index: {}]   ;;  %s3017_s2 = inlined_call_operand.vmem [shape: f32[1,8], index: 2, kind: input, shape index: {}]   ;;  %s3018_s3 = inlined_call_operand.vmem [shape: f32[2048,8], index: 3, kind: output, shape index: {}]  }
   0x1 LB: > { %s1983_s13 = sadd.s32 4294967295, %s2430_s12   ;;  %p1987_p0 = scmp.ge.s32.totalorder %s2430_s12, 1  ;;  %s2430_s12 = sphi %s2453_s12, %s13_s12  }
   0x2   : > { %p138_p1 = scmp.lt.s32.totalorder %s2430_s12, 3 }
   0x4   : > { %p139_p2 = pnand %p1987_p0, %p138_p1 }
   0x5   : > { %s1988_s18 = sshll.u32 (!%p139_p2), %s1983_s13, 7 }
   0x6   : > { %142 = sbr.rel (%p139_p2) target bundleno = 362 (0x16a), region = 32  ;;  %p163_p3 = scmp.lt.s32.totalorder (!%p139_p2), %s1988_s18, 255 }
   0xb   : > { %v2354_v0 = vld [vmem:[%s3016_s1 + $0x20] sm:$0x3f]   ;;  %vm862_vm0 = vcmask 1044480   ;;  %vm863_vm1 = vcmask 1045504   ;;  %v2432_v1 = vmov 65535   ;;  %v2355_v4 = vld [vmem:[%s3016_s1 + $0x18] sm:$0xff]  }
   0xc   : > { %v864_v2 = vsel %vm862_vm0, 4294967295, %v2432_v1  ;;  %v2356_v6 = vld [vmem:[%s3016_s1 + $0x10] sm:$0xff]   ;;  %s3020_s18 = smov (!%p163_p3, %s1988_s18), 255  ;;  %v2357_v7 = vld [vmem:[%s3016_s1 + $0x8] sm:$0xff]   ;;  %vm669_vm2 = vcmask 613376   ;;  %v2358_v10 = vld [vmem:[%s3016_s1] sm:$0xff]  }
   0xd   : > { %v865_v3 = vsel %vm863_vm1, %v864_v2, 0  ;;  %s1989_s21 = sshll.u32 %s3020_s18, 2  ;;  %s1991_s4 = sshll.u32 %s3020_s18, 3  ;;  %vm1798_vm3 = vcmask 64512  }
   0xe   : > { %v867_v5 = vand.u32 %v2354_v0, %v865_v3  ;;  %s2479_s26 = scalar_lea.vmem %s3015_s0, %s1989_s21  ;;  %s2623_s7 = scalar_lea.vmem %s3018_s3, %s1991_s4 }
   0xf   : > { %v2359_v8 = vld [vmem:[%s2479_s26] sm:$0xff]   ;;  %v2361_v11 = vld [vmem:[%s2479_s26 + $0x8] sm:$0xff]   ;;  %v2363_v13 = vld [vmem:[%s2479_s26 + $0x10] sm:$0xff]  }
  0x10   : > { %2197 = vmatprep.subr.bf16.mxu0 %v867_v5  ;;  %2335 = vmatprep.subr.bf16.mxu1 %v867_v5  ;;  %v2360_v9 = vld [vmem:[%s2479_s26 + $0x100] sm:$0xff]   ;;  %v2362_v12 = vld [vmem:[%s2479_s26 + $0x108] sm:$0xff]   ;;  %v2364_v14 = vld [vmem:[%s2479_s26 + $0x110] sm:$0xff]  }
  0x11   : > { %2198 = vmatpush3.bf16.msra.mxu0 %v867_v5  ;;  %2340 = vmatpush3.bf16.msra.mxu1 %v867_v5  ;;  %v2365_v15 = vld [vmem:[%s2479_s26 + $0x18] sm:$0xff]   ;;  %v2367_v17 = vld [vmem:[%s2479_s26 + $0x20] sm:$0xff]   ;;  %v2369_v19 = vld [vmem:[%s2479_s26 + $0x28] sm:$0xff]  }
  0x12   : > { %2199 = vmatprep.subr.bf16.mxu0 %v2355_v4  ;;  %2336 = vmatprep.subr.bf16.mxu1 %v2355_v4  ;;  %v2366_v16 = vld [vmem:[%s2479_s26 + $0x118] sm:$0xff]   ;;  %v2368_v18 = vld [vmem:[%s2479_s26 + $0x120] sm:$0xff]   ;;  %v2370_v20 = vld [vmem:[%s2479_s26 + $0x128] sm:$0xff]  }
  0x13   : > { %2207 = vmatprep.mubr.msk.bf16.mxu0 %vm669_vm2, %v2359_v8  ;;  %2271 = vmatprep.mubr.msk.bf16.mxu1 %vm669_vm2, %v2360_v9  ;;  %v2371_v21 = vld [vmem:[%s2479_s26 + $0x30] sm:$0xff]   ;;  %v2373_v23 = vld [vmem:[%s2479_s26 + $0x38] sm:$0xff]   ;;  %v2375_v25 = vld [vmem:[%s2479_s26 + $0x40] sm:$0xff]  }
  0x14   : > { %v2372_v22 = vld [vmem:[%s2479_s26 + $0x130] sm:$0xff]   ;;  %v2374_v24 = vld [vmem:[%s2479_s26 + $0x138] sm:$0xff]   ;;  %v2376_v26 = vld [vmem:[%s2479_s26 + $0x140] sm:$0xff]  }
  0x15   : > { %2200 = vmatpush3.bf16.msra.mxu0 %v2355_v4  ;;  %2341 = vmatpush3.bf16.msra.mxu1 %v2355_v4  ;;  %v2377_v27 = vld [vmem:[%s2479_s26 + $0x48] sm:$0xff]   ;;  %v2379_v29 = vld [vmem:[%s2479_s26 + $0x50] sm:$0xff]   ;;  %v2381_v31 = vld [vmem:[%s2479_s26 + $0x58] sm:$0xff]  }
  0x16   : > { %2201 = vmatprep.subr.bf16.mxu0 %v2356_v6  ;;  %2337 = vmatprep.subr.bf16.mxu1 %v2356_v6  ;;  %v2378_v28 = vld [vmem:[%s2479_s26 + $0x148] sm:$0xff]   ;;  %v2380_v30 = vld [vmem:[%s2479_s26 + $0x150] sm:$0xff]   ;;  %v2382_v32 = vld [vmem:[%s2479_s26 + $0x158] sm:$0xff]  }
  0x17   : > { %v2383_v33 = vld [vmem:[%s2479_s26 + $0x60] sm:$0xff]   ;;  %v2385_v35 = vld [vmem:[%s2479_s26 + $0x68] sm:$0xff]   ;;  %v2387_v37 = vld [vmem:[%s2479_s26 + $0x70] sm:$0xff]  }
  0x18   : > { %v2384_v34 = vld [vmem:[%s2479_s26 + $0x160] sm:$0xff]   ;;  %v2386_v36 = vld [vmem:[%s2479_s26 + $0x168] sm:$0xff]   ;;  %v2388_v38 = vld [vmem:[%s2479_s26 + $0x170] sm:$0xff]  }
  0x19   : > { %2202 = vmatpush3.bf16.msra.mxu0 %v2356_v6  ;;  %2342 = vmatpush3.bf16.msra.mxu1 %v2356_v6  ;;  %v2389_v39 = vld [vmem:[%s2479_s26 + $0x78] sm:$0xff]   ;;  %v2391_v41 = vld [vmem:[%s2479_s26 + $0x80] sm:$0xff]   ;;  %v2393_v43 = vld [vmem:[%s2479_s26 + $0x88] sm:$0xff]  }
  0x1a   : > { %2203 = vmatprep.subr.bf16.mxu0 %v2357_v7  ;;  %2338 = vmatprep.subr.bf16.mxu1 %v2357_v7  ;;  %v2390_v40 = vld [vmem:[%s2479_s26 + $0x178] sm:$0xff]   ;;  %v2392_v42 = vld [vmem:[%s2479_s26 + $0x180] sm:$0xff]   ;;  %v2394_v44 = vld [vmem:[%s2479_s26 + $0x188] sm:$0xff]  }
  0x1b   : > { %v2395_v45 = vld [vmem:[%s2479_s26 + $0x90] sm:$0xff]   ;;  %v2397_v47 = vld [vmem:[%s2479_s26 + $0x98] sm:$0xff]   ;;  %v2399_v49 = vld [vmem:[%s2479_s26 + $0xa0] sm:$0xff]  }
  0x1c   : > { %v2396_v46 = vld [vmem:[%s2479_s26 + $0x190] sm:$0xff]   ;;  %v2398_v48 = vld [vmem:[%s2479_s26 + $0x198] sm:$0xff]   ;;  %v2400_v50 = vld [vmem:[%s2479_s26 + $0x1a0] sm:$0xff]  }
  0x1d   : > { %2204 = vmatpush3.bf16.msra.mxu0 %v2357_v7  ;;  %2343 = vmatpush3.bf16.msra.mxu1 %v2357_v7  ;;  %v2401_v51 = vld [vmem:[%s2479_s26 + $0xa8] sm:$0xff]   ;;  %v2403_v53 = vld [vmem:[%s2479_s26 + $0xb0] sm:$0xff]   ;;  %v2405_v55 = vld [vmem:[%s2479_s26 + $0xb8] sm:$0xff]  }
  0x1e   : > { %2205 = vmatprep.subr.bf16.mxu0 %v2358_v10  ;;  %2339 = vmatprep.subr.bf16.mxu1 %v2358_v10  ;;  %v2402_v52 = vld [vmem:[%s2479_s26 + $0x1a8] sm:$0xff]   ;;  %v2404_v54 = vld [vmem:[%s2479_s26 + $0x1b0] sm:$0xff]   ;;  %v2406_v56 = vld [vmem:[%s2479_s26 + $0x1b8] sm:$0xff]  }
  0x1f   : > { %v2407_v57 = vld [vmem:[%s2479_s26 + $0xc0] sm:$0xff]   ;;  %v2409_v59 = vld [vmem:[%s2479_s26 + $0xc8] sm:$0xff]   ;;  %v2411_v61 = vld [vmem:[%s2479_s26 + $0xd0] sm:$0xff]  }
  0x20   : > { %v2408_v58 = vld [vmem:[%s2479_s26 + $0x1c0] sm:$0xff]   ;;  %v2410_v60 = vld [vmem:[%s2479_s26 + $0x1c8] sm:$0xff]   ;;  %v2412_v62 = vld [vmem:[%s2479_s26 + $0x1d0] sm:$0xff]  }
  0x21   : > { %2206 = vmatpush3.bf16.msra.mxu0 %v2358_v10  ;;  %2344 = vmatpush3.bf16.msra.mxu1 %v2358_v10  ;;  %v2413_v63 = vld [vmem:[%s2479_s26 + $0xd8] sm:$0xff]   ;;  %v2415_v1 = vld [vmem:[%s2479_s26 + $0xe0] sm:$0xff]   ;;  %v2417_v3 = vld [vmem:[%s2479_s26 + $0xe8] sm:$0xff]  }
  0x22   : > { %v2414_v0 = vld [vmem:[%s2479_s26 + $0x1d8] sm:$0xff]   ;;  %v2416_v2 = vld [vmem:[%s2479_s26 + $0x1e0] sm:$0xff]   ;;  %v2418_v4 = vld [vmem:[%s2479_s26 + $0x1e8] sm:$0xff]  }
  0x23   : > { %v2419_v5 = vld [vmem:[%s2479_s26 + $0xf0] sm:$0xff]   ;;  %v2421_v7 = vld [vmem:[%s2479_s26 + $0xf8] sm:$0xff]   ;;  %v2615_v9 = vld [vmem:[%s3017_s2] ss:$0 sm:$0xff] }
  0x24   : > { %2208 = vmatmul.mubr.msk.bf16.vlgmr.msra.gmra.mxu0 %vm669_vm2, %v2361_v11  ;;  %2272 = vmatmul.mubr.msk.bf16.vlgmr.msra.gmra.mxu1 %vm669_vm2, %v2362_v12  ;;  %v2420_v6 = vld [vmem:[%s2479_s26 + $0x1f0] sm:$0xff]   ;;  %v2422_v8 = vld [vmem:[%s2479_s26 + $0x1f8] sm:$0xff]  }
  0x25   : > { %2211 = vmatprep.mubr.msk.bf16.mxu0 %vm669_vm2, %v2363_v13  ;;  %2275 = vmatprep.mubr.msk.bf16.mxu1 %vm669_vm2, %v2364_v14 }
  0x2c   : > { %2212 = vmatmul.mubr.msk.bf16.gmra.mxu0 %vm669_vm2, %v2365_v15  ;;  %2276 = vmatmul.mubr.msk.bf16.gmra.mxu1 %vm669_vm2, %v2366_v16 }
  0x2d   : > { %2215 = vmatprep.mubr.msk.bf16.mxu0 %vm669_vm2, %v2367_v17  ;;  %2279 = vmatprep.mubr.msk.bf16.mxu1 %vm669_vm2, %v2368_v18 }
  0x34   : > { %2216 = vmatmul.mubr.msk.bf16.gmra.mxu0 %vm669_vm2, %v2369_v19  ;;  %2280 = vmatmul.mubr.msk.bf16.gmra.mxu1 %vm669_vm2, %v2370_v20 }
  0x35   : > { %2219 = vmatprep.mubr.msk.bf16.mxu0 %vm669_vm2, %v2371_v21  ;;  %2283 = vmatprep.mubr.msk.bf16.mxu1 %vm669_vm2, %v2372_v22 }
  0x3c   : > { %2220 = vmatmul.mubr.msk.bf16.gmra.mxu0 %vm669_vm2, %v2373_v23  ;;  %2284 = vmatmul.mubr.msk.bf16.gmra.mxu1 %vm669_vm2, %v2374_v24 }
  0x3d   : > { %2223 = vmatprep.mubr.msk.bf16.mxu0 %vm669_vm2, %v2375_v25  ;;  %2287 = vmatprep.mubr.msk.bf16.mxu1 %vm669_vm2, %v2376_v26 }
  0x44   : > { %2224 = vmatmul.mubr.msk.bf16.gmra.mxu0 %vm669_vm2, %v2377_v27  ;;  %2288 = vmatmul.mubr.msk.bf16.gmra.mxu1 %vm669_vm2, %v2378_v28 }
  0x45   : > { %2227 = vmatprep.mubr.msk.bf16.mxu0 %vm669_vm2, %v2379_v29  ;;  %2291 = vmatprep.mubr.msk.bf16.mxu1 %vm669_vm2, %v2380_v30 }
  0x4c   : > { %2228 = vmatmul.mubr.msk.bf16.gmra.mxu0 %vm669_vm2, %v2381_v31  ;;  %2292 = vmatmul.mubr.msk.bf16.gmra.mxu1 %vm669_vm2, %v2382_v32 }
  0x4d   : > { %2231 = vmatprep.mubr.msk.bf16.mxu0 %vm669_vm2, %v2383_v33  ;;  %2295 = vmatprep.mubr.msk.bf16.mxu1 %vm669_vm2, %v2384_v34 }
  0x54   : > { %2232 = vmatmul.mubr.msk.bf16.gmra.mxu0 %vm669_vm2, %v2385_v35  ;;  %2296 = vmatmul.mubr.msk.bf16.gmra.mxu1 %vm669_vm2, %v2386_v36 }
  0x55   : > { %2235 = vmatprep.mubr.msk.bf16.mxu0 %vm669_vm2, %v2387_v37  ;;  %2299 = vmatprep.mubr.msk.bf16.mxu1 %vm669_vm2, %v2388_v38 }
  0x5c   : > { %2236 = vmatmul.mubr.msk.bf16.gmra.mxu0 %vm669_vm2, %v2389_v39  ;;  %2300 = vmatmul.mubr.msk.bf16.gmra.mxu1 %vm669_vm2, %v2390_v40 }
  0x5d   : > { %2239 = vmatprep.mubr.msk.bf16.mxu0 %vm669_vm2, %v2391_v41  ;;  %2303 = vmatprep.mubr.msk.bf16.mxu1 %vm669_vm2, %v2392_v42 }
  0x64   : > { %2240 = vmatmul.mubr.msk.bf16.gmra.mxu0 %vm669_vm2, %v2393_v43  ;;  %2304 = vmatmul.mubr.msk.bf16.gmra.mxu1 %vm669_vm2, %v2394_v44 }
  0x65   : > { %2243 = vmatprep.mubr.msk.bf16.mxu0 %vm669_vm2, %v2395_v45  ;;  %2307 = vmatprep.mubr.msk.bf16.mxu1 %vm669_vm2, %v2396_v46 }
  0x6c   : > { %2244 = vmatmul.mubr.msk.bf16.gmra.mxu0 %vm669_vm2, %v2397_v47  ;;  %2308 = vmatmul.mubr.msk.bf16.gmra.mxu1 %vm669_vm2, %v2398_v48 }
  0x6d   : > { %2247 = vmatprep.mubr.msk.bf16.mxu0 %vm669_vm2, %v2399_v49  ;;  %2311 = vmatprep.mubr.msk.bf16.mxu1 %vm669_vm2, %v2400_v50 }
  0x74   : > { %2248 = vmatmul.mubr.msk.bf16.gmra.mxu0 %vm669_vm2, %v2401_v51  ;;  %2312 = vmatmul.mubr.msk.bf16.gmra.mxu1 %vm669_vm2, %v2402_v52 }
  0x75   : > { %2251 = vmatprep.mubr.msk.bf16.mxu0 %vm669_vm2, %v2403_v53  ;;  %2315 = vmatprep.mubr.msk.bf16.mxu1 %vm669_vm2, %v2404_v54 }
  0x7c   : > { %2252 = vmatmul.mubr.msk.bf16.gmra.mxu0 %vm669_vm2, %v2405_v55  ;;  %2316 = vmatmul.mubr.msk.bf16.gmra.mxu1 %vm669_vm2, %v2406_v56 }
  0x7d   : > { %2255 = vmatprep.mubr.msk.bf16.mxu0 %vm669_vm2, %v2407_v57  ;;  %2319 = vmatprep.mubr.msk.bf16.mxu1 %vm669_vm2, %v2408_v58 }
  0x84   : > { %2256 = vmatmul.mubr.msk.bf16.gmra.mxu0 %vm669_vm2, %v2409_v59  ;;  %2320 = vmatmul.mubr.msk.bf16.gmra.mxu1 %vm669_vm2, %v2410_v60 }
  0x85   : > { %2259 = vmatprep.mubr.msk.bf16.mxu0 %vm669_vm2, %v2411_v61  ;;  %2323 = vmatprep.mubr.msk.bf16.mxu1 %vm669_vm2, %v2412_v62 }
  0x8c   : > { %2260 = vmatmul.mubr.msk.bf16.gmra.mxu0 %vm669_vm2, %v2413_v63  ;;  %2324 = vmatmul.mubr.msk.bf16.gmra.mxu1 %vm669_vm2, %v2414_v0 }
  0x8d   : > { %2263 = vmatprep.mubr.msk.bf16.mxu0 %vm669_vm2, %v2415_v1  ;;  %2327 = vmatprep.mubr.msk.bf16.mxu1 %vm669_vm2, %v2416_v2 }
  0x94   : > { %2264 = vmatmul.mubr.msk.bf16.gmra.mxu0 %vm669_vm2, %v2417_v3  ;;  %2328 = vmatmul.mubr.msk.bf16.gmra.mxu1 %vm669_vm2, %v2418_v4 }
  0x95   : > { %2267 = vmatprep.mubr.msk.bf16.mxu0 %vm669_vm2, %v2419_v5  ;;  %2331 = vmatprep.mubr.msk.bf16.mxu1 %vm669_vm2, %v2420_v6 }
  0x9c   : > { %2268 = vmatmul.mubr.msk.bf16.gmra.mxu0 %vm669_vm2, %v2421_v7  ;;  %2332 = vmatmul.mubr.msk.bf16.gmra.mxu1 %vm669_vm2, %v2422_v8 }
  0xe4   : > { %v2209_v10 = vpop.f32.mrf.mxu0  ;;  %v2273_v11 = vpop.f32.mrf.mxu1 }
  0xe5   : > { %v912_v12 = vadd.f32 %v2209_v10, %v2615_v9  ;;  %v1168_v13 = vadd.f32 %v2273_v11, %v2615_v9 }
  0xe6   : > { %v903_v14 = vpop.f32.mrf.mxu0  ;;  %v1159_v15 = vpop.f32.mrf.mxu1 }
  0xe7   : > { %vm1416_vm4 = vcmp.gt.f32.partialorder %v912_v12, 0.0  ;;  %v1544_v16 = vmul.f32 0.2, %v912_v12  ;;  %vm1480_vm5 = vcmp.gt.f32.partialorder %v1168_v13, 0.0  ;;  %v1608_v17 = vmul.f32 0.2, %v1168_v13 }
  0xe8   : > { %v904_v18 = vadd.f32 %v2615_v9, %v903_v14  ;;  %v1160_v19 = vadd.f32 %v2615_v9, %v1159_v15  ;;  %v2210_v20 = vpop.f32.mrf.mxu0  ;;  %v2274_v21 = vpop.f32.mrf.mxu1 }
  0xe9   : > { %v1672_v22 = vsel %vm1416_vm4, %v912_v12, %v1544_v16  ;;  %v1736_v23 = vsel %vm1480_vm5, %v1168_v13, %v1608_v17  ;;  %v915_v24 = vadd.f32 %v2210_v20, %v2615_v9  ;;  %v1171_v25 = vadd.f32 %v2274_v21, %v2615_v9 }
  0xea   : > { %1801 = vst.msk [vmem:[%s2623_s7 + $0x10] sm:$0xff] %vm1798_vm3, %v1672_v22  ;;  %1865 = vst.msk [vmem:[%s2623_s7 + $0x210] sm:$0xff] %vm1798_vm3, %v1736_v23  ;;  %vm1414_vm6 = vcmp.gt.f32.partialorder %v904_v18, 0.0  ;;  %v1542_v26 = vmul.f32 0.2, %v904_v18  ;;  %vm1478_vm7 = vcmp.gt.f32.partialorder %v1160_v19, 0.0  ;;  %v906_v28 = vpop.f32.mrf.mxu0  ;;  %v1162_v29 = vpop.f32.mrf.mxu1 }
  0xeb   : > { %v1606_v27 = vmul.f32 0.2, %v1160_v19  ;;  %vm1417_vm8 = vcmp.gt.f32.partialorder %v915_v24, 0.0  ;;  %v1545_v30 = vmul.f32 0.2, %v915_v24  ;;  %vm1481_vm9 = vcmp.gt.f32.partialorder %v1171_v25, 0.0 }
  0xec   : > { %v1609_v31 = vmul.f32 0.2, %v1171_v25  ;;  %v1670_v32 = vsel %vm1414_vm6, %v904_v18, %v1542_v26  ;;  %v907_v34 = vadd.f32 %v2615_v9, %v906_v28  ;;  %v1163_v35 = vadd.f32 %v2615_v9, %v1162_v29  ;;  %v2213_v36 = vpop.f32.mrf.mxu0  ;;  %v2277_v37 = vpop.f32.mrf.mxu1 }
  0xed   : > { %v1734_v33 = vsel %vm1478_vm7, %v1160_v19, %v1606_v27  ;;  %1799 = vst.msk [vmem:[%s2623_s7] sm:$0xff] %vm1798_vm3, %v1670_v32  ;;  %v1673_v38 = vsel %vm1417_vm8, %v915_v24, %v1545_v30  ;;  %v928_v40 = vadd.f32 %v2213_v36, %v2615_v9  ;;  %v1184_v41 = vadd.f32 %v2277_v37, %v2615_v9 }
  0xee   : > { %1863 = vst.msk [vmem:[%s2623_s7 + $0x200] sm:$0xff] %vm1798_vm3, %v1734_v33  ;;  %v1737_v39 = vsel %vm1481_vm9, %v1171_v25, %v1609_v31  ;;  %1802 = vst.msk [vmem:[%s2623_s7 + $0x18] sm:$0xff] %vm1798_vm3, %v1673_v38  ;;  %vm1415_vm10 = vcmp.gt.f32.partialorder %v907_v34, 0.0  ;;  %v1543_v42 = vmul.f32 0.2, %v907_v34  ;;  %vm1479_vm11 = vcmp.gt.f32.partialorder %v1163_v35, 0.0  ;;  %v919_v44 = vpop.f32.mrf.mxu0  ;;  %v1175_v45 = vpop.f32.mrf.mxu1 }
  0xef   : > { %1866 = vst.msk [vmem:[%s2623_s7 + $0x218] sm:$0xff] %vm1798_vm3, %v1737_v39  ;;  %v1607_v43 = vmul.f32 0.2, %v1163_v35  ;;  %vm1420_vm12 = vcmp.gt.f32.partialorder %v928_v40, 0.0  ;;  %v1548_v46 = vmul.f32 0.2, %v928_v40  ;;  %v920_v50 = vadd.f32 %v2615_v9, %v919_v44 }
  0xf0   : > { %vm1484_vm13 = vcmp.gt.f32.partialorder %v1184_v41, 0.0  ;;  %v1612_v47 = vmul.f32 0.2, %v1184_v41  ;;  %v1671_v48 = vsel %vm1415_vm10, %v907_v34, %v1543_v42  ;;  %v1176_v51 = vadd.f32 %v2615_v9, %v1175_v45  ;;  %v2214_v52 = vpop.f32.mrf.mxu0  ;;  %v2278_v53 = vpop.f32.mrf.mxu1 }
  0xf1   : > { %v1735_v49 = vsel %vm1479_vm11, %v1163_v35, %v1607_v43  ;;  %1800 = vst.msk [vmem:[%s2623_s7 + $0x8] sm:$0xff] %vm1798_vm3, %v1671_v48  ;;  %v1676_v54 = vsel %vm1420_vm12, %v928_v40, %v1548_v46  ;;  %v931_v56 = vadd.f32 %v2214_v52, %v2615_v9  ;;  %v1187_v57 = vadd.f32 %v2278_v53, %v2615_v9 }
  0xf2   : > { %1864 = vst.msk [vmem:[%s2623_s7 + $0x208] sm:$0xff] %vm1798_vm3, %v1735_v49  ;;  %v1740_v55 = vsel %vm1484_vm13, %v1184_v41, %v1612_v47  ;;  %1805 = vst.msk [vmem:[%s2623_s7 + $0x30] sm:$0xff] %vm1798_vm3, %v1676_v54  ;;  %vm1418_vm14 = vcmp.gt.f32.partialorder %v920_v50, 0.0  ;;  %v1546_v58 = vmul.f32 0.2, %v920_v50  ;;  %vm1482_vm15 = vcmp.gt.f32.partialorder %v1176_v51, 0.0  ;;  %v922_v60 = vpop.f32.mrf.mxu0  ;;  %v1178_v61 = vpop.f32.mrf.mxu1 }
  0xf3   : > { %1869 = vst.msk [vmem:[%s2623_s7 + $0x230] sm:$0xff] %vm1798_vm3, %v1740_v55  ;;  %v1610_v59 = vmul.f32 0.2, %v1176_v51  ;;  %vm1421_vm0 = vcmp.gt.f32.partialorder %v931_v56, 0.0  ;;  %v1549_v62 = vmul.f32 0.2, %v931_v56  ;;  %v923_v2 = vadd.f32 %v2615_v9, %v922_v60 }
  0xf4   : > { %vm1485_vm1 = vcmp.gt.f32.partialorder %v1187_v57, 0.0  ;;  %v1613_v63 = vmul.f32 0.2, %v1187_v57  ;;  %v1674_v0 = vsel %vm1418_vm14, %v920_v50, %v1546_v58  ;;  %v1179_v3 = vadd.f32 %v2615_v9, %v1178_v61  ;;  %v2217_v4 = vpop.f32.mrf.mxu0  ;;  %v2281_v5 = vpop.f32.mrf.mxu1 }
  0xf5   : > { %v1738_v1 = vsel %vm1482_vm15, %v1176_v51, %v1610_v59  ;;  %1803 = vst.msk [vmem:[%s2623_s7 + $0x20] sm:$0xff] %vm1798_vm3, %v1674_v0  ;;  %v1677_v6 = vsel %vm1421_vm0, %v931_v56, %v1549_v62  ;;  %v944_v8 = vadd.f32 %v2217_v4, %v2615_v9  ;;  %v1200_v10 = vadd.f32 %v2281_v5, %v2615_v9 }
  0xf6   : > { %1867 = vst.msk [vmem:[%s2623_s7 + $0x220] sm:$0xff] %vm1798_vm3, %v1738_v1  ;;  %v1741_v7 = vsel %vm1485_vm1, %v1187_v57, %v1613_v63  ;;  %1806 = vst.msk [vmem:[%s2623_s7 + $0x38] sm:$0xff] %vm1798_vm3, %v1677_v6  ;;  %vm1419_vm2 = vcmp.gt.f32.partialorder %v923_v2, 0.0  ;;  %v1547_v11 = vmul.f32 0.2, %v923_v2  ;;  %vm1483_vm4 = vcmp.gt.f32.partialorder %v1179_v3, 0.0  ;;  %v935_v13 = vpop.f32.mrf.mxu0  ;;  %v1191_v14 = vpop.f32.mrf.mxu1 }
  0xf7   : > { %1870 = vst.msk [vmem:[%s2623_s7 + $0x238] sm:$0xff] %vm1798_vm3, %v1741_v7  ;;  %v1611_v12 = vmul.f32 0.2, %v1179_v3  ;;  %vm1424_vm5 = vcmp.gt.f32.partialorder %v944_v8, 0.0  ;;  %v1552_v15 = vmul.f32 0.2, %v944_v8  ;;  %v936_v19 = vadd.f32 %v2615_v9, %v935_v13 }
  0xf8   : > { %vm1488_vm6 = vcmp.gt.f32.partialorder %v1200_v10, 0.0  ;;  %v1616_v16 = vmul.f32 0.2, %v1200_v10  ;;  %v1675_v17 = vsel %vm1419_vm2, %v923_v2, %v1547_v11  ;;  %v1192_v20 = vadd.f32 %v2615_v9, %v1191_v14  ;;  %v2218_v21 = vpop.f32.mrf.mxu0  ;;  %v2282_v22 = vpop.f32.mrf.mxu1 }
  0xf9   : > { %v1739_v18 = vsel %vm1483_vm4, %v1179_v3, %v1611_v12  ;;  %1804 = vst.msk [vmem:[%s2623_s7 + $0x28] sm:$0xff] %vm1798_vm3, %v1675_v17  ;;  %v1680_v23 = vsel %vm1424_vm5, %v944_v8, %v1552_v15  ;;  %v947_v25 = vadd.f32 %v2218_v21, %v2615_v9  ;;  %v1203_v26 = vadd.f32 %v2282_v22, %v2615_v9 }
  0xfa   : > { %1868 = vst.msk [vmem:[%s2623_s7 + $0x228] sm:$0xff] %vm1798_vm3, %v1739_v18  ;;  %v1744_v24 = vsel %vm1488_vm6, %v1200_v10, %v1616_v16  ;;  %1809 = vst.msk [vmem:[%s2623_s7 + $0x50] sm:$0xff] %vm1798_vm3, %v1680_v23  ;;  %vm1422_vm7 = vcmp.gt.f32.partialorder %v936_v19, 0.0  ;;  %v1550_v27 = vmul.f32 0.2, %v936_v19  ;;  %vm1486_vm8 = vcmp.gt.f32.partialorder %v1192_v20, 0.0  ;;  %v938_v29 = vpop.f32.mrf.mxu0  ;;  %v1194_v30 = vpop.f32.mrf.mxu1 }
  0xfb   : > { %1873 = vst.msk [vmem:[%s2623_s7 + $0x250] sm:$0xff] %vm1798_vm3, %v1744_v24  ;;  %v1614_v28 = vmul.f32 0.2, %v1192_v20  ;;  %vm1425_vm9 = vcmp.gt.f32.partialorder %v947_v25, 0.0  ;;  %v1553_v31 = vmul.f32 0.2, %v947_v25  ;;  %v939_v35 = vadd.f32 %v2615_v9, %v938_v29 }
  0xfc   : > { %vm1489_vm10 = vcmp.gt.f32.partialorder %v1203_v26, 0.0  ;;  %v1617_v32 = vmul.f32 0.2, %v1203_v26  ;;  %v1678_v33 = vsel %vm1422_vm7, %v936_v19, %v1550_v27  ;;  %v1195_v36 = vadd.f32 %v2615_v9, %v1194_v30  ;;  %v2221_v37 = vpop.f32.mrf.mxu0  ;;  %v2285_v38 = vpop.f32.mrf.mxu1 }
  0xfd   : > { %v1742_v34 = vsel %vm1486_vm8, %v1192_v20, %v1614_v28  ;;  %1807 = vst.msk [vmem:[%s2623_s7 + $0x40] sm:$0xff] %vm1798_vm3, %v1678_v33  ;;  %v1681_v39 = vsel %vm1425_vm9, %v947_v25, %v1553_v31  ;;  %v960_v41 = vadd.f32 %v2221_v37, %v2615_v9  ;;  %v1216_v42 = vadd.f32 %v2285_v38, %v2615_v9 }
  0xfe   : > { %1871 = vst.msk [vmem:[%s2623_s7 + $0x240] sm:$0xff] %vm1798_vm3, %v1742_v34  ;;  %v1745_v40 = vsel %vm1489_vm10, %v1203_v26, %v1617_v32  ;;  %1810 = vst.msk [vmem:[%s2623_s7 + $0x58] sm:$0xff] %vm1798_vm3, %v1681_v39  ;;  %vm1423_vm11 = vcmp.gt.f32.partialorder %v939_v35, 0.0  ;;  %v1551_v43 = vmul.f32 0.2, %v939_v35  ;;  %vm1487_vm12 = vcmp.gt.f32.partialorder %v1195_v36, 0.0  ;;  %v951_v45 = vpop.f32.mrf.mxu0  ;;  %v1207_v46 = vpop.f32.mrf.mxu1 }
  0xff   : > { %1874 = vst.msk [vmem:[%s2623_s7 + $0x258] sm:$0xff] %vm1798_vm3, %v1745_v40  ;;  %v1615_v44 = vmul.f32 0.2, %v1195_v36  ;;  %vm1428_vm13 = vcmp.gt.f32.partialorder %v960_v41, 0.0  ;;  %v1556_v47 = vmul.f32 0.2, %v960_v41  ;;  %v952_v51 = vadd.f32 %v2615_v9, %v951_v45 }
 0x100   : > { %vm1492_vm14 = vcmp.gt.f32.partialorder %v1216_v42, 0.0  ;;  %v1620_v48 = vmul.f32 0.2, %v1216_v42  ;;  %v1679_v49 = vsel %vm1423_vm11, %v939_v35, %v1551_v43  ;;  %v1208_v52 = vadd.f32 %v2615_v9, %v1207_v46  ;;  %v2222_v53 = vpop.f32.mrf.mxu0  ;;  %v2286_v54 = vpop.f32.mrf.mxu1 }
 0x101   : > { %v1743_v50 = vsel %vm1487_vm12, %v1195_v36, %v1615_v44  ;;  %1808 = vst.msk [vmem:[%s2623_s7 + $0x48] sm:$0xff] %vm1798_vm3, %v1679_v49  ;;  %v1684_v55 = vsel %vm1428_vm13, %v960_v41, %v1556_v47  ;;  %v963_v57 = vadd.f32 %v2222_v53, %v2615_v9  ;;  %v1219_v58 = vadd.f32 %v2286_v54, %v2615_v9 }
 0x102   : > { %1872 = vst.msk [vmem:[%s2623_s7 + $0x248] sm:$0xff] %vm1798_vm3, %v1743_v50  ;;  %v1748_v56 = vsel %vm1492_vm14, %v1216_v42, %v1620_v48  ;;  %1813 = vst.msk [vmem:[%s2623_s7 + $0x70] sm:$0xff] %vm1798_vm3, %v1684_v55  ;;  %vm1426_vm15 = vcmp.gt.f32.partialorder %v952_v51, 0.0  ;;  %v1554_v59 = vmul.f32 0.2, %v952_v51  ;;  %vm1490_vm0 = vcmp.gt.f32.partialorder %v1208_v52, 0.0  ;;  %v954_v61 = vpop.f32.mrf.mxu0  ;;  %v1210_v62 = vpop.f32.mrf.mxu1 }
 0x103   : > { %1877 = vst.msk [vmem:[%s2623_s7 + $0x270] sm:$0xff] %vm1798_vm3, %v1748_v56  ;;  %v1618_v60 = vmul.f32 0.2, %v1208_v52  ;;  %vm1429_vm1 = vcmp.gt.f32.partialorder %v963_v57, 0.0  ;;  %v1557_v63 = vmul.f32 0.2, %v963_v57  ;;  %v955_v3 = vadd.f32 %v2615_v9, %v954_v61 }
 0x104   : > { %vm1493_vm2 = vcmp.gt.f32.partialorder %v1219_v58, 0.0  ;;  %v1621_v0 = vmul.f32 0.2, %v1219_v58  ;;  %v1682_v1 = vsel %vm1426_vm15, %v952_v51, %v1554_v59  ;;  %v1211_v4 = vadd.f32 %v2615_v9, %v1210_v62  ;;  %v2225_v5 = vpop.f32.mrf.mxu0  ;;  %v2289_v6 = vpop.f32.mrf.mxu1 }
 0x105   : > { %v1746_v2 = vsel %vm1490_vm0, %v1208_v52, %v1618_v60  ;;  %1811 = vst.msk [vmem:[%s2623_s7 + $0x60] sm:$0xff] %vm1798_vm3, %v1682_v1  ;;  %v1685_v7 = vsel %vm1429_vm1, %v963_v57, %v1557_v63  ;;  %v976_v10 = vadd.f32 %v2225_v5, %v2615_v9  ;;  %v1232_v11 = vadd.f32 %v2289_v6, %v2615_v9 }
 0x106   : > { %1875 = vst.msk [vmem:[%s2623_s7 + $0x260] sm:$0xff] %vm1798_vm3, %v1746_v2  ;;  %v1749_v8 = vsel %vm1493_vm2, %v1219_v58, %v1621_v0  ;;  %1814 = vst.msk [vmem:[%s2623_s7 + $0x78] sm:$0xff] %vm1798_vm3, %v1685_v7  ;;  %vm1427_vm4 = vcmp.gt.f32.partialorder %v955_v3, 0.0  ;;  %v1555_v12 = vmul.f32 0.2, %v955_v3  ;;  %vm1491_vm5 = vcmp.gt.f32.partialorder %v1211_v4, 0.0  ;;  %v967_v14 = vpop.f32.mrf.mxu0  ;;  %v1223_v15 = vpop.f32.mrf.mxu1 }
 0x107   : > { %1878 = vst.msk [vmem:[%s2623_s7 + $0x278] sm:$0xff] %vm1798_vm3, %v1749_v8  ;;  %v1619_v13 = vmul.f32 0.2, %v1211_v4  ;;  %vm1432_vm6 = vcmp.gt.f32.partialorder %v976_v10, 0.0  ;;  %v1560_v16 = vmul.f32 0.2, %v976_v10  ;;  %v968_v20 = vadd.f32 %v2615_v9, %v967_v14 }
 0x108   : > { %vm1496_vm7 = vcmp.gt.f32.partialorder %v1232_v11, 0.0  ;;  %v1624_v17 = vmul.f32 0.2, %v1232_v11  ;;  %v1683_v18 = vsel %vm1427_vm4, %v955_v3, %v1555_v12  ;;  %v1224_v21 = vadd.f32 %v2615_v9, %v1223_v15  ;;  %v2226_v22 = vpop.f32.mrf.mxu0  ;;  %v2290_v23 = vpop.f32.mrf.mxu1 }
 0x109   : > { %v1747_v19 = vsel %vm1491_vm5, %v1211_v4, %v1619_v13  ;;  %1812 = vst.msk [vmem:[%s2623_s7 + $0x68] sm:$0xff] %vm1798_vm3, %v1683_v18  ;;  %v1688_v24 = vsel %vm1432_vm6, %v976_v10, %v1560_v16  ;;  %v979_v26 = vadd.f32 %v2226_v22, %v2615_v9  ;;  %v1235_v27 = vadd.f32 %v2290_v23, %v2615_v9 }
 0x10a   : > { %1876 = vst.msk [vmem:[%s2623_s7 + $0x268] sm:$0xff] %vm1798_vm3, %v1747_v19  ;;  %v1752_v25 = vsel %vm1496_vm7, %v1232_v11, %v1624_v17  ;;  %1817 = vst.msk [vmem:[%s2623_s7 + $0x90] sm:$0xff] %vm1798_vm3, %v1688_v24  ;;  %vm1430_vm8 = vcmp.gt.f32.partialorder %v968_v20, 0.0  ;;  %v1558_v28 = vmul.f32 0.2, %v968_v20  ;;  %vm1494_vm9 = vcmp.gt.f32.partialorder %v1224_v21, 0.0  ;;  %v970_v30 = vpop.f32.mrf.mxu0  ;;  %v1226_v31 = vpop.f32.mrf.mxu1 }
 0x10b   : > { %1881 = vst.msk [vmem:[%s2623_s7 + $0x290] sm:$0xff] %vm1798_vm3, %v1752_v25  ;;  %v1622_v29 = vmul.f32 0.2, %v1224_v21  ;;  %vm1433_vm10 = vcmp.gt.f32.partialorder %v979_v26, 0.0  ;;  %v1561_v32 = vmul.f32 0.2, %v979_v26  ;;  %v971_v36 = vadd.f32 %v2615_v9, %v970_v30 }
 0x10c   : > { %vm1497_vm11 = vcmp.gt.f32.partialorder %v1235_v27, 0.0  ;;  %v1625_v33 = vmul.f32 0.2, %v1235_v27  ;;  %v1686_v34 = vsel %vm1430_vm8, %v968_v20, %v1558_v28  ;;  %v1227_v37 = vadd.f32 %v2615_v9, %v1226_v31  ;;  %v2229_v38 = vpop.f32.mrf.mxu0  ;;  %v2293_v39 = vpop.f32.mrf.mxu1 }
 0x10d   : > { %v1750_v35 = vsel %vm1494_vm9, %v1224_v21, %v1622_v29  ;;  %1815 = vst.msk [vmem:[%s2623_s7 + $0x80] sm:$0xff] %vm1798_vm3, %v1686_v34  ;;  %v1689_v40 = vsel %vm1433_vm10, %v979_v26, %v1561_v32  ;;  %v992_v42 = vadd.f32 %v2229_v38, %v2615_v9  ;;  %v1248_v43 = vadd.f32 %v2293_v39, %v2615_v9 }
 0x10e   : > { %1879 = vst.msk [vmem:[%s2623_s7 + $0x280] sm:$0xff] %vm1798_vm3, %v1750_v35  ;;  %v1753_v41 = vsel %vm1497_vm11, %v1235_v27, %v1625_v33  ;;  %1818 = vst.msk [vmem:[%s2623_s7 + $0x98] sm:$0xff] %vm1798_vm3, %v1689_v40  ;;  %vm1431_vm12 = vcmp.gt.f32.partialorder %v971_v36, 0.0  ;;  %v1559_v44 = vmul.f32 0.2, %v971_v36  ;;  %vm1495_vm13 = vcmp.gt.f32.partialorder %v1227_v37, 0.0  ;;  %v983_v46 = vpop.f32.mrf.mxu0  ;;  %v1239_v47 = vpop.f32.mrf.mxu1 }
 0x10f   : > { %1882 = vst.msk [vmem:[%s2623_s7 + $0x298] sm:$0xff] %vm1798_vm3, %v1753_v41  ;;  %v1623_v45 = vmul.f32 0.2, %v1227_v37  ;;  %vm1436_vm14 = vcmp.gt.f32.partialorder %v992_v42, 0.0  ;;  %v1564_v48 = vmul.f32 0.2, %v992_v42  ;;  %v984_v52 = vadd.f32 %v2615_v9, %v983_v46 }
 0x110   : > { %vm1500_vm15 = vcmp.gt.f32.partialorder %v1248_v43, 0.0  ;;  %v1628_v49 = vmul.f32 0.2, %v1248_v43  ;;  %v1687_v50 = vsel %vm1431_vm12, %v971_v36, %v1559_v44  ;;  %v1240_v53 = vadd.f32 %v2615_v9, %v1239_v47  ;;  %v2230_v54 = vpop.f32.mrf.mxu0  ;;  %v2294_v55 = vpop.f32.mrf.mxu1 }
 0x111   : > { %v1751_v51 = vsel %vm1495_vm13, %v1227_v37, %v1623_v45  ;;  %1816 = vst.msk [vmem:[%s2623_s7 + $0x88] sm:$0xff] %vm1798_vm3, %v1687_v50  ;;  %v1692_v56 = vsel %vm1436_vm14, %v992_v42, %v1564_v48  ;;  %v995_v58 = vadd.f32 %v2230_v54, %v2615_v9  ;;  %v1251_v59 = vadd.f32 %v2294_v55, %v2615_v9 }
 0x112   : > { %1880 = vst.msk [vmem:[%s2623_s7 + $0x288] sm:$0xff] %vm1798_vm3, %v1751_v51  ;;  %v1756_v57 = vsel %vm1500_vm15, %v1248_v43, %v1628_v49  ;;  %1821 = vst.msk [vmem:[%s2623_s7 + $0xb0] sm:$0xff] %vm1798_vm3, %v1692_v56  ;;  %vm1434_vm0 = vcmp.gt.f32.partialorder %v984_v52, 0.0  ;;  %v1562_v60 = vmul.f32 0.2, %v984_v52  ;;  %vm1498_vm1 = vcmp.gt.f32.partialorder %v1240_v53, 0.0  ;;  %v986_v62 = vpop.f32.mrf.mxu0  ;;  %v1242_v63 = vpop.f32.mrf.mxu1 }
 0x113   : > { %1885 = vst.msk [vmem:[%s2623_s7 + $0x2b0] sm:$0xff] %vm1798_vm3, %v1756_v57  ;;  %v1626_v61 = vmul.f32 0.2, %v1240_v53  ;;  %vm1437_vm2 = vcmp.gt.f32.partialorder %v995_v58, 0.0  ;;  %v1565_v0 = vmul.f32 0.2, %v995_v58  ;;  %v987_v4 = vadd.f32 %v2615_v9, %v986_v62 }
 0x114   : > { %vm1501_vm4 = vcmp.gt.f32.partialorder %v1251_v59, 0.0  ;;  %v1629_v1 = vmul.f32 0.2, %v1251_v59  ;;  %v1690_v2 = vsel %vm1434_vm0, %v984_v52, %v1562_v60  ;;  %v1243_v5 = vadd.f32 %v2615_v9, %v1242_v63  ;;  %v2233_v6 = vpop.f32.mrf.mxu0  ;;  %v2297_v7 = vpop.f32.mrf.mxu1 }
 0x115   : > { %v1754_v3 = vsel %vm1498_vm1, %v1240_v53, %v1626_v61  ;;  %1819 = vst.msk [vmem:[%s2623_s7 + $0xa0] sm:$0xff] %vm1798_vm3, %v1690_v2  ;;  %v1693_v8 = vsel %vm1437_vm2, %v995_v58, %v1565_v0  ;;  %v1008_v11 = vadd.f32 %v2233_v6, %v2615_v9  ;;  %v1264_v12 = vadd.f32 %v2297_v7, %v2615_v9 }
 0x116   : > { %1883 = vst.msk [vmem:[%s2623_s7 + $0x2a0] sm:$0xff] %vm1798_vm3, %v1754_v3  ;;  %v1757_v10 = vsel %vm1501_vm4, %v1251_v59, %v1629_v1  ;;  %1822 = vst.msk [vmem:[%s2623_s7 + $0xb8] sm:$0xff] %vm1798_vm3, %v1693_v8  ;;  %vm1435_vm5 = vcmp.gt.f32.partialorder %v987_v4, 0.0  ;;  %v1563_v13 = vmul.f32 0.2, %v987_v4  ;;  %vm1499_vm6 = vcmp.gt.f32.partialorder %v1243_v5, 0.0  ;;  %v999_v15 = vpop.f32.mrf.mxu0  ;;  %v1255_v16 = vpop.f32.mrf.mxu1 }
 0x117   : > { %1886 = vst.msk [vmem:[%s2623_s7 + $0x2b8] sm:$0xff] %vm1798_vm3, %v1757_v10  ;;  %v1627_v14 = vmul.f32 0.2, %v1243_v5  ;;  %vm1440_vm7 = vcmp.gt.f32.partialorder %v1008_v11, 0.0  ;;  %v1568_v17 = vmul.f32 0.2, %v1008_v11  ;;  %v1000_v21 = vadd.f32 %v2615_v9, %v999_v15 }
 0x118   : > { %vm1504_vm8 = vcmp.gt.f32.partialorder %v1264_v12, 0.0  ;;  %v1632_v18 = vmul.f32 0.2, %v1264_v12  ;;  %v1691_v19 = vsel %vm1435_vm5, %v987_v4, %v1563_v13  ;;  %v1256_v22 = vadd.f32 %v2615_v9, %v1255_v16  ;;  %v2234_v23 = vpop.f32.mrf.mxu0  ;;  %v2298_v24 = vpop.f32.mrf.mxu1 }
 0x119   : > { %v1755_v20 = vsel %vm1499_vm6, %v1243_v5, %v1627_v14  ;;  %1820 = vst.msk [vmem:[%s2623_s7 + $0xa8] sm:$0xff] %vm1798_vm3, %v1691_v19  ;;  %v1696_v25 = vsel %vm1440_vm7, %v1008_v11, %v1568_v17  ;;  %v1011_v27 = vadd.f32 %v2234_v23, %v2615_v9  ;;  %v1267_v28 = vadd.f32 %v2298_v24, %v2615_v9 }
 0x11a   : > { %1884 = vst.msk [vmem:[%s2623_s7 + $0x2a8] sm:$0xff] %vm1798_vm3, %v1755_v20  ;;  %v1760_v26 = vsel %vm1504_vm8, %v1264_v12, %v1632_v18  ;;  %1825 = vst.msk [vmem:[%s2623_s7 + $0xd0] sm:$0xff] %vm1798_vm3, %v1696_v25  ;;  %vm1438_vm9 = vcmp.gt.f32.partialorder %v1000_v21, 0.0  ;;  %v1566_v29 = vmul.f32 0.2, %v1000_v21  ;;  %vm1502_vm10 = vcmp.gt.f32.partialorder %v1256_v22, 0.0  ;;  %v1002_v31 = vpop.f32.mrf.mxu0  ;;  %v1258_v32 = vpop.f32.mrf.mxu1 }
 0x11b   : > { %1889 = vst.msk [vmem:[%s2623_s7 + $0x2d0] sm:$0xff] %vm1798_vm3, %v1760_v26  ;;  %v1630_v30 = vmul.f32 0.2, %v1256_v22  ;;  %vm1441_vm11 = vcmp.gt.f32.partialorder %v1011_v27, 0.0  ;;  %v1569_v33 = vmul.f32 0.2, %v1011_v27  ;;  %v1003_v37 = vadd.f32 %v2615_v9, %v1002_v31 }
 0x11c   : > { %vm1505_vm12 = vcmp.gt.f32.partialorder %v1267_v28, 0.0  ;;  %v1633_v34 = vmul.f32 0.2, %v1267_v28  ;;  %v1694_v35 = vsel %vm1438_vm9, %v1000_v21, %v1566_v29  ;;  %v1259_v38 = vadd.f32 %v2615_v9, %v1258_v32  ;;  %v2237_v39 = vpop.f32.mrf.mxu0  ;;  %v2301_v40 = vpop.f32.mrf.mxu1 }
 0x11d   : > { %v1758_v36 = vsel %vm1502_vm10, %v1256_v22, %v1630_v30  ;;  %1823 = vst.msk [vmem:[%s2623_s7 + $0xc0] sm:$0xff] %vm1798_vm3, %v1694_v35  ;;  %v1697_v41 = vsel %vm1441_vm11, %v1011_v27, %v1569_v33  ;;  %v1024_v43 = vadd.f32 %v2237_v39, %v2615_v9  ;;  %v1280_v44 = vadd.f32 %v2301_v40, %v2615_v9 }
 0x11e   : > { %1887 = vst.msk [vmem:[%s2623_s7 + $0x2c0] sm:$0xff] %vm1798_vm3, %v1758_v36  ;;  %v1761_v42 = vsel %vm1505_vm12, %v1267_v28, %v1633_v34  ;;  %1826 = vst.msk [vmem:[%s2623_s7 + $0xd8] sm:$0xff] %vm1798_vm3, %v1697_v41  ;;  %vm1439_vm13 = vcmp.gt.f32.partialorder %v1003_v37, 0.0  ;;  %v1567_v45 = vmul.f32 0.2, %v1003_v37  ;;  %vm1503_vm14 = vcmp.gt.f32.partialorder %v1259_v38, 0.0  ;;  %v1015_v47 = vpop.f32.mrf.mxu0  ;;  %v1271_v48 = vpop.f32.mrf.mxu1 }
 0x11f   : > { %1890 = vst.msk [vmem:[%s2623_s7 + $0x2d8] sm:$0xff] %vm1798_vm3, %v1761_v42  ;;  %v1631_v46 = vmul.f32 0.2, %v1259_v38  ;;  %vm1444_vm15 = vcmp.gt.f32.partialorder %v1024_v43, 0.0  ;;  %v1572_v49 = vmul.f32 0.2, %v1024_v43  ;;  %v1016_v53 = vadd.f32 %v2615_v9, %v1015_v47 }
 0x120   : > { %vm1508_vm0 = vcmp.gt.f32.partialorder %v1280_v44, 0.0  ;;  %v1636_v50 = vmul.f32 0.2, %v1280_v44  ;;  %v1695_v51 = vsel %vm1439_vm13, %v1003_v37, %v1567_v45  ;;  %v1272_v54 = vadd.f32 %v2615_v9, %v1271_v48  ;;  %v2238_v55 = vpop.f32.mrf.mxu0  ;;  %v2302_v56 = vpop.f32.mrf.mxu1 }
 0x121   : > { %v1759_v52 = vsel %vm1503_vm14, %v1259_v38, %v1631_v46  ;;  %1824 = vst.msk [vmem:[%s2623_s7 + $0xc8] sm:$0xff] %vm1798_vm3, %v1695_v51  ;;  %v1700_v57 = vsel %vm1444_vm15, %v1024_v43, %v1572_v49  ;;  %v1027_v59 = vadd.f32 %v2238_v55, %v2615_v9  ;;  %v1283_v60 = vadd.f32 %v2302_v56, %v2615_v9 }
 0x122   : > { %1888 = vst.msk [vmem:[%s2623_s7 + $0x2c8] sm:$0xff] %vm1798_vm3, %v1759_v52  ;;  %v1764_v58 = vsel %vm1508_vm0, %v1280_v44, %v1636_v50  ;;  %1829 = vst.msk [vmem:[%s2623_s7 + $0xf0] sm:$0xff] %vm1798_vm3, %v1700_v57  ;;  %vm1442_vm1 = vcmp.gt.f32.partialorder %v1016_v53, 0.0  ;;  %v1570_v61 = vmul.f32 0.2, %v1016_v53  ;;  %vm1506_vm2 = vcmp.gt.f32.partialorder %v1272_v54, 0.0  ;;  %v1018_v63 = vpop.f32.mrf.mxu0  ;;  %v1274_v0 = vpop.f32.mrf.mxu1 }
 0x123   : > { %1893 = vst.msk [vmem:[%s2623_s7 + $0x2f0] sm:$0xff] %vm1798_vm3, %v1764_v58  ;;  %v1634_v62 = vmul.f32 0.2, %v1272_v54  ;;  %vm1445_vm4 = vcmp.gt.f32.partialorder %v1027_v59, 0.0  ;;  %v1573_v1 = vmul.f32 0.2, %v1027_v59  ;;  %v1019_v5 = vadd.f32 %v2615_v9, %v1018_v63 }
 0x124   : > { %vm1509_vm5 = vcmp.gt.f32.partialorder %v1283_v60, 0.0  ;;  %v1637_v2 = vmul.f32 0.2, %v1283_v60  ;;  %v1698_v3 = vsel %vm1442_vm1, %v1016_v53, %v1570_v61  ;;  %v1275_v6 = vadd.f32 %v2615_v9, %v1274_v0  ;;  %v2241_v7 = vpop.f32.mrf.mxu0  ;;  %v2305_v8 = vpop.f32.mrf.mxu1 }
 0x125   : > { %v1762_v4 = vsel %vm1506_vm2, %v1272_v54, %v1634_v62  ;;  %1827 = vst.msk [vmem:[%s2623_s7 + $0xe0] sm:$0xff] %vm1798_vm3, %v1698_v3  ;;  %v1701_v10 = vsel %vm1445_vm4, %v1027_v59, %v1573_v1  ;;  %v1040_v12 = vadd.f32 %v2241_v7, %v2615_v9  ;;  %v1296_v13 = vadd.f32 %v2305_v8, %v2615_v9 }
 0x126   : > { %1891 = vst.msk [vmem:[%s2623_s7 + $0x2e0] sm:$0xff] %vm1798_vm3, %v1762_v4  ;;  %v1765_v11 = vsel %vm1509_vm5, %v1283_v60, %v1637_v2  ;;  %1830 = vst.msk [vmem:[%s2623_s7 + $0xf8] sm:$0xff] %vm1798_vm3, %v1701_v10  ;;  %vm1443_vm6 = vcmp.gt.f32.partialorder %v1019_v5, 0.0  ;;  %v1571_v14 = vmul.f32 0.2, %v1019_v5  ;;  %vm1507_vm7 = vcmp.gt.f32.partialorder %v1275_v6, 0.0  ;;  %v1031_v16 = vpop.f32.mrf.mxu0  ;;  %v1287_v17 = vpop.f32.mrf.mxu1 }
 0x127   : > { %1894 = vst.msk [vmem:[%s2623_s7 + $0x2f8] sm:$0xff] %vm1798_vm3, %v1765_v11  ;;  %v1635_v15 = vmul.f32 0.2, %v1275_v6  ;;  %vm1448_vm8 = vcmp.gt.f32.partialorder %v1040_v12, 0.0  ;;  %v1576_v18 = vmul.f32 0.2, %v1040_v12  ;;  %v1032_v22 = vadd.f32 %v2615_v9, %v1031_v16 }
 0x128   : > { %vm1512_vm9 = vcmp.gt.f32.partialorder %v1296_v13, 0.0  ;;  %v1640_v19 = vmul.f32 0.2, %v1296_v13  ;;  %v1699_v20 = vsel %vm1443_vm6, %v1019_v5, %v1571_v14  ;;  %v1288_v23 = vadd.f32 %v2615_v9, %v1287_v17  ;;  %v2242_v24 = vpop.f32.mrf.mxu0  ;;  %v2306_v25 = vpop.f32.mrf.mxu1 }
 0x129   : > { %v1763_v21 = vsel %vm1507_vm7, %v1275_v6, %v1635_v15  ;;  %1828 = vst.msk [vmem:[%s2623_s7 + $0xe8] sm:$0xff] %vm1798_vm3, %v1699_v20  ;;  %v1704_v26 = vsel %vm1448_vm8, %v1040_v12, %v1576_v18  ;;  %v1043_v28 = vadd.f32 %v2242_v24, %v2615_v9  ;;  %v1299_v29 = vadd.f32 %v2306_v25, %v2615_v9 }
 0x12a   : > { %1892 = vst.msk [vmem:[%s2623_s7 + $0x2e8] sm:$0xff] %vm1798_vm3, %v1763_v21  ;;  %v1768_v27 = vsel %vm1512_vm9, %v1296_v13, %v1640_v19  ;;  %1833 = vst.msk [vmem:[%s2623_s7 + $0x110] sm:$0xff] %vm1798_vm3, %v1704_v26  ;;  %vm1446_vm10 = vcmp.gt.f32.partialorder %v1032_v22, 0.0  ;;  %v1574_v30 = vmul.f32 0.2, %v1032_v22  ;;  %vm1510_vm11 = vcmp.gt.f32.partialorder %v1288_v23, 0.0  ;;  %v1034_v32 = vpop.f32.mrf.mxu0  ;;  %v1290_v33 = vpop.f32.mrf.mxu1 }
 0x12b   : > { %1897 = vst.msk [vmem:[%s2623_s7 + $0x310] sm:$0xff] %vm1798_vm3, %v1768_v27  ;;  %v1638_v31 = vmul.f32 0.2, %v1288_v23  ;;  %vm1449_vm12 = vcmp.gt.f32.partialorder %v1043_v28, 0.0  ;;  %v1577_v34 = vmul.f32 0.2, %v1043_v28  ;;  %v1035_v38 = vadd.f32 %v2615_v9, %v1034_v32 }
 0x12c   : > { %vm1513_vm13 = vcmp.gt.f32.partialorder %v1299_v29, 0.0  ;;  %v1641_v35 = vmul.f32 0.2, %v1299_v29  ;;  %v1702_v36 = vsel %vm1446_vm10, %v1032_v22, %v1574_v30  ;;  %v1291_v39 = vadd.f32 %v2615_v9, %v1290_v33  ;;  %v2245_v40 = vpop.f32.mrf.mxu0  ;;  %v2309_v41 = vpop.f32.mrf.mxu1 }
 0x12d   : > { %v1766_v37 = vsel %vm1510_vm11, %v1288_v23, %v1638_v31  ;;  %1831 = vst.msk [vmem:[%s2623_s7 + $0x100] sm:$0xff] %vm1798_vm3, %v1702_v36  ;;  %v1705_v42 = vsel %vm1449_vm12, %v1043_v28, %v1577_v34  ;;  %v1056_v44 = vadd.f32 %v2245_v40, %v2615_v9  ;;  %v1312_v45 = vadd.f32 %v2309_v41, %v2615_v9 }
 0x12e   : > { %1895 = vst.msk [vmem:[%s2623_s7 + $0x300] sm:$0xff] %vm1798_vm3, %v1766_v37  ;;  %v1769_v43 = vsel %vm1513_vm13, %v1299_v29, %v1641_v35  ;;  %1834 = vst.msk [vmem:[%s2623_s7 + $0x118] sm:$0xff] %vm1798_vm3, %v1705_v42  ;;  %vm1447_vm14 = vcmp.gt.f32.partialorder %v1035_v38, 0.0  ;;  %v1575_v46 = vmul.f32 0.2, %v1035_v38  ;;  %vm1511_vm15 = vcmp.gt.f32.partialorder %v1291_v39, 0.0  ;;  %v1047_v48 = vpop.f32.mrf.mxu0  ;;  %v1303_v49 = vpop.f32.mrf.mxu1 }
 0x12f   : > { %1898 = vst.msk [vmem:[%s2623_s7 + $0x318] sm:$0xff] %vm1798_vm3, %v1769_v43  ;;  %v1639_v47 = vmul.f32 0.2, %v1291_v39  ;;  %vm1452_vm0 = vcmp.gt.f32.partialorder %v1056_v44, 0.0  ;;  %v1580_v50 = vmul.f32 0.2, %v1056_v44  ;;  %v1048_v54 = vadd.f32 %v2615_v9, %v1047_v48 }
 0x130   : > { %vm1516_vm1 = vcmp.gt.f32.partialorder %v1312_v45, 0.0  ;;  %v1644_v51 = vmul.f32 0.2, %v1312_v45  ;;  %v1703_v52 = vsel %vm1447_vm14, %v1035_v38, %v1575_v46  ;;  %v1304_v55 = vadd.f32 %v2615_v9, %v1303_v49  ;;  %v2246_v56 = vpop.f32.mrf.mxu0  ;;  %v2310_v57 = vpop.f32.mrf.mxu1  ;;  %v2876_v38 = vld [vmem:[%s3017_s2] ss:$0 sm:$0xff] }
 0x131   : > { %v1767_v53 = vsel %vm1511_vm15, %v1291_v39, %v1639_v47  ;;  %1832 = vst.msk [vmem:[%s2623_s7 + $0x108] sm:$0xff] %vm1798_vm3, %v1703_v52  ;;  %v1708_v58 = vsel %vm1452_vm0, %v1056_v44, %v1580_v50  ;;  %v1059_v60 = vadd.f32 %v2246_v56, %v2615_v9  ;;  %v1315_v61 = vadd.f32 %v2310_v57, %v2615_v9 }
 0x132   : > { %1896 = vst.msk [vmem:[%s2623_s7 + $0x308] sm:$0xff] %vm1798_vm3, %v1767_v53  ;;  %v1772_v59 = vsel %vm1516_vm1, %v1312_v45, %v1644_v51  ;;  %1837 = vst.msk [vmem:[%s2623_s7 + $0x130] sm:$0xff] %vm1798_vm3, %v1708_v58  ;;  %vm1450_vm2 = vcmp.gt.f32.partialorder %v1048_v54, 0.0  ;;  %v1578_v62 = vmul.f32 0.2, %v1048_v54  ;;  %vm1514_vm4 = vcmp.gt.f32.partialorder %v1304_v55, 0.0  ;;  %v1050_v0 = vpop.f32.mrf.mxu0  ;;  %v1306_v1 = vpop.f32.mrf.mxu1 }
 0x133   : > { %1901 = vst.msk [vmem:[%s2623_s7 + $0x330] sm:$0xff] %vm1798_vm3, %v1772_v59  ;;  %v1642_v63 = vmul.f32 0.2, %v1304_v55  ;;  %vm1453_vm5 = vcmp.gt.f32.partialorder %v1059_v60, 0.0  ;;  %v1581_v2 = vmul.f32 0.2, %v1059_v60  ;;  %v1051_v6 = vadd.f32 %v2615_v9, %v1050_v0 }
 0x134   : > { %vm1517_vm6 = vcmp.gt.f32.partialorder %v1315_v61, 0.0  ;;  %v1645_v3 = vmul.f32 0.2, %v1315_v61  ;;  %v1706_v4 = vsel %vm1450_vm2, %v1048_v54, %v1578_v62  ;;  %v1307_v7 = vadd.f32 %v2615_v9, %v1306_v1  ;;  %v2249_v8 = vpop.f32.mrf.mxu0  ;;  %v2313_v10 = vpop.f32.mrf.mxu1 }
 0x135   : > { %v1770_v5 = vsel %vm1514_vm4, %v1304_v55, %v1642_v63  ;;  %1835 = vst.msk [vmem:[%s2623_s7 + $0x120] sm:$0xff] %vm1798_vm3, %v1706_v4  ;;  %v1709_v11 = vsel %vm1453_vm5, %v1059_v60, %v1581_v2  ;;  %v1072_v13 = vadd.f32 %v2249_v8, %v2615_v9  ;;  %v1328_v14 = vadd.f32 %v2313_v10, %v2615_v9 }
 0x136   : > { %1899 = vst.msk [vmem:[%s2623_s7 + $0x320] sm:$0xff] %vm1798_vm3, %v1770_v5  ;;  %v1773_v12 = vsel %vm1517_vm6, %v1315_v61, %v1645_v3  ;;  %1838 = vst.msk [vmem:[%s2623_s7 + $0x138] sm:$0xff] %vm1798_vm3, %v1709_v11  ;;  %vm1451_vm7 = vcmp.gt.f32.partialorder %v1051_v6, 0.0  ;;  %v1579_v15 = vmul.f32 0.2, %v1051_v6  ;;  %vm1515_vm8 = vcmp.gt.f32.partialorder %v1307_v7, 0.0  ;;  %v1063_v17 = vpop.f32.mrf.mxu0  ;;  %v1319_v18 = vpop.f32.mrf.mxu1 }
 0x137   : > { %1902 = vst.msk [vmem:[%s2623_s7 + $0x338] sm:$0xff] %vm1798_vm3, %v1773_v12  ;;  %v1643_v16 = vmul.f32 0.2, %v1307_v7  ;;  %vm1456_vm9 = vcmp.gt.f32.partialorder %v1072_v13, 0.0  ;;  %v1584_v19 = vmul.f32 0.2, %v1072_v13  ;;  %v1064_v23 = vadd.f32 %v2615_v9, %v1063_v17 }
 0x138   : > { %vm1520_vm10 = vcmp.gt.f32.partialorder %v1328_v14, 0.0  ;;  %v1648_v20 = vmul.f32 0.2, %v1328_v14  ;;  %v1707_v21 = vsel %vm1451_vm7, %v1051_v6, %v1579_v15  ;;  %v1320_v24 = vadd.f32 %v2615_v9, %v1319_v18  ;;  %v2250_v25 = vpop.f32.mrf.mxu0  ;;  %v2314_v26 = vpop.f32.mrf.mxu1 }
 0x139   : > { %v1771_v22 = vsel %vm1515_vm8, %v1307_v7, %v1643_v16  ;;  %1836 = vst.msk [vmem:[%s2623_s7 + $0x128] sm:$0xff] %vm1798_vm3, %v1707_v21  ;;  %v1712_v27 = vsel %vm1456_vm9, %v1072_v13, %v1584_v19  ;;  %v1075_v29 = vadd.f32 %v2250_v25, %v2615_v9  ;;  %v1331_v30 = vadd.f32 %v2314_v26, %v2615_v9 }
 0x13a   : > { %1900 = vst.msk [vmem:[%s2623_s7 + $0x328] sm:$0xff] %vm1798_vm3, %v1771_v22  ;;  %v1776_v28 = vsel %vm1520_vm10, %v1328_v14, %v1648_v20  ;;  %1841 = vst.msk [vmem:[%s2623_s7 + $0x150] sm:$0xff] %vm1798_vm3, %v1712_v27  ;;  %vm1454_vm11 = vcmp.gt.f32.partialorder %v1064_v23, 0.0  ;;  %v1582_v31 = vmul.f32 0.2, %v1064_v23  ;;  %vm1518_vm12 = vcmp.gt.f32.partialorder %v1320_v24, 0.0  ;;  %v1066_v33 = vpop.f32.mrf.mxu0  ;;  %v1322_v34 = vpop.f32.mrf.mxu1 }
 0x13b   : > { %1905 = vst.msk [vmem:[%s2623_s7 + $0x350] sm:$0xff] %vm1798_vm3, %v1776_v28  ;;  %v1646_v32 = vmul.f32 0.2, %v1320_v24  ;;  %vm1457_vm13 = vcmp.gt.f32.partialorder %v1075_v29, 0.0  ;;  %v1585_v35 = vmul.f32 0.2, %v1075_v29  ;;  %v1067_v39 = vadd.f32 %v2876_v38, %v1066_v33 }
 0x13c   : > { %vm1521_vm14 = vcmp.gt.f32.partialorder %v1331_v30, 0.0  ;;  %v1649_v36 = vmul.f32 0.2, %v1331_v30  ;;  %v1710_v37 = vsel %vm1454_vm11, %v1064_v23, %v1582_v31  ;;  %v1323_v40 = vadd.f32 %v2876_v38, %v1322_v34  ;;  %v2253_v41 = vpop.f32.mrf.mxu0  ;;  %v2317_v42 = vpop.f32.mrf.mxu1 }
 0x13d   : > { %v1774_v9 = vsel %vm1518_vm12, %v1320_v24, %v1646_v32  ;;  %1839 = vst.msk [vmem:[%s2623_s7 + $0x140] sm:$0xff] %vm1798_vm3, %v1710_v37  ;;  %v1713_v43 = vsel %vm1457_vm13, %v1075_v29, %v1585_v35  ;;  %v1088_v45 = vadd.f32 %v2876_v38, %v2253_v41  ;;  %v1344_v46 = vadd.f32 %v2876_v38, %v2317_v42 }
 0x13e   : > { %1903 = vst.msk [vmem:[%s2623_s7 + $0x340] sm:$0xff] %vm1798_vm3, %v1774_v9  ;;  %v1777_v44 = vsel %vm1521_vm14, %v1331_v30, %v1649_v36  ;;  %1842 = vst.msk [vmem:[%s2623_s7 + $0x158] sm:$0xff] %vm1798_vm3, %v1713_v43  ;;  %vm1455_vm15 = vcmp.gt.f32.partialorder %v1067_v39, 0.0  ;;  %v1583_v47 = vmul.f32 0.2, %v1067_v39  ;;  %vm1519_vm0 = vcmp.gt.f32.partialorder %v1323_v40, 0.0  ;;  %v1079_v49 = vpop.f32.mrf.mxu0  ;;  %v1335_v50 = vpop.f32.mrf.mxu1 }
 0x13f   : > { %1906 = vst.msk [vmem:[%s2623_s7 + $0x358] sm:$0xff] %vm1798_vm3, %v1777_v44  ;;  %v1647_v48 = vmul.f32 0.2, %v1323_v40  ;;  %vm1460_vm1 = vcmp.gt.f32.partialorder %v1088_v45, 0.0  ;;  %v1588_v51 = vmul.f32 0.2, %v1088_v45  ;;  %v1080_v55 = vadd.f32 %v2876_v38, %v1079_v49 }
 0x140   : > { %vm1524_vm2 = vcmp.gt.f32.partialorder %v1344_v46, 0.0  ;;  %v1652_v52 = vmul.f32 0.2, %v1344_v46  ;;  %v1711_v53 = vsel %vm1455_vm15, %v1067_v39, %v1583_v47  ;;  %v1336_v56 = vadd.f32 %v2876_v38, %v1335_v50  ;;  %v2254_v57 = vpop.f32.mrf.mxu0  ;;  %v2318_v58 = vpop.f32.mrf.mxu1 }
 0x141   : > { %v1775_v54 = vsel %vm1519_vm0, %v1323_v40, %v1647_v48  ;;  %1840 = vst.msk [vmem:[%s2623_s7 + $0x148] sm:$0xff] %vm1798_vm3, %v1711_v53  ;;  %v1716_v59 = vsel %vm1460_vm1, %v1088_v45, %v1588_v51  ;;  %v1091_v61 = vadd.f32 %v2876_v38, %v2254_v57  ;;  %v1347_v62 = vadd.f32 %v2876_v38, %v2318_v58 }
 0x142   : > { %1904 = vst.msk [vmem:[%s2623_s7 + $0x348] sm:$0xff] %vm1798_vm3, %v1775_v54  ;;  %v1780_v60 = vsel %vm1524_vm2, %v1344_v46, %v1652_v52  ;;  %1845 = vst.msk [vmem:[%s2623_s7 + $0x170] sm:$0xff] %vm1798_vm3, %v1716_v59  ;;  %vm1458_vm4 = vcmp.gt.f32.partialorder %v1080_v55, 0.0  ;;  %v1586_v63 = vmul.f32 0.2, %v1080_v55  ;;  %vm1522_vm5 = vcmp.gt.f32.partialorder %v1336_v56, 0.0  ;;  %v1082_v1 = vpop.f32.mrf.mxu0  ;;  %v1338_v2 = vpop.f32.mrf.mxu1 }
 0x143   : > { %1909 = vst.msk [vmem:[%s2623_s7 + $0x370] sm:$0xff] %vm1798_vm3, %v1780_v60  ;;  %v1650_v0 = vmul.f32 0.2, %v1336_v56  ;;  %vm1461_vm6 = vcmp.gt.f32.partialorder %v1091_v61, 0.0  ;;  %v1589_v3 = vmul.f32 0.2, %v1091_v61  ;;  %v1083_v7 = vadd.f32 %v2876_v38, %v1082_v1 }
 0x144   : > { %vm1525_vm7 = vcmp.gt.f32.partialorder %v1347_v62, 0.0  ;;  %v1653_v4 = vmul.f32 0.2, %v1347_v62  ;;  %v1714_v5 = vsel %vm1458_vm4, %v1080_v55, %v1586_v63  ;;  %v1339_v8 = vadd.f32 %v2876_v38, %v1338_v2  ;;  %v2257_v10 = vpop.f32.mrf.mxu0  ;;  %v2321_v11 = vpop.f32.mrf.mxu1 }
 0x145   : > { %v1778_v6 = vsel %vm1522_vm5, %v1336_v56, %v1650_v0  ;;  %1843 = vst.msk [vmem:[%s2623_s7 + $0x160] sm:$0xff] %vm1798_vm3, %v1714_v5  ;;  %v1717_v12 = vsel %vm1461_vm6, %v1091_v61, %v1589_v3  ;;  %v1104_v14 = vadd.f32 %v2876_v38, %v2257_v10  ;;  %v1360_v15 = vadd.f32 %v2876_v38, %v2321_v11 }
 0x146   : > { %1907 = vst.msk [vmem:[%s2623_s7 + $0x360] sm:$0xff] %vm1798_vm3, %v1778_v6  ;;  %v1781_v13 = vsel %vm1525_vm7, %v1347_v62, %v1653_v4  ;;  %1846 = vst.msk [vmem:[%s2623_s7 + $0x178] sm:$0xff] %vm1798_vm3, %v1717_v12  ;;  %vm1459_vm8 = vcmp.gt.f32.partialorder %v1083_v7, 0.0  ;;  %v1587_v16 = vmul.f32 0.2, %v1083_v7  ;;  %vm1523_vm9 = vcmp.gt.f32.partialorder %v1339_v8, 0.0  ;;  %v1095_v18 = vpop.f32.mrf.mxu0  ;;  %v1351_v19 = vpop.f32.mrf.mxu1 }
 0x147   : > { %1910 = vst.msk [vmem:[%s2623_s7 + $0x378] sm:$0xff] %vm1798_vm3, %v1781_v13  ;;  %v1651_v17 = vmul.f32 0.2, %v1339_v8  ;;  %vm1464_vm10 = vcmp.gt.f32.partialorder %v1104_v14, 0.0  ;;  %v1592_v20 = vmul.f32 0.2, %v1104_v14  ;;  %v1096_v24 = vadd.f32 %v2876_v38, %v1095_v18 }
 0x148   : > { %vm1528_vm11 = vcmp.gt.f32.partialorder %v1360_v15, 0.0  ;;  %v1656_v21 = vmul.f32 0.2, %v1360_v15  ;;  %v1715_v22 = vsel %vm1459_vm8, %v1083_v7, %v1587_v16  ;;  %v1352_v25 = vadd.f32 %v2876_v38, %v1351_v19  ;;  %v2258_v26 = vpop.f32.mrf.mxu0  ;;  %v2322_v27 = vpop.f32.mrf.mxu1 }
 0x149   : > { %v1779_v23 = vsel %vm1523_vm9, %v1339_v8, %v1651_v17  ;;  %1844 = vst.msk [vmem:[%s2623_s7 + $0x168] sm:$0xff] %vm1798_vm3, %v1715_v22  ;;  %v1720_v28 = vsel %vm1464_vm10, %v1104_v14, %v1592_v20  ;;  %v1107_v30 = vadd.f32 %v2876_v38, %v2258_v26  ;;  %v1363_v31 = vadd.f32 %v2876_v38, %v2322_v27 }
 0x14a   : > { %1908 = vst.msk [vmem:[%s2623_s7 + $0x368] sm:$0xff] %vm1798_vm3, %v1779_v23  ;;  %v1784_v29 = vsel %vm1528_vm11, %v1360_v15, %v1656_v21  ;;  %1849 = vst.msk [vmem:[%s2623_s7 + $0x190] sm:$0xff] %vm1798_vm3, %v1720_v28  ;;  %vm1462_vm12 = vcmp.gt.f32.partialorder %v1096_v24, 0.0  ;;  %v1590_v32 = vmul.f32 0.2, %v1096_v24  ;;  %vm1526_vm13 = vcmp.gt.f32.partialorder %v1352_v25, 0.0  ;;  %v1098_v34 = vpop.f32.mrf.mxu0  ;;  %v1354_v35 = vpop.f32.mrf.mxu1 }
 0x14b   : > { %1913 = vst.msk [vmem:[%s2623_s7 + $0x390] sm:$0xff] %vm1798_vm3, %v1784_v29  ;;  %v1654_v33 = vmul.f32 0.2, %v1352_v25  ;;  %vm1465_vm14 = vcmp.gt.f32.partialorder %v1107_v30, 0.0  ;;  %v1593_v36 = vmul.f32 0.2, %v1107_v30  ;;  %v1099_v40 = vadd.f32 %v2876_v38, %v1098_v34 }
 0x14c   : > { %vm1529_vm15 = vcmp.gt.f32.partialorder %v1363_v31, 0.0  ;;  %v1657_v37 = vmul.f32 0.2, %v1363_v31  ;;  %v1718_v9 = vsel %vm1462_vm12, %v1096_v24, %v1590_v32  ;;  %v1355_v41 = vadd.f32 %v2876_v38, %v1354_v35  ;;  %v2261_v42 = vpop.f32.mrf.mxu0  ;;  %v2325_v43 = vpop.f32.mrf.mxu1 }
 0x14d   : > { %v1782_v39 = vsel %vm1526_vm13, %v1352_v25, %v1654_v33  ;;  %1847 = vst.msk [vmem:[%s2623_s7 + $0x180] sm:$0xff] %vm1798_vm3, %v1718_v9  ;;  %v1721_v44 = vsel %vm1465_vm14, %v1107_v30, %v1593_v36  ;;  %v1120_v46 = vadd.f32 %v2876_v38, %v2261_v42  ;;  %v1376_v47 = vadd.f32 %v2876_v38, %v2325_v43 }
 0x14e   : > { %1911 = vst.msk [vmem:[%s2623_s7 + $0x380] sm:$0xff] %vm1798_vm3, %v1782_v39  ;;  %v1785_v45 = vsel %vm1529_vm15, %v1363_v31, %v1657_v37  ;;  %1850 = vst.msk [vmem:[%s2623_s7 + $0x198] sm:$0xff] %vm1798_vm3, %v1721_v44  ;;  %vm1463_vm0 = vcmp.gt.f32.partialorder %v1099_v40, 0.0  ;;  %v1591_v48 = vmul.f32 0.2, %v1099_v40  ;;  %vm1527_vm1 = vcmp.gt.f32.partialorder %v1355_v41, 0.0  ;;  %v1111_v50 = vpop.f32.mrf.mxu0  ;;  %v1367_v51 = vpop.f32.mrf.mxu1 }
 0x14f   : > { %1914 = vst.msk [vmem:[%s2623_s7 + $0x398] sm:$0xff] %vm1798_vm3, %v1785_v45  ;;  %v1655_v49 = vmul.f32 0.2, %v1355_v41  ;;  %vm1468_vm2 = vcmp.gt.f32.partialorder %v1120_v46, 0.0  ;;  %v1596_v52 = vmul.f32 0.2, %v1120_v46  ;;  %v1112_v56 = vadd.f32 %v2876_v38, %v1111_v50 }
 0x150   : > { %vm1532_vm4 = vcmp.gt.f32.partialorder %v1376_v47, 0.0  ;;  %v1660_v53 = vmul.f32 0.2, %v1376_v47  ;;  %v1719_v54 = vsel %vm1463_vm0, %v1099_v40, %v1591_v48  ;;  %v1368_v57 = vadd.f32 %v2876_v38, %v1367_v51  ;;  %v2262_v58 = vpop.f32.mrf.mxu0  ;;  %v2326_v59 = vpop.f32.mrf.mxu1 }
 0x151   : > { %v1783_v55 = vsel %vm1527_vm1, %v1355_v41, %v1655_v49  ;;  %1848 = vst.msk [vmem:[%s2623_s7 + $0x188] sm:$0xff] %vm1798_vm3, %v1719_v54  ;;  %v1724_v60 = vsel %vm1468_vm2, %v1120_v46, %v1596_v52  ;;  %v1123_v62 = vadd.f32 %v2876_v38, %v2262_v58  ;;  %v1379_v63 = vadd.f32 %v2876_v38, %v2326_v59 }
 0x152   : > { %1912 = vst.msk [vmem:[%s2623_s7 + $0x388] sm:$0xff] %vm1798_vm3, %v1783_v55  ;;  %v1788_v61 = vsel %vm1532_vm4, %v1376_v47, %v1660_v53  ;;  %1853 = vst.msk [vmem:[%s2623_s7 + $0x1b0] sm:$0xff] %vm1798_vm3, %v1724_v60  ;;  %vm1466_vm5 = vcmp.gt.f32.partialorder %v1112_v56, 0.0  ;;  %v1594_v0 = vmul.f32 0.2, %v1112_v56  ;;  %vm1530_vm6 = vcmp.gt.f32.partialorder %v1368_v57, 0.0  ;;  %v1114_v2 = vpop.f32.mrf.mxu0  ;;  %v1370_v3 = vpop.f32.mrf.mxu1 }
 0x153   : > { %1917 = vst.msk [vmem:[%s2623_s7 + $0x3b0] sm:$0xff] %vm1798_vm3, %v1788_v61  ;;  %v1658_v1 = vmul.f32 0.2, %v1368_v57  ;;  %vm1469_vm7 = vcmp.gt.f32.partialorder %v1123_v62, 0.0  ;;  %v1597_v4 = vmul.f32 0.2, %v1123_v62  ;;  %v1115_v8 = vadd.f32 %v2876_v38, %v1114_v2 }
 0x154   : > { %vm1533_vm8 = vcmp.gt.f32.partialorder %v1379_v63, 0.0  ;;  %v1661_v5 = vmul.f32 0.2, %v1379_v63  ;;  %v1722_v6 = vsel %vm1466_vm5, %v1112_v56, %v1594_v0  ;;  %v1371_v10 = vadd.f32 %v2876_v38, %v1370_v3  ;;  %v2265_v11 = vpop.f32.mrf.mxu0  ;;  %v2329_v12 = vpop.f32.mrf.mxu1 }
 0x155   : > { %v1786_v7 = vsel %vm1530_vm6, %v1368_v57, %v1658_v1  ;;  %1851 = vst.msk [vmem:[%s2623_s7 + $0x1a0] sm:$0xff] %vm1798_vm3, %v1722_v6  ;;  %v1725_v13 = vsel %vm1469_vm7, %v1123_v62, %v1597_v4  ;;  %v1136_v15 = vadd.f32 %v2876_v38, %v2265_v11  ;;  %v1392_v16 = vadd.f32 %v2876_v38, %v2329_v12 }
 0x156   : > { %1915 = vst.msk [vmem:[%s2623_s7 + $0x3a0] sm:$0xff] %vm1798_vm3, %v1786_v7  ;;  %v1789_v14 = vsel %vm1533_vm8, %v1379_v63, %v1661_v5  ;;  %1854 = vst.msk [vmem:[%s2623_s7 + $0x1b8] sm:$0xff] %vm1798_vm3, %v1725_v13  ;;  %vm1467_vm9 = vcmp.gt.f32.partialorder %v1115_v8, 0.0  ;;  %v1595_v17 = vmul.f32 0.2, %v1115_v8  ;;  %vm1531_vm10 = vcmp.gt.f32.partialorder %v1371_v10, 0.0  ;;  %v1127_v19 = vpop.f32.mrf.mxu0  ;;  %v1383_v20 = vpop.f32.mrf.mxu1 }
 0x157   : > { %1918 = vst.msk [vmem:[%s2623_s7 + $0x3b8] sm:$0xff] %vm1798_vm3, %v1789_v14  ;;  %v1659_v18 = vmul.f32 0.2, %v1371_v10  ;;  %vm1472_vm11 = vcmp.gt.f32.partialorder %v1136_v15, 0.0  ;;  %v1600_v21 = vmul.f32 0.2, %v1136_v15  ;;  %v1128_v25 = vadd.f32 %v2876_v38, %v1127_v19 }
 0x158   : > { %vm1536_vm12 = vcmp.gt.f32.partialorder %v1392_v16, 0.0  ;;  %v1664_v22 = vmul.f32 0.2, %v1392_v16  ;;  %v1723_v23 = vsel %vm1467_vm9, %v1115_v8, %v1595_v17  ;;  %v1384_v26 = vadd.f32 %v2876_v38, %v1383_v20  ;;  %v2266_v27 = vpop.f32.mrf.mxu0  ;;  %v2330_v28 = vpop.f32.mrf.mxu1 }
 0x159   : > { %v1787_v24 = vsel %vm1531_vm10, %v1371_v10, %v1659_v18  ;;  %1852 = vst.msk [vmem:[%s2623_s7 + $0x1a8] sm:$0xff] %vm1798_vm3, %v1723_v23  ;;  %v1728_v29 = vsel %vm1472_vm11, %v1136_v15, %v1600_v21  ;;  %v1139_v31 = vadd.f32 %v2876_v38, %v2266_v27  ;;  %v1395_v32 = vadd.f32 %v2876_v38, %v2330_v28 }
 0x15a   : > { %1916 = vst.msk [vmem:[%s2623_s7 + $0x3a8] sm:$0xff] %vm1798_vm3, %v1787_v24  ;;  %v1792_v30 = vsel %vm1536_vm12, %v1392_v16, %v1664_v22  ;;  %1857 = vst.msk [vmem:[%s2623_s7 + $0x1d0] sm:$0xff] %vm1798_vm3, %v1728_v29  ;;  %vm1470_vm13 = vcmp.gt.f32.partialorder %v1128_v25, 0.0  ;;  %v1598_v33 = vmul.f32 0.2, %v1128_v25  ;;  %vm1534_vm14 = vcmp.gt.f32.partialorder %v1384_v26, 0.0  ;;  %v1130_v35 = vpop.f32.mrf.mxu0  ;;  %v1386_v36 = vpop.f32.mrf.mxu1 }
 0x15b   : > { %1921 = vst.msk [vmem:[%s2623_s7 + $0x3d0] sm:$0xff] %vm1798_vm3, %v1792_v30  ;;  %v1662_v34 = vmul.f32 0.2, %v1384_v26  ;;  %vm1473_vm15 = vcmp.gt.f32.partialorder %v1139_v31, 0.0  ;;  %v1601_v37 = vmul.f32 0.2, %v1139_v31  ;;  %v1131_v41 = vadd.f32 %v2876_v38, %v1130_v35 }
 0x15c   : > { %vm1537_vm0 = vcmp.gt.f32.partialorder %v1395_v32, 0.0  ;;  %v1665_v9 = vmul.f32 0.2, %v1395_v32  ;;  %v1726_v39 = vsel %vm1470_vm13, %v1128_v25, %v1598_v33  ;;  %v1387_v42 = vadd.f32 %v2876_v38, %v1386_v36  ;;  %v2269_v43 = vpop.f32.mrf.mxu0  ;;  %v2333_v44 = vpop.f32.mrf.mxu1 }
 0x15d   : > { %v1790_v40 = vsel %vm1534_vm14, %v1384_v26, %v1662_v34  ;;  %1855 = vst.msk [vmem:[%s2623_s7 + $0x1c0] sm:$0xff] %vm1798_vm3, %v1726_v39  ;;  %v1729_v45 = vsel %vm1473_vm15, %v1139_v31, %v1601_v37  ;;  %v1152_v47 = vadd.f32 %v2876_v38, %v2269_v43  ;;  %v1408_v48 = vadd.f32 %v2876_v38, %v2333_v44 }
 0x15e   : > { %1919 = vst.msk [vmem:[%s2623_s7 + $0x3c0] sm:$0xff] %vm1798_vm3, %v1790_v40  ;;  %v1793_v46 = vsel %vm1537_vm0, %v1395_v32, %v1665_v9  ;;  %1858 = vst.msk [vmem:[%s2623_s7 + $0x1d8] sm:$0xff] %vm1798_vm3, %v1729_v45  ;;  %vm1471_vm1 = vcmp.gt.f32.partialorder %v1131_v41, 0.0  ;;  %v1599_v49 = vmul.f32 0.2, %v1131_v41  ;;  %vm1535_vm2 = vcmp.gt.f32.partialorder %v1387_v42, 0.0  ;;  %v1143_v51 = vpop.f32.mrf.mxu0  ;;  %v1399_v52 = vpop.f32.mrf.mxu1 }
 0x15f   : > { %1922 = vst.msk [vmem:[%s2623_s7 + $0x3d8] sm:$0xff] %vm1798_vm3, %v1793_v46  ;;  %v1663_v50 = vmul.f32 0.2, %v1387_v42  ;;  %vm1476_vm4 = vcmp.gt.f32.partialorder %v1152_v47, 0.0  ;;  %v1604_v53 = vmul.f32 0.2, %v1152_v47  ;;  %v1144_v57 = vadd.f32 %v2876_v38, %v1143_v51 }
 0x160   : > { %vm1540_vm5 = vcmp.gt.f32.partialorder %v1408_v48, 0.0  ;;  %v1668_v54 = vmul.f32 0.2, %v1408_v48  ;;  %v1727_v55 = vsel %vm1471_vm1, %v1131_v41, %v1599_v49  ;;  %v1400_v58 = vadd.f32 %v2876_v38, %v1399_v52  ;;  %v2270_v59 = vpop.f32.mrf.mxu0  ;;  %v2334_v60 = vpop.f32.mrf.mxu1 }
 0x161   : > { %v1791_v56 = vsel %vm1535_vm2, %v1387_v42, %v1663_v50  ;;  %1856 = vst.msk [vmem:[%s2623_s7 + $0x1c8] sm:$0xff] %vm1798_vm3, %v1727_v55  ;;  %v1732_v61 = vsel %vm1476_vm4, %v1152_v47, %v1604_v53  ;;  %v1155_v63 = vadd.f32 %v2876_v38, %v2270_v59  ;;  %v1411_v0 = vadd.f32 %v2876_v38, %v2334_v60 }
 0x162   : > { %1920 = vst.msk [vmem:[%s2623_s7 + $0x3c8] sm:$0xff] %vm1798_vm3, %v1791_v56  ;;  %v1796_v62 = vsel %vm1540_vm5, %v1408_v48, %v1668_v54  ;;  %1861 = vst.msk [vmem:[%s2623_s7 + $0x1f0] sm:$0xff] %vm1798_vm3, %v1732_v61  ;;  %vm1474_vm6 = vcmp.gt.f32.partialorder %v1144_v57, 0.0  ;;  %v1602_v1 = vmul.f32 0.2, %v1144_v57  ;;  %vm1538_vm7 = vcmp.gt.f32.partialorder %v1400_v58, 0.0  ;;  %v1146_v3 = vpop.f32.mrf.mxu0  ;;  %v1402_v4 = vpop.f32.mrf.mxu1 }
 0x163   : > { %1925 = vst.msk [vmem:[%s2623_s7 + $0x3f0] sm:$0xff] %vm1798_vm3, %v1796_v62  ;;  %v1666_v2 = vmul.f32 0.2, %v1400_v58  ;;  %vm1477_vm8 = vcmp.gt.f32.partialorder %v1155_v63, 0.0  ;;  %v1605_v5 = vmul.f32 0.2, %v1155_v63  ;;  %v1147_v10 = vadd.f32 %v2876_v38, %v1146_v3 }
 0x164   : > { %vm1541_vm9 = vcmp.gt.f32.partialorder %v1411_v0, 0.0  ;;  %v1669_v6 = vmul.f32 0.2, %v1411_v0  ;;  %v1730_v7 = vsel %vm1474_vm6, %v1144_v57, %v1602_v1  ;;  %v1403_v11 = vadd.f32 %v2876_v38, %v1402_v4 }
 0x165   : > { %v1794_v8 = vsel %vm1538_vm7, %v1400_v58, %v1666_v2  ;;  %1859 = vst.msk [vmem:[%s2623_s7 + $0x1e0] sm:$0xff] %vm1798_vm3, %v1730_v7  ;;  %v1733_v12 = vsel %vm1477_vm8, %v1155_v63, %v1605_v5  ;;  %vm1475_vm10 = vcmp.gt.f32.partialorder %v1147_v10, 0.0  ;;  %v1603_v14 = vmul.f32 0.2, %v1147_v10 }
 0x166   : > { %1923 = vst.msk [vmem:[%s2623_s7 + $0x3e0] sm:$0xff] %vm1798_vm3, %v1794_v8  ;;  %v1797_v13 = vsel %vm1541_vm9, %v1411_v0, %v1669_v6  ;;  %1862 = vst.msk [vmem:[%s2623_s7 + $0x1f8] sm:$0xff] %vm1798_vm3, %v1733_v12  ;;  %vm1539_vm11 = vcmp.gt.f32.partialorder %v1403_v11, 0.0  ;;  %v1667_v15 = vmul.f32 0.2, %v1403_v11 }
 0x167   : > { %1926 = vst.msk [vmem:[%s2623_s7 + $0x3f8] sm:$0xff] %vm1798_vm3, %v1797_v13  ;;  %v1731_v16 = vsel %vm1475_vm10, %v1147_v10, %v1603_v14 }
 0x168   : > { %v1795_v17 = vsel %vm1539_vm11, %v1403_v11, %v1667_v15  ;;  %1860 = vst.msk [vmem:[%s2623_s7 + $0x1e8] sm:$0xff] %vm1798_vm3, %v1731_v16 }
 0x169   : > { %1924 = vst.msk [vmem:[%s2623_s7 + $0x3e8] sm:$0xff] %vm1798_vm3, %v1795_v17 }
 0x16a PF: > { %s13_s12 = sadd.s32 1, %s2430_s12  }
 0x16b   : > { %p10_p4 = scmp.ge.s32.totalorder %s13_s12, 4  }
 0x16d   :  { %12 = sbr.rel (!%p10_p4) target bundleno = 1 (0x1), region = 62 }

// kernel: discriminator_forward.9
= control target key start
LH: loop header
LB: loop body
LE: loop exit
PB: predicated region body
PF: predicated region fallthrough
CT: control target
= control target key end

     0   :  { %v1787_v0 = vmov 0   ;;  %vm476_vm0 = vcmask 588800   ;;  %vm573_vm1 = vcmask 1043456   ;;  %vm866_vm2 = vcmask 130048   ;;  %s2903_s1 = inlined_call_operand.vmem [shape: bf16[200,16], index: 1, kind: input, shape index: {}]   ;;  %s2904_s0 = inlined_call_operand.vmem [shape: bf16[512,200], index: 0, kind: input, shape index: {}]   ;;  %s2905_s2 = inlined_call_operand.vmem [shape: f32[1,16], index: 2, kind: input, shape index: {}]   ;;  %s2906_s3 = inlined_call_operand.vmem [shape: f32[512,16], index: 3, kind: output, shape index: {0}]   ;;  %s2907_s4 = inlined_call_operand.vmem [shape: f32[2,16], index: 4, kind: output, shape index: {1}]  }
   0x1   :  { %577 = vmatprep.subr.bf16.mxu0 %v1787_v0  ;;  %v1678_v1 = vld [vmem:[%s2903_s1 + $0x38] sm:$0xff]   ;;  %1650 = vmatprep.subr.bf16.mxu1 %v1787_v0  ;;  %v1679_v2 = vld [vmem:[%s2903_s1 + $0x30] sm:$0xff]   ;;  %v1680_v3 = vld [vmem:[%s2903_s1 + $0x28] sm:$0xff]   ;;  %vm1524_vm3 = vcmask 123904   ;;  %vm1527_vm4 = vcmask 1040384  }
   0x2   :  { %578 = vmatpush1.bf16.msra.mxu0 %v1678_v1  ;;  %1663 = vmatpush1.bf16.msra.mxu1 %v1678_v1  ;;  %v1681_v4 = vld [vmem:[%s2903_s1 + $0x20] sm:$0xff]   ;;  %v1682_v6 = vld [vmem:[%s2903_s1 + $0x18] sm:$0xff]   ;;  %v1683_v7 = vld [vmem:[%s2903_s1 + $0x10] sm:$0xff]  }
   0x3   :  { %579 = vmatprep.subr.bf16.mxu0 %v1787_v0  ;;  %1651 = vmatprep.subr.bf16.mxu1 %v1787_v0  ;;  %v1693_v5 = vld [vmem:[%s2904_s0 + $0x4] ss:$8 sps:$4 sm:$0xff]   ;;  %v1686_v11 = vld [vmem:[%s2903_s1 + $0x60] ss:$0 sps:$4 sm:$0xff]   ;;  %v1687_v13 = vld [vmem:[%s2903_s1 + $0x58] sm:$0xff]  }
   0x4   :  { %1618 = vmatprep.mubr.msk.bf16.mxu0 %vm476_vm0, %v1693_v5  ;;  %v1684_v8 = vld [vmem:[%s2903_s1 + $0x8] sm:$0xff]   ;;  %v1685_v10 = vld [vmem:[%s2903_s1] sm:$0xff]   ;;  %v575_v12 = vsel %vm573_vm1, %v1686_v11, 0  ;;  %v1688_v14 = vld [vmem:[%s2903_s1 + $0x50] sm:$0xff]  }
   0x5   :  { %v1717_v9 = vld [vmem:[%s2904_s0 + $0x104] ss:$8 sps:$4 sm:$0xff]   ;;  %v1691_v17 = vld [vmem:[%s2904_s0] ss:$8 sps:$4 sm:$0xff]   ;;  %v1694_v18 = vld [vmem:[%s2904_s0 + $0x14] ss:$8 sps:$4 sm:$0xff]  }
   0x6   :  { %580 = vmatpush1.bf16.msra.mxu0 %v1679_v2  ;;  %1664 = vmatpush1.bf16.msra.mxu1 %v1679_v2  ;;  %v1689_v15 = vld [vmem:[%s2903_s1 + $0x48] sm:$0xff]   ;;  %v1690_v16 = vld [vmem:[%s2903_s1 + $0x40] sm:$0xff]   ;;  %v1721_v20 = vld [vmem:[%s2904_s0 + $0x114] ss:$8 sps:$4 sm:$0xff]  }
   0x7   :  { %581 = vmatprep.subr.bf16.mxu0 %v1787_v0  ;;  %1652 = vmatprep.subr.bf16.mxu1 %v1787_v0  ;;  %v1715_v19 = vld [vmem:[%s2904_s0 + $0x100] ss:$8 sps:$4 sm:$0xff]   ;;  %v1696_v21 = vld [vmem:[%s2904_s0 + $0x10] ss:$8 sps:$4 sm:$0xff]   ;;  %v1697_v23 = vld [vmem:[%s2904_s0 + $0x24] ss:$8 sps:$4 sm:$0xff]  }
   0x8   :  { %1634 = vmatprep.mubr.msk.bf16.mxu1 %vm476_vm0, %v1717_v9  ;;  %v1723_v22 = vld [vmem:[%s2904_s0 + $0x110] ss:$8 sps:$4 sm:$0xff]   ;;  %v1727_v24 = vld [vmem:[%s2904_s0 + $0x124] ss:$8 sps:$4 sm:$0xff]   ;;  %v1699_v25 = vld [vmem:[%s2904_s0 + $0x20] ss:$8 sps:$4 sm:$0xff]  }
   0x9   :  { %v1729_v26 = vld [vmem:[%s2904_s0 + $0x120] ss:$8 sps:$4 sm:$0xff]   ;;  %v1700_v27 = vld [vmem:[%s2904_s0 + $0x34] ss:$8 sps:$4 sm:$0xff]   ;;  %v1702_v29 = vld [vmem:[%s2904_s0 + $0x30] ss:$8 sps:$4 sm:$0xff]  }
   0xa   :  { %582 = vmatpush1.bf16.msra.mxu0 %v1680_v3  ;;  %1665 = vmatpush1.bf16.msra.mxu1 %v1680_v3  ;;  %v1733_v28 = vld [vmem:[%s2904_s0 + $0x134] ss:$8 sps:$4 sm:$0xff]   ;;  %v1735_v30 = vld [vmem:[%s2904_s0 + $0x130] ss:$8 sps:$4 sm:$0xff]   ;;  %v1703_v31 = vld [vmem:[%s2904_s0 + $0x44] ss:$8 sps:$4 sm:$0xff]  }
   0xb   :  { %583 = vmatprep.subr.bf16.mxu0 %v1787_v0  ;;  %1653 = vmatprep.subr.bf16.mxu1 %v1787_v0  ;;  %v1739_v32 = vld [vmem:[%s2904_s0 + $0x144] ss:$8 sps:$4 sm:$0xff]   ;;  %v1705_v33 = vld [vmem:[%s2904_s0 + $0x40] ss:$8 sps:$4 sm:$0xff]   ;;  %v1706_v35 = vld [vmem:[%s2904_s0 + $0x54] ss:$8 sps:$4 sm:$0xff]  }
   0xc   :  { %v1741_v34 = vld [vmem:[%s2904_s0 + $0x140] ss:$8 sps:$4 sm:$0xff]   ;;  %v1745_v36 = vld [vmem:[%s2904_s0 + $0x154] ss:$8 sps:$4 sm:$0xff]   ;;  %v1708_v37 = vld [vmem:[%s2904_s0 + $0x50] ss:$8 sps:$4 sm:$0xff]  }
   0xd   :  { %v1747_v38 = vld [vmem:[%s2904_s0 + $0x150] ss:$8 sps:$4 sm:$0xff]   ;;  %v1709_v39 = vld [vmem:[%s2904_s0 + $0x64] ss:$8 sps:$4 sm:$0xff]   ;;  %v1711_v41 = vld [vmem:[%s2904_s0 + $0x60] ss:$8 sps:$4 sm:$0xff]  }
   0xe   :  { %584 = vmatpush1.bf16.msra.mxu0 %v1681_v4  ;;  %1666 = vmatpush1.bf16.msra.mxu1 %v1681_v4  ;;  %v1751_v40 = vld [vmem:[%s2904_s0 + $0x164] ss:$8 sps:$4 sm:$0xff]   ;;  %v1753_v42 = vld [vmem:[%s2904_s0 + $0x160] ss:$8 sps:$4 sm:$0xff]   ;;  %v1712_v43 = vld [vmem:[%s2904_s0 + $0x74] ss:$8 sps:$4 sm:$0xff]  }
   0xf   :  { %585 = vmatprep.subr.bf16.mxu0 %v1787_v0  ;;  %1654 = vmatprep.subr.bf16.mxu1 %v1787_v0  ;;  %v1757_v44 = vld [vmem:[%s2904_s0 + $0x174] ss:$8 sps:$4 sm:$0xff]   ;;  %v1714_v45 = vld [vmem:[%s2904_s0 + $0x70] ss:$8 sps:$4 sm:$0xff]   ;;  %v1718_v47 = vld [vmem:[%s2904_s0 + $0x84] ss:$8 sps:$4 sm:$0xff]  }
  0x10   :  { %v1759_v46 = vld [vmem:[%s2904_s0 + $0x170] ss:$8 sps:$4 sm:$0xff]   ;;  %v1763_v48 = vld [vmem:[%s2904_s0 + $0x184] ss:$8 sps:$4 sm:$0xff]   ;;  %v1720_v49 = vld [vmem:[%s2904_s0 + $0x80] ss:$8 sps:$4 sm:$0xff]  }
  0x11   :  { %v1765_v50 = vld [vmem:[%s2904_s0 + $0x180] ss:$8 sps:$4 sm:$0xff]   ;;  %v1724_v51 = vld [vmem:[%s2904_s0 + $0x94] ss:$8 sps:$4 sm:$0xff]   ;;  %v1726_v53 = vld [vmem:[%s2904_s0 + $0x90] ss:$8 sps:$4 sm:$0xff]  }
  0x12   :  { %586 = vmatpush1.bf16.msra.mxu0 %v1682_v6  ;;  %1667 = vmatpush1.bf16.msra.mxu1 %v1682_v6  ;;  %v1766_v52 = vld [vmem:[%s2904_s0 + $0x194] ss:$8 sps:$4 sm:$0xff]   ;;  %v1768_v54 = vld [vmem:[%s2904_s0 + $0x190] ss:$8 sps:$4 sm:$0xff]   ;;  %v1730_v55 = vld [vmem:[%s2904_s0 + $0xa4] ss:$8 sps:$4 sm:$0xff]  }
  0x13   :  { %587 = vmatprep.subr.bf16.mxu0 %v1787_v0  ;;  %1655 = vmatprep.subr.bf16.mxu1 %v1787_v0  ;;  %v1769_v56 = vld [vmem:[%s2904_s0 + $0x1a4] ss:$8 sps:$4 sm:$0xff]   ;;  %v1732_v57 = vld [vmem:[%s2904_s0 + $0xa0] ss:$8 sps:$4 sm:$0xff]   ;;  %v1736_v59 = vld [vmem:[%s2904_s0 + $0xb4] ss:$8 sps:$4 sm:$0xff]  }
  0x14   :  { %v1771_v58 = vld [vmem:[%s2904_s0 + $0x1a0] ss:$8 sps:$4 sm:$0xff]   ;;  %v1772_v60 = vld [vmem:[%s2904_s0 + $0x1b4] ss:$8 sps:$4 sm:$0xff]   ;;  %v1738_v61 = vld [vmem:[%s2904_s0 + $0xb0] ss:$8 sps:$4 sm:$0xff]  }
  0x15   :  { %v1774_v62 = vld [vmem:[%s2904_s0 + $0x1b0] ss:$8 sps:$4 sm:$0xff]   ;;  %v1742_v63 = vld [vmem:[%s2904_s0 + $0xc4] ss:$8 sps:$4 sm:$0xff]   ;;  %v1744_v1 = vld [vmem:[%s2904_s0 + $0xc0] ss:$8 sps:$4 sm:$0xff]  }
  0x16   :  { %588 = vmatpush1.bf16.msra.mxu0 %v1683_v7  ;;  %1668 = vmatpush1.bf16.msra.mxu1 %v1683_v7  ;;  %v1777_v2 = vld [vmem:[%s2904_s0 + $0x1c0] ss:$8 sps:$4 sm:$0xff]   ;;  %v1748_v3 = vld [vmem:[%s2904_s0 + $0xd4] ss:$8 sps:$4 sm:$0xff]   ;;  %v1750_v5 = vld [vmem:[%s2904_s0 + $0xd0] ss:$8 sps:$4 sm:$0xff]  }
  0x17   :  { %589 = vmatprep.subr.bf16.mxu0 %v1787_v0  ;;  %1656 = vmatprep.subr.bf16.mxu1 %v1787_v0  ;;  %v1778_v4 = vld [vmem:[%s2904_s0 + $0x1d4] ss:$8 sps:$4 sm:$0xff]   ;;  %v1780_v6 = vld [vmem:[%s2904_s0 + $0x1d0] ss:$8 sps:$4 sm:$0xff]   ;;  %v1754_v7 = vld [vmem:[%s2904_s0 + $0xe4] ss:$8 sps:$4 sm:$0xff]  }
  0x18   :  { %v1756_v9 = vld [vmem:[%s2904_s0 + $0xe0] ss:$8 sps:$4 sm:$0xff]   ;;  %v1760_v11 = vld [vmem:[%s2904_s0 + $0xf4] ss:$8 sps:$4 sm:$0xff]  }
  0x1a   :  { %590 = vmatpush1.bf16.msra.mxu0 %v1684_v8  ;;  %1669 = vmatpush1.bf16.msra.mxu1 %v1684_v8  ;;  %v1781_v8 = vld [vmem:[%s2904_s0 + $0x1e4] ss:$8 sps:$4 sm:$0xff]  }
  0x1b   :  { %591 = vmatprep.subr.bf16.mxu0 %v1787_v0  ;;  %1657 = vmatprep.subr.bf16.mxu1 %v1787_v0 }
  0x1e   :  { %592 = vmatpush1.bf16.msra.mxu0 %v1685_v10  ;;  %1670 = vmatpush1.bf16.msra.mxu1 %v1685_v10  ;;  %v1783_v10 = vld [vmem:[%s2904_s0 + $0x1e0] ss:$8 sps:$4 sm:$0xff]  }
  0x1f   :  { %599 = vmatprep.subr.bf16.mxu0 %v1787_v0  ;;  %1658 = vmatprep.subr.bf16.mxu1 %v1787_v0 }
  0x22   :  { %600 = vmatpush2.bf16.msra.mxu0 %v575_v12  ;;  %1671 = vmatpush2.bf16.msra.mxu1 %v575_v12  ;;  %v1784_v12 = vld [vmem:[%s2904_s0 + $0x1f4] ss:$8 sps:$4 sm:$0xff]  }
  0x23   :  { %601 = vmatprep.subr.bf16.mxu0 %v1787_v0  ;;  %1659 = vmatprep.subr.bf16.mxu1 %v1787_v0 }
  0x26   :  { %602 = vmatpush2.bf16.msra.mxu0 %v1687_v13  ;;  %1672 = vmatpush2.bf16.msra.mxu1 %v1687_v13  ;;  %v1762_v13 = vld [vmem:[%s2904_s0 + $0xf0] ss:$8 sps:$4 sm:$0xff]  }
  0x27   :  { %603 = vmatprep.subr.bf16.mxu0 %v1787_v0  ;;  %1660 = vmatprep.subr.bf16.mxu1 %v1787_v0 }
  0x2a   :  { %604 = vmatpush2.bf16.msra.mxu0 %v1688_v14  ;;  %1673 = vmatpush2.bf16.msra.mxu1 %v1688_v14  ;;  %v1786_v14 = vld [vmem:[%s2904_s0 + $0x1f0] ss:$8 sps:$4 sm:$0xff]  }
  0x2b   :  { %605 = vmatprep.subr.bf16.mxu0 %v1787_v0  ;;  %1661 = vmatprep.subr.bf16.mxu1 %v1787_v0 }
  0x2e   :  { %606 = vmatpush2.bf16.msra.mxu0 %v1689_v15  ;;  %1674 = vmatpush2.bf16.msra.mxu1 %v1689_v15  ;;  %v2106_v15 = vld [vmem:[%s2905_s2] ss:$0 sm:$0xff] }
  0x2f   :  { %607 = vmatprep.subr.bf16.mxu0 %v1787_v0  ;;  %1662 = vmatprep.subr.bf16.mxu1 %v1787_v0  ;;  %v1775_v0 = vld [vmem:[%s2904_s0 + $0x1c4] ss:$8 sps:$4 sm:$0xff]  }
  0x32   :  { %608 = vmatpush2.bf16.msra.mxu0 %v1690_v16  ;;  %1675 = vmatpush2.bf16.msra.mxu1 %v1690_v16 }
  0x35   :  { %610 = vmatmul.mubr.bf16.vlgmr.msra.gmra.mxu0 %v1691_v17  ;;  %738 = vmatmul.mubr.bf16.vlgmr.msra.gmra.mxu1 %v1715_v19 }
  0x36   :  { %1619 = vmatprep.mubr.msk.bf16.mxu0 %vm476_vm0, %v1694_v18  ;;  %1635 = vmatprep.mubr.msk.bf16.mxu1 %vm476_vm0, %v1721_v20 }
  0x3d   :  { %618 = vmatmul.mubr.bf16.gmra.mxu0 %v1696_v21  ;;  %746 = vmatmul.mubr.bf16.gmra.mxu1 %v1723_v22 }
  0x3e   :  { %1620 = vmatprep.mubr.msk.bf16.mxu0 %vm476_vm0, %v1697_v23  ;;  %1636 = vmatprep.mubr.msk.bf16.mxu1 %vm476_vm0, %v1727_v24 }
  0x45   :  { %626 = vmatmul.mubr.bf16.gmra.mxu0 %v1699_v25  ;;  %754 = vmatmul.mubr.bf16.gmra.mxu1 %v1729_v26 }
  0x46   :  { %1621 = vmatprep.mubr.msk.bf16.mxu0 %vm476_vm0, %v1700_v27  ;;  %1637 = vmatprep.mubr.msk.bf16.mxu1 %vm476_vm0, %v1733_v28 }
  0x4d   :  { %634 = vmatmul.mubr.bf16.gmra.mxu0 %v1702_v29  ;;  %762 = vmatmul.mubr.bf16.gmra.mxu1 %v1735_v30 }
  0x4e   :  { %1622 = vmatprep.mubr.msk.bf16.mxu0 %vm476_vm0, %v1703_v31  ;;  %1638 = vmatprep.mubr.msk.bf16.mxu1 %vm476_vm0, %v1739_v32 }
  0x55   :  { %642 = vmatmul.mubr.bf16.gmra.mxu0 %v1705_v33  ;;  %770 = vmatmul.mubr.bf16.gmra.mxu1 %v1741_v34 }
  0x56   :  { %1623 = vmatprep.mubr.msk.bf16.mxu0 %vm476_vm0, %v1706_v35  ;;  %1639 = vmatprep.mubr.msk.bf16.mxu1 %vm476_vm0, %v1745_v36 }
  0x5d   :  { %650 = vmatmul.mubr.bf16.gmra.mxu0 %v1708_v37  ;;  %778 = vmatmul.mubr.bf16.gmra.mxu1 %v1747_v38 }
  0x5e   :  { %1624 = vmatprep.mubr.msk.bf16.mxu0 %vm476_vm0, %v1709_v39  ;;  %1640 = vmatprep.mubr.msk.bf16.mxu1 %vm476_vm0, %v1751_v40 }
  0x65   :  { %658 = vmatmul.mubr.bf16.gmra.mxu0 %v1711_v41  ;;  %786 = vmatmul.mubr.bf16.gmra.mxu1 %v1753_v42 }
  0x66   :  { %1625 = vmatprep.mubr.msk.bf16.mxu0 %vm476_vm0, %v1712_v43  ;;  %1641 = vmatprep.mubr.msk.bf16.mxu1 %vm476_vm0, %v1757_v44 }
  0x6d   :  { %666 = vmatmul.mubr.bf16.gmra.mxu0 %v1714_v45  ;;  %794 = vmatmul.mubr.bf16.gmra.mxu1 %v1759_v46 }
  0x6e   :  { %1626 = vmatprep.mubr.msk.bf16.mxu0 %vm476_vm0, %v1718_v47  ;;  %1642 = vmatprep.mubr.msk.bf16.mxu1 %vm476_vm0, %v1763_v48 }
  0x75   :  { %674 = vmatmul.mubr.bf16.gmra.mxu0 %v1720_v49  ;;  %802 = vmatmul.mubr.bf16.gmra.mxu1 %v1765_v50 }
  0x76   :  { %1627 = vmatprep.mubr.msk.bf16.mxu0 %vm476_vm0, %v1724_v51  ;;  %1643 = vmatprep.mubr.msk.bf16.mxu1 %vm476_vm0, %v1766_v52 }
  0x7d   :  { %682 = vmatmul.mubr.bf16.gmra.mxu0 %v1726_v53  ;;  %810 = vmatmul.mubr.bf16.gmra.mxu1 %v1768_v54 }
  0x7e   :  { %1628 = vmatprep.mubr.msk.bf16.mxu0 %vm476_vm0, %v1730_v55  ;;  %1644 = vmatprep.mubr.msk.bf16.mxu1 %vm476_vm0, %v1769_v56 }
  0x85   :  { %690 = vmatmul.mubr.bf16.gmra.mxu0 %v1732_v57  ;;  %818 = vmatmul.mubr.bf16.gmra.mxu1 %v1771_v58 }
  0x86   :  { %1629 = vmatprep.mubr.msk.bf16.mxu0 %vm476_vm0, %v1736_v59  ;;  %1645 = vmatprep.mubr.msk.bf16.mxu1 %vm476_vm0, %v1772_v60 }
  0x8d   :  { %698 = vmatmul.mubr.bf16.gmra.mxu0 %v1738_v61  ;;  %826 = vmatmul.mubr.bf16.gmra.mxu1 %v1774_v62 }
  0x8e   :  { %1630 = vmatprep.mubr.msk.bf16.mxu0 %vm476_vm0, %v1742_v63  ;;  %1646 = vmatprep.mubr.msk.bf16.mxu1 %vm476_vm0, %v1775_v0 }
  0x95   :  { %706 = vmatmul.mubr.bf16.gmra.mxu0 %v1744_v1  ;;  %834 = vmatmul.mubr.bf16.gmra.mxu1 %v1777_v2 }
  0x96   :  { %1631 = vmatprep.mubr.msk.bf16.mxu0 %vm476_vm0, %v1748_v3  ;;  %1647 = vmatprep.mubr.msk.bf16.mxu1 %vm476_vm0, %v1778_v4 }
  0x9d   :  { %714 = vmatmul.mubr.bf16.gmra.mxu0 %v1750_v5  ;;  %842 = vmatmul.mubr.bf16.gmra.mxu1 %v1780_v6 }
  0x9e   :  { %1632 = vmatprep.mubr.msk.bf16.mxu0 %vm476_vm0, %v1754_v7  ;;  %1648 = vmatprep.mubr.msk.bf16.mxu1 %vm476_vm0, %v1781_v8 }
  0xa5   :  { %722 = vmatmul.mubr.bf16.gmra.mxu0 %v1756_v9  ;;  %850 = vmatmul.mubr.bf16.gmra.mxu1 %v1783_v10 }
  0xa6   :  { %1633 = vmatprep.mubr.msk.bf16.mxu0 %vm476_vm0, %v1760_v11  ;;  %1649 = vmatprep.mubr.msk.bf16.mxu1 %vm476_vm0, %v1784_v12 }
  0xad   :  { %730 = vmatmul.mubr.bf16.gmra.mxu0 %v1762_v13  ;;  %858 = vmatmul.mubr.bf16.gmra.mxu1 %v1786_v14 }
  0xf5   :  { %v611_v16 = vpop.f32.mrf.mxu0  ;;  %v739_v17 = vpop.f32.mrf.mxu1 }
  0xf6   :  { %v2109_v18 = vadd.f32 %v2106_v15, %v611_v16  ;;  %v2112_v19 = vadd.f32 %v2106_v15, %v739_v17 }
  0xf7   :  { %v613_v20 = vpop.f32.mrf.mxu0  ;;  %v741_v21 = vpop.f32.mrf.mxu1 }
  0xf8   :  { %867 = vst.msk [vmem:[%s2906_s3] sm:$0xff] %vm866_vm2, %v2109_v18  ;;  %899 = vst.msk [vmem:[%s2906_s3 + $0x100] sm:$0xff] %vm866_vm2, %v2112_v19 }
  0xf9   :  { %v614_v22 = vpop.f32.mrf.mxu0  ;;  %v742_v23 = vpop.f32.mrf.mxu1 }
  0xfa   :  { %v2125_v24 = vadd.f32 %v2106_v15, %v614_v22  ;;  %v2128_v25 = vadd.f32 %v2106_v15, %v742_v23 }
  0xfb   :  { %v616_v26 = vpop.f32.mrf.mxu0  ;;  %v744_v27 = vpop.f32.mrf.mxu1 }
  0xfc   :  { %868 = vst.msk [vmem:[%s2906_s3 + $0x8] sm:$0xff] %vm866_vm2, %v2125_v24  ;;  %900 = vst.msk [vmem:[%s2906_s3 + $0x108] sm:$0xff] %vm866_vm2, %v2128_v25 }
  0xfd   :  { %v619_v28 = vpop.f32.mrf.mxu0  ;;  %v747_v29 = vpop.f32.mrf.mxu1 }
  0xfe   :  { %v2141_v30 = vadd.f32 %v2106_v15, %v619_v28  ;;  %v2144_v31 = vadd.f32 %v2106_v15, %v747_v29 }
  0xff   :  { %v621_v32 = vpop.f32.mrf.mxu0  ;;  %v749_v33 = vpop.f32.mrf.mxu1 }
 0x100   :  { %869 = vst.msk [vmem:[%s2906_s3 + $0x10] sm:$0xff] %vm866_vm2, %v2141_v30  ;;  %901 = vst.msk [vmem:[%s2906_s3 + $0x110] sm:$0xff] %vm866_vm2, %v2144_v31 }
 0x101   :  { %v622_v34 = vpop.f32.mrf.mxu0  ;;  %v750_v35 = vpop.f32.mrf.mxu1 }
 0x102   :  { %v2157_v36 = vadd.f32 %v2106_v15, %v622_v34  ;;  %v2160_v37 = vadd.f32 %v2106_v15, %v750_v35 }
 0x103   :  { %v624_v38 = vpop.f32.mrf.mxu0  ;;  %v752_v39 = vpop.f32.mrf.mxu1 }
 0x104   :  { %870 = vst.msk [vmem:[%s2906_s3 + $0x18] sm:$0xff] %vm866_vm2, %v2157_v36  ;;  %902 = vst.msk [vmem:[%s2906_s3 + $0x118] sm:$0xff] %vm866_vm2, %v2160_v37 }
 0x105   :  { %v627_v40 = vpop.f32.mrf.mxu0  ;;  %v755_v41 = vpop.f32.mrf.mxu1 }
 0x106   :  { %v2173_v42 = vadd.f32 %v2106_v15, %v627_v40  ;;  %v2176_v43 = vadd.f32 %v2106_v15, %v755_v41 }
 0x107   :  { %v629_v44 = vpop.f32.mrf.mxu0  ;;  %v757_v45 = vpop.f32.mrf.mxu1 }
 0x108   :  { %871 = vst.msk [vmem:[%s2906_s3 + $0x20] sm:$0xff] %vm866_vm2, %v2173_v42  ;;  %903 = vst.msk [vmem:[%s2906_s3 + $0x120] sm:$0xff] %vm866_vm2, %v2176_v43 }
 0x109   :  { %v630_v46 = vpop.f32.mrf.mxu0  ;;  %v758_v47 = vpop.f32.mrf.mxu1 }
 0x10a   :  { %v2189_v48 = vadd.f32 %v2106_v15, %v630_v46  ;;  %v2192_v49 = vadd.f32 %v2106_v15, %v758_v47 }
 0x10b   :  { %v632_v50 = vpop.f32.mrf.mxu0  ;;  %v760_v51 = vpop.f32.mrf.mxu1 }
 0x10c   :  { %872 = vst.msk [vmem:[%s2906_s3 + $0x28] sm:$0xff] %vm866_vm2, %v2189_v48  ;;  %904 = vst.msk [vmem:[%s2906_s3 + $0x128] sm:$0xff] %vm866_vm2, %v2192_v49 }
 0x10d   :  { %v635_v52 = vpop.f32.mrf.mxu0  ;;  %v763_v53 = vpop.f32.mrf.mxu1 }
 0x10e   :  { %v2205_v54 = vadd.f32 %v2106_v15, %v635_v52  ;;  %v2208_v55 = vadd.f32 %v2106_v15, %v763_v53 }
 0x10f   :  { %v637_v56 = vpop.f32.mrf.mxu0  ;;  %v765_v57 = vpop.f32.mrf.mxu1 }
 0x110   :  { %873 = vst.msk [vmem:[%s2906_s3 + $0x30] sm:$0xff] %vm866_vm2, %v2205_v54  ;;  %905 = vst.msk [vmem:[%s2906_s3 + $0x130] sm:$0xff] %vm866_vm2, %v2208_v55 }
 0x111   :  { %v638_v58 = vpop.f32.mrf.mxu0  ;;  %v766_v59 = vpop.f32.mrf.mxu1 }
 0x112   :  { %v2221_v60 = vadd.f32 %v2106_v15, %v638_v58  ;;  %v2224_v61 = vadd.f32 %v2106_v15, %v766_v59  ;;  %v1324_v59 = vmul.f32 %v2125_v24, %v2125_v24 }
 0x113   :  { %v640_v62 = vpop.f32.mrf.mxu0  ;;  %v768_v63 = vpop.f32.mrf.mxu1 }
 0x114   :  { %874 = vst.msk [vmem:[%s2906_s3 + $0x38] sm:$0xff] %vm866_vm2, %v2221_v60  ;;  %906 = vst.msk [vmem:[%s2906_s3 + $0x138] sm:$0xff] %vm866_vm2, %v2224_v61 }
 0x115   :  { %v643_v0 = vpop.f32.mrf.mxu0  ;;  %v771_v1 = vpop.f32.mrf.mxu1 }
 0x116   :  { %v2237_v2 = vadd.f32 %v2106_v15, %v643_v0  ;;  %v2240_v3 = vadd.f32 %v2106_v15, %v771_v1 }
 0x117   :  { %v645_v4 = vpop.f32.mrf.mxu0  ;;  %v773_v5 = vpop.f32.mrf.mxu1 }
 0x118   :  { %875 = vst.msk [vmem:[%s2906_s3 + $0x40] sm:$0xff] %vm866_vm2, %v2237_v2  ;;  %907 = vst.msk [vmem:[%s2906_s3 + $0x140] sm:$0xff] %vm866_vm2, %v2240_v3  ;;  %v1323_v4 = vmul.f32 %v2109_v18, %v2109_v18  ;;  %v1325_v5 = vmul.f32 %v2141_v30, %v2141_v30 }
 0x119   :  { %v646_v6 = vpop.f32.mrf.mxu0  ;;  %v774_v7 = vpop.f32.mrf.mxu1 }
 0x11a   :  { %v2253_v8 = vadd.f32 %v2106_v15, %v646_v6  ;;  %v2256_v9 = vadd.f32 %v2106_v15, %v774_v7 }
 0x11b   :  { %v648_v10 = vpop.f32.mrf.mxu0  ;;  %v776_v11 = vpop.f32.mrf.mxu1 }
 0x11c   :  { %876 = vst.msk [vmem:[%s2906_s3 + $0x48] sm:$0xff] %vm866_vm2, %v2253_v8  ;;  %908 = vst.msk [vmem:[%s2906_s3 + $0x148] sm:$0xff] %vm866_vm2, %v2256_v9  ;;  %v1191_v10 = vsel %vm866_vm2, %v2125_v24, 0.0  ;;  %v1388_v11 = vsel %vm866_vm2, %v1324_v59, 0.0  ;;  %v1326_v24 = vmul.f32 %v2157_v36, %v2157_v36 }
 0x11d   :  { %v651_v12 = vpop.f32.mrf.mxu0  ;;  %v779_v13 = vpop.f32.mrf.mxu1 }
 0x11e   :  { %v2269_v14 = vadd.f32 %v2106_v15, %v651_v12  ;;  %v2272_v16 = vadd.f32 %v2106_v15, %v779_v13 }
 0x11f   :  { %v653_v17 = vpop.f32.mrf.mxu0  ;;  %v781_v20 = vpop.f32.mrf.mxu1 }
 0x120   :  { %877 = vst.msk [vmem:[%s2906_s3 + $0x50] sm:$0xff] %vm866_vm2, %v2269_v14  ;;  %909 = vst.msk [vmem:[%s2906_s3 + $0x150] sm:$0xff] %vm866_vm2, %v2272_v16 }
 0x121   :  { %v654_v21 = vpop.f32.mrf.mxu0  ;;  %v782_v22 = vpop.f32.mrf.mxu1 }
 0x122   :  { %v2285_v23 = vadd.f32 %v2106_v15, %v654_v21  ;;  %v2288_v26 = vadd.f32 %v2106_v15, %v782_v22  ;;  %v1190_v21 = vsel %vm866_vm2, %v2109_v18, 0.0  ;;  %v1387_v22 = vsel %vm866_vm2, %v1323_v4, 0.0 }
 0x123   :  { %v656_v27 = vpop.f32.mrf.mxu0  ;;  %v784_v28 = vpop.f32.mrf.mxu1  ;;  %v1192_v18 = vadd.f32 %v1191_v10, %v1190_v21  ;;  %v1330_v21 = vmul.f32 %v2221_v60, %v2221_v60 }
 0x124   :  { %878 = vst.msk [vmem:[%s2906_s3 + $0x58] sm:$0xff] %vm866_vm2, %v2285_v23  ;;  %910 = vst.msk [vmem:[%s2906_s3 + $0x158] sm:$0xff] %vm866_vm2, %v2288_v26  ;;  %v1193_v27 = vsel %vm866_vm2, %v2141_v30, 0.0  ;;  %v1389_v28 = vadd.f32 %v1388_v11, %v1387_v22 }
 0x125   :  { %v659_v29 = vpop.f32.mrf.mxu0  ;;  %v787_v32 = vpop.f32.mrf.mxu1 }
 0x126   :  { %v2301_v33 = vadd.f32 %v2106_v15, %v659_v29  ;;  %v2304_v34 = vadd.f32 %v2106_v15, %v787_v32  ;;  %v1390_v29 = vsel %vm866_vm2, %v1325_v5, 0.0 }
 0x127   :  { %v661_v35 = vpop.f32.mrf.mxu0  ;;  %v789_v38 = vpop.f32.mrf.mxu1 }
 0x128   :  { %879 = vst.msk [vmem:[%s2906_s3 + $0x60] sm:$0xff] %vm866_vm2, %v2301_v33  ;;  %911 = vst.msk [vmem:[%s2906_s3 + $0x160] sm:$0xff] %vm866_vm2, %v2304_v34  ;;  %v1195_v35 = vsel %vm866_vm2, %v2157_v36, 0.0  ;;  %v1327_v38 = vmul.f32 %v2173_v42, %v2173_v42  ;;  %v1328_v36 = vmul.f32 %v2189_v48, %v2189_v48 }
 0x129   :  { %v662_v39 = vpop.f32.mrf.mxu0  ;;  %v790_v40 = vpop.f32.mrf.mxu1 }
 0x12a   :  { %v2317_v41 = vadd.f32 %v2106_v15, %v662_v39  ;;  %v2320_v44 = vadd.f32 %v2106_v15, %v790_v40 }
 0x12b   :  { %v664_v45 = vpop.f32.mrf.mxu0  ;;  %v792_v46 = vpop.f32.mrf.mxu1 }
 0x12c   :  { %880 = vst.msk [vmem:[%s2906_s3 + $0x68] sm:$0xff] %vm866_vm2, %v2317_v41  ;;  %912 = vst.msk [vmem:[%s2906_s3 + $0x168] sm:$0xff] %vm866_vm2, %v2320_v44  ;;  %v1194_v45 = vadd.f32 %v1193_v27, %v1192_v18 }
 0x12d   :  { %v667_v47 = vpop.f32.mrf.mxu0  ;;  %v795_v50 = vpop.f32.mrf.mxu1 }
 0x12e   :  { %v2333_v51 = vadd.f32 %v2106_v15, %v667_v47  ;;  %v2336_v52 = vadd.f32 %v2106_v15, %v795_v50  ;;  %v1391_v50 = vadd.f32 %v1390_v29, %v1389_v28  ;;  %v1203_v28 = vsel %vm866_vm2, %v2221_v60, 0.0 }
 0x12f   :  { %v669_v53 = vpop.f32.mrf.mxu0  ;;  %v797_v56 = vpop.f32.mrf.mxu1  ;;  %v1331_v29 = vmul.f32 %v2237_v2, %v2237_v2  ;;  %v1332_v60 = vmul.f32 %v2253_v8, %v2253_v8 }
 0x130   :  { %881 = vst.msk [vmem:[%s2906_s3 + $0x70] sm:$0xff] %vm866_vm2, %v2333_v51  ;;  %913 = vst.msk [vmem:[%s2906_s3 + $0x170] sm:$0xff] %vm866_vm2, %v2336_v52  ;;  %v1392_v53 = vsel %vm866_vm2, %v1326_v24, 0.0  ;;  %v1197_v56 = vsel %vm866_vm2, %v2173_v42, 0.0 }
 0x131   :  { %v670_v57 = vpop.f32.mrf.mxu0  ;;  %v798_v58 = vpop.f32.mrf.mxu1 }
 0x132   :  { %v2351_v62 = vadd.f32 %v2106_v15, %v670_v57  ;;  %v2354_v63 = vadd.f32 %v2106_v15, %v798_v58  ;;  %v1196_v57 = vadd.f32 %v1195_v35, %v1194_v45  ;;  %v1329_v58 = vmul.f32 %v2205_v54, %v2205_v54 }
 0x133   :  { %v672_v0 = vpop.f32.mrf.mxu0  ;;  %v800_v1 = vpop.f32.mrf.mxu1 }
 0x134   :  { %882 = vst.msk [vmem:[%s2906_s3 + $0x78] sm:$0xff] %vm866_vm2, %v2351_v62  ;;  %914 = vst.msk [vmem:[%s2906_s3 + $0x178] sm:$0xff] %vm866_vm2, %v2354_v63  ;;  %v1394_v0 = vsel %vm866_vm2, %v1327_v38, 0.0  ;;  %v1199_v1 = vsel %vm866_vm2, %v2189_v48, 0.0  ;;  %v1198_v10 = vadd.f32 %v1197_v56, %v1196_v57  ;;  %v1201_v48 = vsel %vm866_vm2, %v2205_v54, 0.0 }
 0x135   :  { %v675_v6 = vpop.f32.mrf.mxu0  ;;  %v803_v7 = vpop.f32.mrf.mxu1  ;;  %v1398_v24 = vsel %vm866_vm2, %v1329_v58, 0.0  ;;  %v1402_v58 = vsel %vm866_vm2, %v1331_v29, 0.0 }
 0x136   :  { %v2374_v12 = vadd.f32 %v2106_v15, %v675_v6  ;;  %v2377_v13 = vadd.f32 %v2106_v15, %v803_v7  ;;  %v1788_v6 = vmov 0.0   ;;  %v1393_v7 = vadd.f32 %v1392_v53, %v1391_v50 }
 0x137   :  { %v677_v17 = vpop.f32.mrf.mxu0  ;;  %v805_v20 = vpop.f32.mrf.mxu1  ;;  %1525 = vst.msk [vmem:[%s2907_s4] sm:$0x3] %vm1524_vm3, %v1788_v6  ;;  %v1200_v27 = vadd.f32 %v1199_v1, %v1198_v10  ;;  %v1205_v50 = vsel %vm866_vm2, %v2237_v2, 0.0  ;;  %v1333_v2 = vmul.f32 %v2269_v14, %v2269_v14 }
 0x138   :  { %883 = vst.msk [vmem:[%s2906_s3 + $0x80] sm:$0xff] %vm866_vm2, %v2374_v12  ;;  %915 = vst.msk [vmem:[%s2906_s3 + $0x180] sm:$0xff] %vm866_vm2, %v2377_v13  ;;  %v1396_v20 = vsel %vm866_vm2, %v1328_v36, 0.0  ;;  %v1395_v22 = vadd.f32 %v1394_v0, %v1393_v7 }
 0x139   :  { %v678_v30 = vpop.f32.mrf.mxu0  ;;  %v806_v32 = vpop.f32.mrf.mxu1  ;;  %v1202_v38 = vadd.f32 %v1201_v48, %v1200_v27  ;;  %v1211_v27 = vsel %vm866_vm2, %v2285_v23, 0.0 }
 0x13a   :  { %v2402_v39 = vadd.f32 %v2106_v15, %v678_v30  ;;  %v2405_v40 = vadd.f32 %v2106_v15, %v806_v32  ;;  %v1397_v35 = vadd.f32 %v1396_v20, %v1395_v22  ;;  %v1334_v20 = vmul.f32 %v2285_v23, %v2285_v23 }
 0x13b   :  { %v680_v46 = vpop.f32.mrf.mxu0  ;;  %v808_v47 = vpop.f32.mrf.mxu1  ;;  %v1204_v56 = vadd.f32 %v1203_v28, %v1202_v38  ;;  %v1336_v23 = vmul.f32 %v2317_v41, %v2317_v41 }
 0x13c   :  { %884 = vst.msk [vmem:[%s2906_s3 + $0x88] sm:$0xff] %vm866_vm2, %v2402_v39  ;;  %916 = vst.msk [vmem:[%s2906_s3 + $0x188] sm:$0xff] %vm866_vm2, %v2405_v40  ;;  %v1400_v47 = vsel %vm866_vm2, %v1330_v21, 0.0  ;;  %v1399_v53 = vadd.f32 %v1398_v24, %v1397_v35  ;;  %v1406_v21 = vsel %vm866_vm2, %v1333_v2, 0.0  ;;  %v1335_v24 = vmul.f32 %v2301_v33, %v2301_v33 }
 0x13d   :  { %v683_v42 = vpop.f32.mrf.mxu0  ;;  %v811_v59 = vpop.f32.mrf.mxu1  ;;  %v1206_v6 = vadd.f32 %v1205_v50, %v1204_v56  ;;  %v1215_v2 = vsel %vm866_vm2, %v2317_v41, 0.0 }
 0x13e   :  { %v2428_v4 = vadd.f32 %v2106_v15, %v683_v42  ;;  %v2431_v5 = vadd.f32 %v2106_v15, %v811_v59  ;;  %v1207_v42 = vsel %vm866_vm2, %v2253_v8, 0.0  ;;  %v1401_v1 = vadd.f32 %v1400_v47, %v1399_v53 }
 0x13f   :  { %v685_v11 = vpop.f32.mrf.mxu0  ;;  %v813_v17 = vpop.f32.mrf.mxu1  ;;  %v1208_v48 = vadd.f32 %v1207_v42, %v1206_v6  ;;  %v1410_v56 = vsel %vm866_vm2, %v1335_v24, 0.0 }
 0x140   :  { %885 = vst.msk [vmem:[%s2906_s3 + $0x90] sm:$0xff] %vm866_vm2, %v2428_v4  ;;  %917 = vst.msk [vmem:[%s2906_s3 + $0x190] sm:$0xff] %vm866_vm2, %v2431_v5  ;;  %v1404_v11 = vsel %vm866_vm2, %v1332_v60, 0.0  ;;  %v1209_v17 = vsel %vm866_vm2, %v2269_v14, 0.0  ;;  %v1403_v8 = vadd.f32 %v1402_v58, %v1401_v1 }
 0x141   :  { %v686_v54 = vpop.f32.mrf.mxu0  ;;  %v814_v18 = vpop.f32.mrf.mxu1  ;;  %v1210_v29 = vadd.f32 %v1209_v17, %v1208_v48  ;;  %v1219_v48 = vsel %vm866_vm2, %v2351_v62, 0.0 }
 0x142   :  { %v2458_v30 = vadd.f32 %v2106_v15, %v686_v54  ;;  %v2461_v32 = vadd.f32 %v2106_v15, %v814_v18  ;;  %v1405_v28 = vadd.f32 %v1404_v11, %v1403_v8  ;;  %v1338_v11 = vmul.f32 %v2351_v62, %v2351_v62 }
 0x143   :  { %v688_v45 = vpop.f32.mrf.mxu0  ;;  %v816_v46 = vpop.f32.mrf.mxu1  ;;  %v1212_v50 = vadd.f32 %v1211_v27, %v1210_v29  ;;  %v1340_v62 = vmul.f32 %v2402_v39, %v2402_v39 }
 0x144   :  { %886 = vst.msk [vmem:[%s2906_s3 + $0x98] sm:$0xff] %vm866_vm2, %v2458_v30  ;;  %918 = vst.msk [vmem:[%s2906_s3 + $0x198] sm:$0xff] %vm866_vm2, %v2461_v32  ;;  %v1408_v45 = vsel %vm866_vm2, %v1334_v20, 0.0  ;;  %v1213_v46 = vsel %vm866_vm2, %v2301_v33, 0.0  ;;  %v1407_v47 = vadd.f32 %v1406_v21, %v1405_v28  ;;  %v1337_v33 = vmul.f32 %v2333_v51, %v2333_v51 }
 0x145   :  { %v691_v36 = vpop.f32.mrf.mxu0  ;;  %v819_v57 = vpop.f32.mrf.mxu1  ;;  %v1214_v42 = vadd.f32 %v1213_v46, %v1212_v50  ;;  %v1339_v21 = vmul.f32 %v2374_v12, %v2374_v12 }
 0x146   :  { %v2484_v59 = vadd.f32 %v2106_v15, %v691_v36  ;;  %v2487_v0 = vadd.f32 %v2106_v15, %v819_v57  ;;  %v1409_v58 = vadd.f32 %v1408_v45, %v1407_v47  ;;  %v1414_v20 = vsel %vm866_vm2, %v1337_v33, 0.0 }
 0x147   :  { %v693_v7 = vpop.f32.mrf.mxu0  ;;  %v821_v10 = vpop.f32.mrf.mxu1  ;;  %v1216_v17 = vadd.f32 %v1215_v2, %v1214_v42  ;;  %v1418_v50 = vsel %vm866_vm2, %v1339_v21, 0.0  ;;  %v1223_v33 = vsel %vm866_vm2, %v2402_v39, 0.0 }
 0x148   :  { %887 = vst.msk [vmem:[%s2906_s3 + $0xa0] sm:$0xff] %vm866_vm2, %v2484_v59  ;;  %919 = vst.msk [vmem:[%s2906_s3 + $0x1a0] sm:$0xff] %vm866_vm2, %v2487_v0  ;;  %v1412_v7 = vsel %vm866_vm2, %v1336_v23, 0.0  ;;  %v1217_v10 = vsel %vm866_vm2, %v2333_v51, 0.0  ;;  %v1411_v41 = vadd.f32 %v1410_v56, %v1409_v58 }
 0x149   :  { %v694_v14 = vpop.f32.mrf.mxu0  ;;  %v822_v22 = vpop.f32.mrf.mxu1  ;;  %v1218_v24 = vadd.f32 %v1217_v10, %v1216_v17  ;;  %v1227_v17 = vsel %vm866_vm2, %v2458_v30, 0.0 }
 0x14a   :  { %v2510_v54 = vadd.f32 %v2106_v15, %v694_v14  ;;  %v2513_v18 = vadd.f32 %v2106_v15, %v822_v22  ;;  %v1413_v27 = vadd.f32 %v1412_v7, %v1411_v41  ;;  %v1342_v7 = vmul.f32 %v2458_v30, %v2458_v30 }
 0x14b   :  { %v696_v35 = vpop.f32.mrf.mxu0  ;;  %v824_v38 = vpop.f32.mrf.mxu1  ;;  %v1220_v46 = vadd.f32 %v1219_v48, %v1218_v24 }
 0x14c   :  { %888 = vst.msk [vmem:[%s2906_s3 + $0xa8] sm:$0xff] %vm866_vm2, %v2510_v54  ;;  %920 = vst.msk [vmem:[%s2906_s3 + $0x1a8] sm:$0xff] %vm866_vm2, %v2513_v18  ;;  %v1416_v35 = vsel %vm866_vm2, %v1338_v11, 0.0  ;;  %v1221_v38 = vsel %vm866_vm2, %v2374_v12, 0.0  ;;  %v1415_v45 = vadd.f32 %v1414_v20, %v1413_v27  ;;  %v1341_v12 = vmul.f32 %v2428_v4, %v2428_v4 }
 0x14d   :  { %v699_v60 = vpop.f32.mrf.mxu0  ;;  %v827_v53 = vpop.f32.mrf.mxu1  ;;  %v1222_v2 = vadd.f32 %v1221_v38, %v1220_v46  ;;  %v1343_v20 = vmul.f32 %v2484_v59, %v2484_v59  ;;  %v1344_v30 = vmul.f32 %v2510_v54, %v2510_v54 }
 0x14e   :  { %v2536_v36 = vadd.f32 %v2106_v15, %v699_v60  ;;  %v2539_v57 = vadd.f32 %v2106_v15, %v827_v53  ;;  %v1417_v56 = vadd.f32 %v1416_v35, %v1415_v45  ;;  %v1422_v11 = vsel %vm866_vm2, %v1341_v12, 0.0 }
 0x14f   :  { %v701_v1 = vpop.f32.mrf.mxu0  ;;  %v829_v6 = vpop.f32.mrf.mxu1  ;;  %v1224_v10 = vadd.f32 %v1223_v33, %v1222_v2  ;;  %v1426_v46 = vsel %vm866_vm2, %v1343_v20, 0.0  ;;  %v1231_v12 = vsel %vm866_vm2, %v2510_v54, 0.0 }
 0x150   :  { %889 = vst.msk [vmem:[%s2906_s3 + $0xb0] sm:$0xff] %vm866_vm2, %v2536_v36  ;;  %921 = vst.msk [vmem:[%s2906_s3 + $0x1b0] sm:$0xff] %vm866_vm2, %v2539_v57  ;;  %v1420_v1 = vsel %vm866_vm2, %v1340_v62, 0.0  ;;  %v1225_v6 = vsel %vm866_vm2, %v2428_v4, 0.0  ;;  %v1419_v39 = vadd.f32 %v1418_v50, %v1417_v56  ;;  %v1345_v62 = vmul.f32 %v2536_v36, %v2536_v36 }
 0x151   :  { %v702_v51 = vpop.f32.mrf.mxu0  ;;  %v830_v8 = vpop.f32.mrf.mxu1  ;;  %v1226_v21 = vadd.f32 %v1225_v6, %v1224_v10 }
 0x152   :  { %v2562_v14 = vadd.f32 %v2106_v15, %v702_v51  ;;  %v2565_v22 = vadd.f32 %v2106_v15, %v830_v8  ;;  %v1421_v48 = vadd.f32 %v1420_v1, %v1419_v39 }
 0x153   :  { %v704_v28 = vpop.f32.mrf.mxu0  ;;  %v832_v29 = vpop.f32.mrf.mxu1  ;;  %v1228_v38 = vadd.f32 %v1227_v17, %v1226_v21 }
 0x154   :  { %890 = vst.msk [vmem:[%s2906_s3 + $0xb8] sm:$0xff] %vm866_vm2, %v2562_v14  ;;  %922 = vst.msk [vmem:[%s2906_s3 + $0x1b8] sm:$0xff] %vm866_vm2, %v2565_v22  ;;  %v1424_v28 = vsel %vm866_vm2, %v1342_v7, 0.0  ;;  %v1229_v29 = vsel %vm866_vm2, %v2484_v59, 0.0  ;;  %v1423_v35 = vadd.f32 %v1422_v11, %v1421_v48  ;;  %v1346_v1 = vmul.f32 %v2562_v14, %v2562_v14 }
 0x155   :  { %v707_v23 = vpop.f32.mrf.mxu0  ;;  %v835_v47 = vpop.f32.mrf.mxu1  ;;  %v1230_v33 = vadd.f32 %v1229_v29, %v1228_v38  ;;  %v1430_v7 = vsel %vm866_vm2, %v1345_v62, 0.0  ;;  %v1235_v10 = vsel %vm866_vm2, %v2562_v14, 0.0 }
 0x156   :  { %v708_v60 = vadd.f32 %v2106_v15, %v707_v23  ;;  %v2589_v53 = vadd.f32 %v2106_v15, %v835_v47  ;;  %v1425_v50 = vadd.f32 %v1424_v28, %v1423_v35 }
 0x157   :  { %v709_v58 = vpop.f32.mrf.mxu0  ;;  %v837_v42 = vpop.f32.mrf.mxu1  ;;  %v1232_v6 = vadd.f32 %v1231_v12, %v1230_v33 }
 0x158   :  { %891 = vst.msk [vmem:[%s2906_s3 + $0xc0] sm:$0xff] %vm866_vm2, %v708_v60  ;;  %923 = vst.msk [vmem:[%s2906_s3 + $0x1c0] sm:$0xff] %vm866_vm2, %v2589_v53  ;;  %v1428_v58 = vsel %vm866_vm2, %v1344_v30, 0.0  ;;  %v1233_v42 = vsel %vm866_vm2, %v2536_v36, 0.0  ;;  %v1427_v54 = vadd.f32 %v1426_v46, %v1425_v50  ;;  %v1347_v11 = vmul.f32 %v708_v60, %v708_v60 }
 0x159   :  { %v710_v41 = vpop.f32.mrf.mxu0  ;;  %v838_v4 = vpop.f32.mrf.mxu1  ;;  %v1234_v20 = vadd.f32 %v1233_v42, %v1232_v6 }
 0x15a   :  { %v711_v51 = vadd.f32 %v2106_v15, %v710_v41  ;;  %v2612_v8 = vadd.f32 %v2106_v15, %v838_v4  ;;  %v1429_v17 = vadd.f32 %v1428_v58, %v1427_v54  ;;  %v1434_v62 = vsel %vm866_vm2, %v1347_v11, 0.0 }
 0x15b   :  { %v712_v27 = vpop.f32.mrf.mxu0  ;;  %v840_v24 = vpop.f32.mrf.mxu1  ;;  %v1236_v29 = vadd.f32 %v1235_v10, %v1234_v20 }
 0x15c   :  { %892 = vst.msk [vmem:[%s2906_s3 + $0xc8] sm:$0xff] %vm866_vm2, %v711_v51  ;;  %924 = vst.msk [vmem:[%s2906_s3 + $0x1c8] sm:$0xff] %vm866_vm2, %v2612_v8  ;;  %v1432_v27 = vsel %vm866_vm2, %v1346_v1, 0.0  ;;  %v1237_v24 = vsel %vm866_vm2, %v708_v60, 0.0  ;;  %v1348_v28 = vmul.f32 %v711_v51, %v711_v51  ;;  %v1431_v14 = vadd.f32 %v1430_v7, %v1429_v17 }
 0x15d   :  { %v715_v59 = vpop.f32.mrf.mxu0  ;;  %v843_v45 = vpop.f32.mrf.mxu1  ;;  %v1239_v60 = vsel %vm866_vm2, %v711_v51, 0.0  ;;  %v1238_v12 = vadd.f32 %v1237_v24, %v1236_v29 }
 0x15e   :  { %v716_v23 = vadd.f32 %v2106_v15, %v715_v59  ;;  %v2635_v47 = vadd.f32 %v2106_v15, %v843_v45  ;;  %v1433_v46 = vadd.f32 %v1432_v27, %v1431_v14 }
 0x15f   :  { %v717_v56 = vpop.f32.mrf.mxu0  ;;  %v845_v2 = vpop.f32.mrf.mxu1  ;;  %v1240_v42 = vadd.f32 %v1239_v60, %v1238_v12 }
 0x160   :  { %893 = vst.msk [vmem:[%s2906_s3 + $0xd0] sm:$0xff] %vm866_vm2, %v716_v23  ;;  %925 = vst.msk [vmem:[%s2906_s3 + $0x1d0] sm:$0xff] %vm866_vm2, %v2635_v47  ;;  %v1349_v30 = vmul.f32 %v716_v23, %v716_v23  ;;  %v1436_v56 = vsel %vm866_vm2, %v1348_v28, 0.0  ;;  %v1241_v2 = vsel %vm866_vm2, %v716_v23, 0.0  ;;  %v1435_v51 = vadd.f32 %v1434_v62, %v1433_v46 }
 0x161   :  { %v718_v39 = vpop.f32.mrf.mxu0  ;;  %v846_v36 = vpop.f32.mrf.mxu1  ;;  %v1242_v11 = vadd.f32 %v1241_v2, %v1240_v42 }
 0x162   :  { %v719_v41 = vadd.f32 %v2106_v15, %v718_v39  ;;  %v2656_v4 = vadd.f32 %v2106_v15, %v846_v36  ;;  %v1438_v1 = vsel %vm866_vm2, %v1349_v30, 0.0  ;;  %v1437_v10 = vadd.f32 %v1436_v56, %v1435_v51 }
 0x163   :  { %v720_v48 = vpop.f32.mrf.mxu0  ;;  %v848_v21 = vpop.f32.mrf.mxu1 }
 0x164   :  { %894 = vst.msk [vmem:[%s2906_s3 + $0xd8] sm:$0xff] %vm866_vm2, %v719_v41  ;;  %926 = vst.msk [vmem:[%s2906_s3 + $0x1d8] sm:$0xff] %vm866_vm2, %v2656_v4  ;;  %v1350_v58 = vmul.f32 %v719_v41, %v719_v41  ;;  %v1243_v23 = vsel %vm866_vm2, %v719_v41, 0.0  ;;  %v1439_v27 = vadd.f32 %v1438_v1, %v1437_v10  ;;  %v1355_v10 = vmul.f32 %v2112_v19, %v2112_v19 }
 0x165   :  { %v723_v35 = vpop.f32.mrf.mxu0  ;;  %v851_v38 = vpop.f32.mrf.mxu1  ;;  %v1244_v24 = vadd.f32 %v1243_v23, %v1242_v11 }
 0x166   :  { %v724_v59 = vadd.f32 %v2106_v15, %v723_v35  ;;  %v2673_v45 = vadd.f32 %v2106_v15, %v851_v38  ;;  %v1440_v48 = vsel %vm866_vm2, %v1350_v58, 0.0 }
 0x167   :  { %v725_v50 = vpop.f32.mrf.mxu0  ;;  %v853_v33 = vpop.f32.mrf.mxu1  ;;  %v1441_v62 = vadd.f32 %v1440_v48, %v1439_v27  ;;  %v1253_v48 = vsel %vm866_vm2, %v2112_v19, 0.0  ;;  %v1257_v19 = vsel %vm866_vm2, %v2144_v31, 0.0 }
 0x168   :  { %895 = vst.msk [vmem:[%s2906_s3 + $0xe0] sm:$0xff] %vm866_vm2, %v724_v59  ;;  %927 = vst.msk [vmem:[%s2906_s3 + $0x1e0] sm:$0xff] %vm866_vm2, %v2673_v45  ;;  %v1351_v7 = vmul.f32 %v724_v59, %v724_v59  ;;  %v1245_v21 = vsel %vm866_vm2, %v724_v59, 0.0 }
 0x169   :  { %v726_v54 = vpop.f32.mrf.mxu0  ;;  %v854_v6 = vpop.f32.mrf.mxu1  ;;  %v1246_v60 = vadd.f32 %v1245_v21, %v1244_v24  ;;  %v1356_v21 = vmul.f32 %v2128_v25, %v2128_v25 }
 0x16a   :  { %v727_v39 = vadd.f32 %v2106_v15, %v726_v54  ;;  %v2690_v36 = vadd.f32 %v2106_v15, %v854_v6  ;;  %v1442_v29 = vsel %vm866_vm2, %v1351_v7, 0.0 }
 0x16b   :  { %v728_v17 = vpop.f32.mrf.mxu0  ;;  %v856_v20 = vpop.f32.mrf.mxu1  ;;  %v1443_v56 = vadd.f32 %v1442_v29, %v1441_v62  ;;  %v1357_v29 = vmul.f32 %v2144_v31, %v2144_v31  ;;  %v1452_v62 = vsel %vm866_vm2, %v1356_v21, 0.0  ;;  %v1261_v31 = vsel %vm866_vm2, %v2176_v43, 0.0 }
 0x16c   :  { %896 = vst.msk [vmem:[%s2906_s3 + $0xe8] sm:$0xff] %vm866_vm2, %v727_v39  ;;  %v1352_v41 = vmul.f32 %v727_v39, %v727_v39  ;;  %928 = vst.msk [vmem:[%s2906_s3 + $0x1e8] sm:$0xff] %vm866_vm2, %v2690_v36  ;;  %v1247_v30 = vsel %vm866_vm2, %v727_v39, 0.0 }
 0x16d   :  { %v731_v28 = vpop.f32.mrf.mxu0  ;;  %v859_v14 = vpop.f32.mrf.mxu1  ;;  %v1248_v2 = vadd.f32 %v1247_v30, %v1246_v60  ;;  %v1358_v60 = vmul.f32 %v2160_v37, %v2160_v37 }
 0x16e   :  { %v732_v35 = vadd.f32 %v2106_v15, %v731_v28  ;;  %v2707_v38 = vadd.f32 %v2106_v15, %v859_v14  ;;  %v1444_v12 = vsel %vm866_vm2, %v1352_v41, 0.0  ;;  %v1450_v28 = vsel %vm866_vm2, %v1355_v10, 0.0 }
 0x16f   :  { %v733_v59 = vpop.f32.mrf.mxu0  ;;  %v861_v46 = vpop.f32.mrf.mxu1  ;;  %v1445_v6 = vadd.f32 %v1444_v12, %v1443_v56  ;;  %v1255_v14 = vsel %vm866_vm2, %v2128_v25, 0.0  ;;  %v1454_v12 = vsel %vm866_vm2, %v1357_v29, 0.0  ;;  %v1259_v25 = vsel %vm866_vm2, %v2160_v37, 0.0 }
 0x170   :  { %897 = vst.msk [vmem:[%s2906_s3 + $0xf0] sm:$0xff] %vm866_vm2, %v732_v35  ;;  %v1249_v50 = vsel %vm866_vm2, %v732_v35, 0.0  ;;  %v1353_v33 = vmul.f32 %v732_v35, %v732_v35  ;;  %929 = vst.msk [vmem:[%s2906_s3 + $0x1f0] sm:$0xff] %vm866_vm2, %v2707_v38  ;;  %v1263_v37 = vsel %vm866_vm2, %v2192_v49, 0.0  ;;  %v1362_v10 = vmul.f32 %v2224_v61, %v2224_v61 }
 0x171   :  { %v734_v58 = vpop.f32.mrf.mxu0  ;;  %v862_v51 = vpop.f32.mrf.mxu1  ;;  %v1250_v23 = vadd.f32 %v1249_v50, %v1248_v2  ;;  %v1359_v50 = vmul.f32 %v2176_v43, %v2176_v43  ;;  %v1456_v2 = vsel %vm866_vm2, %v1358_v60, 0.0  ;;  %v1265_v43 = vsel %vm866_vm2, %v2208_v55, 0.0 }
 0x172   :  { %v1446_v42 = vsel %vm866_vm2, %v1353_v33, 0.0  ;;  %v735_v1 = vadd.f32 %v2106_v15, %v734_v58  ;;  %v2723_v54 = vadd.f32 %v2106_v15, %v862_v51  ;;  %v1360_v58 = vmul.f32 %v2192_v49, %v2192_v49 }
 0x173   :  { %v736_v7 = vpop.f32.mrf.mxu0  ;;  %v864_v39 = vpop.f32.mrf.mxu1  ;;  %v1447_v15 = vadd.f32 %v1446_v42, %v1445_v6  ;;  %v1361_v6 = vmul.f32 %v2208_v55, %v2208_v55  ;;  %v1267_v49 = vsel %vm866_vm2, %v2224_v61, 0.0  ;;  %v1269_v55 = vsel %vm866_vm2, %v2240_v3, 0.0 }
 0x174   :  { %898 = vst.msk [vmem:[%s2906_s3 + $0xf8] sm:$0xff] %vm866_vm2, %v735_v1  ;;  %v1251_v11 = vsel %vm866_vm2, %v735_v1, 0.0  ;;  %v1354_v17 = vmul.f32 %v735_v1, %v735_v1  ;;  %930 = vst.msk [vmem:[%s2906_s3 + $0x1f8] sm:$0xff] %vm866_vm2, %v2723_v54  ;;  %v1458_v1 = vsel %vm866_vm2, %v1359_v50, 0.0  ;;  %v1460_v39 = vsel %vm866_vm2, %v1360_v58, 0.0 }
 0x175   :  { %v1252_v20 = vadd.f32 %v1251_v11, %v1250_v23  ;;  %v1271_v61 = vsel %vm866_vm2, %v2256_v9, 0.0  ;;  %v1365_v29 = vmul.f32 %v2272_v16, %v2272_v16 }
 0x176   :  { %v1448_v41 = vsel %vm866_vm2, %v1354_v17, 0.0 }
 0x177   :  { %v1254_v27 = vadd.f32 %v1253_v48, %v1252_v20  ;;  %v1449_v24 = vadd.f32 %v1448_v41, %v1447_v15  ;;  %v1462_v15 = vsel %vm866_vm2, %v1361_v6, 0.0  ;;  %v1363_v20 = vmul.f32 %v2240_v3, %v2240_v3 }
 0x178   :  { %v1464_v41 = vsel %vm866_vm2, %v1362_v10, 0.0  ;;  %v1273_v3 = vsel %vm866_vm2, %v2272_v16, 0.0  ;;  %v1277_v16 = vsel %vm866_vm2, %v2304_v34, 0.0  ;;  %v1370_v6 = vmul.f32 %v2354_v63, %v2354_v63 }
 0x179   :  { %v1256_v30 = vadd.f32 %v1255_v14, %v1254_v27  ;;  %v1451_v35 = vadd.f32 %v1450_v28, %v1449_v24  ;;  %v1364_v27 = vmul.f32 %v2256_v9, %v2256_v9  ;;  %v1466_v14 = vsel %vm866_vm2, %v1363_v20, 0.0 }
 0x17a   :  { %v1275_v9 = vsel %vm866_vm2, %v2288_v26, 0.0 }
 0x17b   :  { %v1258_v59 = vadd.f32 %v1257_v19, %v1256_v30  ;;  %v1453_v46 = vadd.f32 %v1452_v62, %v1451_v35  ;;  %v1468_v62 = vsel %vm866_vm2, %v1364_v27, 0.0  ;;  %v1366_v19 = vmul.f32 %v2288_v26, %v2288_v26 }
 0x17c   :  { %v1279_v26 = vsel %vm866_vm2, %v2320_v44, 0.0 }
 0x17d   :  { %v1260_v33 = vadd.f32 %v1259_v25, %v1258_v59  ;;  %v1455_v56 = vadd.f32 %v1454_v12, %v1453_v46  ;;  %v1470_v46 = vsel %vm866_vm2, %v1365_v29, 0.0  ;;  %v1367_v12 = vmul.f32 %v2304_v34, %v2304_v34 }
 0x17e   :  { %v1281_v34 = vsel %vm866_vm2, %v2336_v52, 0.0  ;;  %v1375_v29 = vmul.f32 %v2487_v0, %v2487_v0 }
 0x17f   :  { %v1262_v51 = vadd.f32 %v1261_v31, %v1260_v33  ;;  %v1457_v42 = vadd.f32 %v1456_v2, %v1455_v56  ;;  %v1472_v33 = vsel %vm866_vm2, %v1366_v19, 0.0  ;;  %v1368_v56 = vmul.f32 %v2320_v44, %v2320_v44 }
 0x180   :  { %v1474_v58 = vsel %vm866_vm2, %v1367_v12, 0.0  ;;  %v1283_v44 = vsel %vm866_vm2, %v2354_v63, 0.0  ;;  %v1287_v63 = vsel %vm866_vm2, %v2405_v40, 0.0 }
 0x181   :  { %v1264_v23 = vadd.f32 %v1263_v37, %v1262_v51  ;;  %v1459_v7 = vadd.f32 %v1458_v1, %v1457_v42  ;;  %v1369_v51 = vmul.f32 %v2336_v52, %v2336_v52  ;;  %v1476_v37 = vsel %vm866_vm2, %v1368_v56, 0.0 }
 0x182   :  { %v1285_v52 = vsel %vm866_vm2, %v2377_v13, 0.0 }
 0x183   :  { %v1266_v11 = vadd.f32 %v1265_v43, %v1264_v23  ;;  %v1461_v17 = vadd.f32 %v1460_v39, %v1459_v7  ;;  %v1478_v39 = vsel %vm866_vm2, %v1369_v51, 0.0  ;;  %v1371_v43 = vmul.f32 %v2377_v13, %v2377_v13 }
 0x184   :  { %v1289_v13 = vsel %vm866_vm2, %v2431_v5, 0.0  ;;  %v1380_v51 = vmul.f32 %v2612_v8, %v2612_v8 }
 0x185   :  { %v1268_v48 = vadd.f32 %v1267_v49, %v1266_v11  ;;  %v1463_v21 = vadd.f32 %v1462_v15, %v1461_v17  ;;  %v1480_v17 = vsel %vm866_vm2, %v1370_v6, 0.0  ;;  %v1372_v15 = vmul.f32 %v2405_v40, %v2405_v40 }
 0x186   :  { %v1291_v40 = vsel %vm866_vm2, %v2461_v32, 0.0 }
 0x187   :  { %v1465_v24 = vadd.f32 %v1464_v41, %v1463_v21  ;;  %v1270_v28 = vadd.f32 %v1269_v55, %v1268_v48  ;;  %v1482_v48 = vsel %vm866_vm2, %v1371_v43, 0.0  ;;  %v1373_v21 = vmul.f32 %v2431_v5, %v2431_v5 }
 0x188   :  { %v1484_v27 = vsel %vm866_vm2, %v1372_v15, 0.0  ;;  %v1293_v5 = vsel %vm866_vm2, %v2487_v0, 0.0  ;;  %v1297_v0 = vsel %vm866_vm2, %v2539_v57, 0.0 }
 0x189   :  { %v1272_v30 = vadd.f32 %v1271_v61, %v1270_v28  ;;  %v1467_v35 = vadd.f32 %v1466_v14, %v1465_v24  ;;  %v1374_v24 = vmul.f32 %v2461_v32, %v2461_v32  ;;  %v1486_v61 = vsel %vm866_vm2, %v1373_v21, 0.0 }
 0x18a   :  { %v1295_v32 = vsel %vm866_vm2, %v2513_v18, 0.0  ;;  %v1385_v21 = vmul.f32 %v2707_v38, %v2707_v38 }
 0x18b   :  { %v1274_v60 = vadd.f32 %v1273_v3, %v1272_v30  ;;  %v1469_v59 = vadd.f32 %v1468_v62, %v1467_v35  ;;  %v1488_v62 = vsel %vm866_vm2, %v1374_v24, 0.0  ;;  %v1376_v3 = vmul.f32 %v2513_v18, %v2513_v18 }
 0x18c   :  { %v1299_v18 = vsel %vm866_vm2, %v2565_v22, 0.0 }
 0x18d   :  { %v1276_v25 = vadd.f32 %v1275_v9, %v1274_v60  ;;  %v1471_v50 = vadd.f32 %v1470_v46, %v1469_v59  ;;  %v1490_v59 = vsel %vm866_vm2, %v1375_v29, 0.0  ;;  %v1377_v46 = vmul.f32 %v2539_v57, %v2539_v57 }
 0x18e   :  { %v1301_v57 = vsel %vm866_vm2, %v2589_v53, 0.0 }
 0x18f   :  { %v1278_v2 = vadd.f32 %v1277_v16, %v1276_v25  ;;  %v1473_v31 = vadd.f32 %v1472_v33, %v1471_v50  ;;  %v1492_v25 = vsel %vm866_vm2, %v1376_v3, 0.0  ;;  %v1378_v50 = vmul.f32 %v2565_v22, %v2565_v22 }
 0x190   :  { %v1494_v56 = vsel %vm866_vm2, %v1377_v46, 0.0  ;;  %v1303_v22 = vsel %vm866_vm2, %v2612_v8, 0.0  ;;  %v1307_v8 = vsel %vm866_vm2, %v2656_v4, 0.0 }
 0x191   :  { %v1280_v42 = vadd.f32 %v1279_v26, %v1278_v2  ;;  %v1475_v1 = vadd.f32 %v1474_v58, %v1473_v31  ;;  %v1379_v2 = vmul.f32 %v2589_v53, %v2589_v53  ;;  %v1496_v26 = vsel %vm866_vm2, %v1378_v50, 0.0 }
 0x192   :  { %v1305_v53 = vsel %vm866_vm2, %v2635_v47, 0.0 }
 0x193   :  { %v1282_v23 = vadd.f32 %v1281_v34, %v1280_v42  ;;  %v1477_v7 = vadd.f32 %v1476_v37, %v1475_v1  ;;  %v1498_v37 = vsel %vm866_vm2, %v1379_v2, 0.0  ;;  %v1381_v34 = vmul.f32 %v2635_v47, %v2635_v47 }
 0x194   :  { %v1309_v47 = vsel %vm866_vm2, %v2673_v45, 0.0 }
 0x195   :  { %v1284_v10 = vadd.f32 %v1283_v44, %v1282_v23  ;;  %v1479_v11 = vadd.f32 %v1478_v39, %v1477_v7  ;;  %v1500_v7 = vsel %vm866_vm2, %v1380_v51, 0.0  ;;  %v1382_v39 = vmul.f32 %v2656_v4, %v2656_v4 }
 0x196   :  { %v1311_v4 = vsel %vm866_vm2, %v2690_v36, 0.0 }
 0x197   :  { %v1286_v49 = vadd.f32 %v1285_v52, %v1284_v10  ;;  %v1481_v20 = vadd.f32 %v1480_v17, %v1479_v11  ;;  %v1502_v10 = vsel %vm866_vm2, %v1381_v34, 0.0  ;;  %v1383_v11 = vmul.f32 %v2673_v45, %v2673_v45 }
 0x198   :  { %v1504_v15 = vsel %vm866_vm2, %v1382_v39, 0.0  ;;  %v1313_v45 = vsel %vm866_vm2, %v2707_v38, 0.0 }
 0x199   :  { %v1288_v41 = vadd.f32 %v1287_v63, %v1286_v49  ;;  %v1483_v55 = vadd.f32 %v1482_v48, %v1481_v20  ;;  %v1384_v49 = vmul.f32 %v2690_v36, %v2690_v36  ;;  %v1506_v63 = vsel %vm866_vm2, %v1383_v11, 0.0 }
 0x19a   :  { %v1315_v36 = vsel %vm866_vm2, %v2723_v54, 0.0 }
 0x19b   :  { %v1485_v28 = vadd.f32 %v1484_v27, %v1483_v55  ;;  %v1290_v14 = vadd.f32 %v1289_v13, %v1288_v41  ;;  %v1508_v27 = vsel %vm866_vm2, %v1384_v49, 0.0  ;;  %v1386_v13 = vmul.f32 %v2723_v54, %v2723_v54  ;;  %v1526_v54 = vld [vmem:[%s2907_s4] sm:$0x3] }
 0x19d   :  { %v1487_v30 = vadd.f32 %v1486_v61, %v1485_v28  ;;  %v1292_v35 = vadd.f32 %v1291_v40, %v1290_v14  ;;  %v1510_v14 = vsel %vm866_vm2, %v1385_v21, 0.0  ;;  %v1512_v29 = vsel %vm866_vm2, %v1386_v13, 0.0 }
 0x19f   :  { %v1489_v19 = vadd.f32 %v1488_v62, %v1487_v30  ;;  %v1294_v60 = vadd.f32 %v1293_v5, %v1292_v35 }
 0x1a1   :  { %v1491_v9 = vadd.f32 %v1490_v59, %v1489_v19  ;;  %v1296_v12 = vadd.f32 %v1295_v32, %v1294_v60 }
 0x1a3   :  { %v1493_v33 = vadd.f32 %v1492_v25, %v1491_v9  ;;  %v1298_v16 = vadd.f32 %v1297_v0, %v1296_v12 }
 0x1a5   :  { %v1495_v31 = vadd.f32 %v1494_v56, %v1493_v33  ;;  %v1300_v58 = vadd.f32 %v1299_v18, %v1298_v16 }
 0x1a7   :  { %v1497_v42 = vadd.f32 %v1496_v26, %v1495_v31  ;;  %v1302_v1 = vadd.f32 %v1301_v57, %v1300_v58 }
 0x1a9   :  { %v1499_v6 = vadd.f32 %v1498_v37, %v1497_v42  ;;  %v1304_v23 = vadd.f32 %v1303_v22, %v1302_v1 }
 0x1ab   :  { %v1501_v44 = vadd.f32 %v1500_v7, %v1499_v6  ;;  %v1306_v43 = vadd.f32 %v1305_v53, %v1304_v23 }
 0x1ad   :  { %v1503_v17 = vadd.f32 %v1502_v10, %v1501_v44  ;;  %v1308_v52 = vadd.f32 %v1307_v8, %v1306_v43 }
 0x1af   :  { %v1505_v20 = vadd.f32 %v1504_v15, %v1503_v17  ;;  %v1310_v48 = vadd.f32 %v1309_v47, %v1308_v52 }
 0x1b1   :  { %v1507_v41 = vadd.f32 %v1506_v63, %v1505_v20  ;;  %v1312_v55 = vadd.f32 %v1311_v4, %v1310_v48 }
 0x1b3   :  { %v1509_v24 = vadd.f32 %v1508_v27, %v1507_v41  ;;  %v1314_v28 = vadd.f32 %v1313_v45, %v1312_v55 }
 0x1b5   :  { %v1511_v61 = vadd.f32 %v1510_v14, %v1509_v24  ;;  %v1316_v40 = vadd.f32 %v1315_v36, %v1314_v28 }
 0x1b7   :  { %v1317_v30 = vrot.slane %v1316_v40, 4  ;;  %v1513_v35 = vadd.f32 %v1512_v29, %v1511_v61 }
 0x1b9   :  { %v1318_v62 = vadd.f32 %v1317_v30, %v1316_v40  ;;  %v1514_v5 = vrot.slane %v1513_v35, 4 }
 0x1bb   :  { %v1319_v3 = vrot.slane %v1318_v62, 2  ;;  %v1515_v38 = vadd.f32 %v1514_v5, %v1513_v35 }
 0x1bd   :  { %v1320_v19 = vadd.f32 %v1319_v3, %v1318_v62  ;;  %v1516_v60 = vrot.slane %v1515_v38, 2 }
 0x1bf   :  { %v1321_v59 = vrot.slane %v1320_v19, 1  ;;  %v1517_v32 = vadd.f32 %v1516_v60, %v1515_v38 }
 0x1c1   :  { %v1518_v46 = vrot.slane %v1517_v32, 1  ;;  %v1322_v9 = vadd.f32 %v1321_v59, %v1320_v19 }
 0x1c3   :  { %v1519_v12 = vadd.f32 %v1518_v46, %v1517_v32 }
 0x1c5   :  { %v1528_v25 = vsel %vm1527_vm4, %v1322_v9, %v1519_v12 }
 0x1c6   :  { %v1529_v0 = vadd.f32 %v1528_v25, %v1526_v54 }
 0x1c8   :  { %1531 = vst.msk [vmem:[%s2907_s4] sm:$0x3] %vm1524_vm3, %v1529_v0 }

// kernel: discriminator_forward.10
= control target key start
LH: loop header
LB: loop body
LE: loop exit
PB: predicated region body
PF: predicated region fallthrough
CT: control target
= control target key end

     0   :  { %v88_v0 = vlaneseq  ;;  %vm560_vm0 = vcmask 130048   ;;  %s1769_s1 = inlined_call_operand.vmem [shape: f32[2,16], index: 1, kind: input, shape index: {}]   ;;  %s1770_s0 = inlined_call_operand.vmem [shape: f32[512,16], index: 0, kind: input, shape index: {}]   ;;  %s1771_s2 = inlined_call_operand.vmem [shape: f32[1,16], index: 2, kind: input, shape index: {}]   ;;  %s1772_s3 = inlined_call_operand.vmem [shape: f32[1,16], index: 3, kind: input, shape index: {}]   ;;  %s1773_s4 = inlined_call_operand.vmem [shape: f32[512,16], index: 4, kind: output, shape index: {}]  }
   0x1   :  { %v81_v1 = vld [vmem:[%s1769_s1] sm:$0x3]  ;;  %v672_v8 = vld [vmem:[%s1770_s0 + $0x8] sm:$0xff]  ;;  %v679_v10 = vld [vmem:[%s1770_s0 + $0x10] sm:$0xff] }
   0x2   :  { %v82_v2 = vmul.f32 0.001953125, %v81_v1  ;;  %v661_v3 = vshrl.u32 %v88_v0, 7  ;;  %v667_v6 = vld [vmem:[%s1770_s0] sm:$0xff]  ;;  %v684_v11 = vld [vmem:[%s1770_s0 + $0x18] sm:$0xff]  ;;  %v694_v14 = vld [vmem:[%s1770_s0 + $0x28] sm:$0xff] }
   0x3   :  { %v689_v12 = vld [vmem:[%s1770_s0 + $0x20] sm:$0xff]  ;;  %v699_v15 = vld [vmem:[%s1770_s0 + $0x30] sm:$0xff]  ;;  %v704_v16 = vld [vmem:[%s1770_s0 + $0x38] sm:$0xff] }
   0x4   :  { %v83_v4 = vmul.f32 %v82_v2, %v82_v2  ;;  %v90_v5 = vsub.s32 0, %v661_v3  ;;  %v709_v17 = vld [vmem:[%s1770_s0 + $0x40] sm:$0xff]  ;;  %v714_v18 = vld [vmem:[%s1770_s0 + $0x48] sm:$0xff]  ;;  %v719_v19 = vld [vmem:[%s1770_s0 + $0x50] sm:$0xff]  ;;  %v1804_v26 = vsub.s32 1, %v661_v3 }
   0x5   :  { %v724_v20 = vld [vmem:[%s1770_s0 + $0x58] sm:$0xff]  ;;  %v729_v22 = vld [vmem:[%s1770_s0 + $0x60] sm:$0xff]  ;;  %v734_v23 = vld [vmem:[%s1770_s0 + $0x68] sm:$0xff] }
   0x6   :  { %v85_v7 = vrot.slane %v83_v4, 7  ;;  %v674_v9 = vrot.slane %v82_v2, %v90_v5  ;;  %v739_v24 = vld [vmem:[%s1770_s0 + $0x70] sm:$0xff]  ;;  %v749_v28 = vld [vmem:[%s1770_s0 + $0x78] sm:$0xff]  ;;  %v754_v29 = vld [vmem:[%s1770_s0 + $0x80] sm:$0xff] }
   0x7   :  { %v759_v30 = vld [vmem:[%s1770_s0 + $0x88] sm:$0xff]  ;;  %v770_v34 = vld [vmem:[%s1770_s0 + $0x90] sm:$0xff]  ;;  %v775_v35 = vld [vmem:[%s1770_s0 + $0x98] sm:$0xff] }
   0x8   :  { %v87_v13 = vsub.f32 %v82_v2, %v85_v7  ;;  %v780_v36 = vld [vmem:[%s1770_s0 + $0xa0] sm:$0xff]  ;;  %v793_v41 = vld [vmem:[%s1770_s0 + $0xa8] sm:$0xff]  ;;  %v798_v42 = vld [vmem:[%s1770_s0 + $0xb0] sm:$0xff]  ;;  %v1807_v3 = vsub.f32 %v679_v10, %v674_v9  ;;  %v1810_v10 = vsub.f32 %v694_v14, %v674_v9 }
   0x9   :  { %v803_v43 = vld [vmem:[%s1770_s0 + $0xb8] sm:$0xff]  ;;  %v816_v48 = vld [vmem:[%s1770_s0 + $0xc0] sm:$0xff]  ;;  %v821_v49 = vld [vmem:[%s1770_s0 + $0xc8] sm:$0xff] }
   0xa   :  { %v156_v21 = vadd.f32 1e-05, %v87_v13  ;;  %v826_v50 = vld [vmem:[%s1770_s0 + $0xd0] sm:$0xff]  ;;  %v839_v55 = vld [vmem:[%s1770_s0 + $0xd8] sm:$0xff]  ;;  %v844_v56 = vld [vmem:[%s1770_s0 + $0xe0] sm:$0xff] }
   0xb   :  { %v849_v57 = vld [vmem:[%s1770_s0 + $0xe8] sm:$0xff]  ;;  %v862_v62 = vld [vmem:[%s1770_s0 + $0xf0] sm:$0xff]  ;;  %v867_v63 = vld [vmem:[%s1770_s0 + $0xf8] sm:$0xff] }
   0xc   :  { %631 = vrsqrt.f32 %v156_v21  ;;  %v872_v0 = vld [vmem:[%s1770_s0 + $0x100] sm:$0xff]  ;;  %v885_v7 = vld [vmem:[%s1770_s0 + $0x168] sm:$0xff]  ;;  %v890_v13 = vld [vmem:[%s1770_s0 + $0x170] sm:$0xff] }
   0xd   :  { %v895_v21 = vld [vmem:[%s1770_s0 + $0x178] sm:$0xff]  ;;  %v908_v61 = vld [vmem:[%s1770_s0 + $0x180] sm:$0xff]  ;;  %v913_v60 = vld [vmem:[%s1770_s0 + $0x188] sm:$0xff] }
   0xe   :  { %1789 = vst [vmem:[#allocation2_spill] sm:$0xff] %v913_v60  ;;  %v918_v5 = vld [vmem:[%s1770_s0 + $0x190] sm:$0xff]  ;;  %v931_v58 = vld [vmem:[%s1770_s0 + $0x108] sm:$0xff]  ;;  %v936_v54 = vld [vmem:[%s1770_s0 + $0x198] sm:$0xff] }
   0xf   :  { %1790 = vst [vmem:[#allocation3_spill] sm:$0xff] %v918_v5  ;;  %1791 = vst [vmem:[#allocation4_spill] sm:$0xff] %v936_v54  ;;  %v941_v1 = vld [vmem:[%s1770_s0 + $0x1a0] sm:$0xff]  ;;  %v946_v4 = vld [vmem:[%s1770_s0 + $0x1a8] sm:$0xff]  ;;  %v1806_v54 = vsub.f32 %v672_v8, %v674_v9  ;;  %v1809_v8 = vsub.f32 %v689_v12, %v674_v9 }
  0x10   :  { %1792 = vst [vmem:[#allocation5_spill] sm:$0xff] %v941_v1  ;;  %1793 = vst [vmem:[#allocation6_spill] sm:$0xff] %v946_v4  ;;  %v951_v59 = vld [vmem:[%s1770_s0 + $0x110] sm:$0xff]  ;;  %v956_v2 = vld [vmem:[%s1770_s0 + $0x118] sm:$0xff] }
  0x11   :  { %v961_v53 = vld [vmem:[%s1770_s0 + $0x120] sm:$0xff]  ;;  %v966_v52 = vld [vmem:[%s1770_s0 + $0x128] sm:$0xff]  ;;  %v979_v44 = vld [vmem:[%s1770_s0 + $0x1b0] sm:$0xff] }
  0x12   :  { %1794 = vst [vmem:[#allocation7_spill] sm:$0xff] %v979_v44  ;;  %v984_v40 = vld [vmem:[%s1770_s0 + $0x1b8] sm:$0xff]  ;;  %v989_v47 = vld [vmem:[%s1770_s0 + $0x1c0] sm:$0xff]  ;;  %v994_v46 = vld [vmem:[%s1770_s0 + $0x130] sm:$0xff] }
  0x13   :  { %1795 = vst [vmem:[#allocation8_spill] sm:$0xff] %v984_v40  ;;  %1796 = vst [vmem:[#allocation9_spill] sm:$0xff] %v989_v47  ;;  %v999_v45 = vld [vmem:[%s1770_s0 + $0x138] sm:$0xff]  ;;  %v1012_v33 = vld [vmem:[%s1770_s0 + $0x1c8] sm:$0xff] }
  0x14   :  { %1797 = vst [vmem:[#allocation10_spill] sm:$0xff] %v1012_v33  ;;  %v1017_v32 = vld [vmem:[%s1770_s0 + $0x1d0] sm:$0xff]  ;;  %v1022_v39 = vld [vmem:[%s1770_s0 + $0x1d8] sm:$0xff]  ;;  %v1035_v27 = vld [vmem:[%s1770_s0 + $0x1e0] sm:$0xff]  ;;  %v1805_v33 = vsub.f32 %v667_v6, %v674_v9 }
  0x15   :  { %1798 = vst [vmem:[#allocation11_spill] sm:$0xff] %v1017_v32  ;;  %1799 = vst [vmem:[#allocation12_spill] sm:$0xff] %v1022_v39  ;;  %v1040_v25 = vld [vmem:[%s1770_s0 + $0x1e8] sm:$0xff]  ;;  %v1045_v37 = vld [vmem:[%s1770_s0 + $0x1f0] sm:$0xff] }
  0x16   :  { %1800 = vst [vmem:[#allocation13_spill] sm:$0xff] %v1035_v27  ;;  %1801 = vst [vmem:[#allocation14_spill] sm:$0xff] %v1040_v25  ;;  %v1050_v51 = vld [vmem:[%s1770_s0 + $0x140] sm:$0xff]  ;;  %v1055_v31 = vld [vmem:[%s1770_s0 + $0x148] sm:$0xff] }
  0x17   :  { %1802 = vst [vmem:[#allocation15_spill] sm:$0xff] %v1045_v37  ;;  %v1068_v44 = vld [vmem:[%s1770_s0 + $0x1f8] sm:$0xff]  ;;  %v1075_v38 = vld [vmem:[%s1770_s0 + $0x150] sm:$0xff]  ;;  %v1085_v40 = vld [vmem:[%s1770_s0 + $0x160] sm:$0xff] }
  0x18   :  { %1803 = vst [vmem:[#allocation16_spill] sm:$0xff] %v1068_v44  ;;  %v1080_v47 = vld [vmem:[%s1770_s0 + $0x158] sm:$0xff]  ;;  %v1114_v1 = vld [vmem:[%s1771_s2] ss:$0 sm:$0xff] }
  0x19   :  { %v632_v39 = vpop.eup %631  ;;  %v1143_v6 = vld [vmem:[%s1772_s3] ss:$0 sm:$0xff] }
  0x1a   :  { %v1103_v25 = vrot.slane %v632_v39, %v1804_v26  ;;  %v1808_v39 = vsub.f32 %v684_v11, %v674_v9  ;;  %v1811_v11 = vsub.f32 %v699_v15, %v674_v9 }
  0x1c   :  { %v162_v27 = vmul.f32 %v1103_v25, %v1805_v33  ;;  %v163_v32 = vmul.f32 %v1103_v25, %v1806_v54  ;;  %v164_v26 = vmul.f32 %v1103_v25, %v1807_v3  ;;  %v165_v4 = vmul.f32 %v1103_v25, %v1808_v39 }
  0x1d   :  { %v166_v33 = vmul.f32 %v1103_v25, %v1809_v8  ;;  %v167_v54 = vmul.f32 %v1103_v25, %v1810_v10  ;;  %v168_v3 = vmul.f32 %v1103_v25, %v1811_v11  ;;  %v1812_v39 = vsub.f32 %v704_v16, %v674_v9 }
  0x1e   :  { %v233_v37 = vmul.f32 %v1114_v1, %v162_v27  ;;  %v234_v12 = vmul.f32 %v1114_v1, %v163_v32  ;;  %v235_v8 = vmul.f32 %v1114_v1, %v164_v26  ;;  %v236_v14 = vmul.f32 %v1114_v1, %v165_v4 }
  0x1f   :  { %v169_v44 = vmul.f32 %v1103_v25, %v1812_v39  ;;  %v237_v10 = vmul.f32 %v1114_v1, %v166_v33  ;;  %v238_v5 = vmul.f32 %v1114_v1, %v167_v54  ;;  %v239_v15 = vmul.f32 %v1114_v1, %v168_v3 }
  0x20   :  { %v304_v16 = vadd.f32 %v1143_v6, %v233_v37  ;;  %v305_v39 = vadd.f32 %v1143_v6, %v234_v12  ;;  %v306_v27 = vadd.f32 %v1143_v6, %v235_v8  ;;  %v307_v32 = vadd.f32 %v1143_v6, %v236_v14 }
  0x21   :  { %v240_v11 = vmul.f32 %v1114_v1, %v169_v44  ;;  %v308_v26 = vadd.f32 %v1143_v6, %v237_v10  ;;  %v309_v4 = vadd.f32 %v1143_v6, %v238_v5  ;;  %v310_v33 = vadd.f32 %v1143_v6, %v239_v15 }
  0x22   :  { %vm368_vm1 = vcmp.gt.f32.partialorder %v304_v16, 0.0  ;;  %v432_v3 = vmul.f32 0.2, %v304_v16  ;;  %vm369_vm2 = vcmp.gt.f32.partialorder %v305_v39, 0.0  ;;  %v433_v44 = vmul.f32 0.2, %v305_v39 }
  0x23   :  { %v311_v54 = vadd.f32 %v1143_v6, %v240_v11  ;;  %vm370_vm3 = vcmp.gt.f32.partialorder %v306_v27, 0.0  ;;  %v434_v37 = vmul.f32 0.2, %v306_v27  ;;  %vm371_vm4 = vcmp.gt.f32.partialorder %v307_v32, 0.0 }
  0x24   :  { %v435_v12 = vmul.f32 0.2, %v307_v32  ;;  %v496_v60 = vsel %vm368_vm1, %v304_v16, %v432_v3  ;;  %v497_v8 = vsel %vm369_vm2, %v305_v39, %v433_v44  ;;  %vm372_vm5 = vcmp.gt.f32.partialorder %v308_v26, 0.0 }
  0x25   :  { %v436_v14 = vmul.f32 0.2, %v308_v26  ;;  %561 = vst.msk [vmem:[%s1773_s4] sm:$0xff] %vm560_vm0, %v496_v60  ;;  %562 = vst.msk [vmem:[%s1773_s4 + $0x8] sm:$0xff] %vm560_vm0, %v497_v8  ;;  %v498_v5 = vsel %vm370_vm3, %v306_v27, %v434_v37  ;;  %vm373_vm6 = vcmp.gt.f32.partialorder %v309_v4, 0.0  ;;  %vm374_vm7 = vcmp.gt.f32.partialorder %v310_v33, 0.0 }
  0x26   :  { %v499_v10 = vsel %vm371_vm4, %v307_v32, %v435_v12  ;;  %v437_v15 = vmul.f32 0.2, %v309_v4  ;;  %563 = vst.msk [vmem:[%s1773_s4 + $0x10] sm:$0xff] %vm560_vm0, %v498_v5  ;;  %v438_v11 = vmul.f32 0.2, %v310_v33  ;;  %vm375_vm8 = vcmp.gt.f32.partialorder %v311_v54, 0.0 }
  0x27   :  { %564 = vst.msk [vmem:[%s1773_s4 + $0x18] sm:$0xff] %vm560_vm0, %v499_v10  ;;  %v500_v60 = vsel %vm372_vm5, %v308_v26, %v436_v14  ;;  %v439_v39 = vmul.f32 0.2, %v311_v54  ;;  %v1813_v27 = vsub.f32 %v709_v17, %v674_v9  ;;  %v1814_v3 = vsub.f32 %v714_v18, %v674_v9 }
  0x28   :  { %565 = vst.msk [vmem:[%s1773_s4 + $0x20] sm:$0xff] %vm560_vm0, %v500_v60  ;;  %v501_v16 = vsel %vm373_vm6, %v309_v4, %v437_v15  ;;  %v502_v44 = vsel %vm374_vm7, %v310_v33, %v438_v11  ;;  %v1815_v4 = vsub.f32 %v719_v19, %v674_v9  ;;  %v1816_v17 = vsub.f32 %v724_v20, %v674_v9 }
  0x29   :  { %v170_v32 = vmul.f32 %v1103_v25, %v1813_v27  ;;  %v171_v26 = vmul.f32 %v1103_v25, %v1814_v3  ;;  %566 = vst.msk [vmem:[%s1773_s4 + $0x28] sm:$0xff] %vm560_vm0, %v501_v16  ;;  %v1817_v18 = vsub.f32 %v729_v22, %v674_v9  ;;  %567 = vst.msk [vmem:[%s1773_s4 + $0x30] sm:$0xff] %vm560_vm0, %v502_v44 }
  0x2a   :  { %v172_v37 = vmul.f32 %v1103_v25, %v1815_v4  ;;  %v173_v12 = vmul.f32 %v1103_v25, %v1816_v17  ;;  %v503_v33 = vsel %vm375_vm8, %v311_v54, %v439_v39  ;;  %v1818_v20 = vsub.f32 %v734_v23, %v674_v9 }
  0x2b   :  { %v174_v8 = vmul.f32 %v1103_v25, %v1817_v18  ;;  %v241_v19 = vmul.f32 %v1114_v1, %v170_v32  ;;  %v242_v14 = vmul.f32 %v1114_v1, %v171_v26  ;;  %568 = vst.msk [vmem:[%s1773_s4 + $0x38] sm:$0xff] %vm560_vm0, %v503_v33  ;;  %v1819_v15 = vsub.f32 %v739_v24, %v674_v9 }
  0x2c   :  { %v175_v5 = vmul.f32 %v1103_v25, %v1818_v20  ;;  %v243_v22 = vmul.f32 %v1114_v1, %v172_v37  ;;  %v244_v10 = vmul.f32 %v1114_v1, %v173_v12  ;;  %v1820_v39 = vsub.f32 %v749_v28, %v674_v9 }
  0x2d   :  { %v245_v54 = vmul.f32 %v1114_v1, %v174_v8  ;;  %v176_v60 = vmul.f32 %v1103_v25, %v1819_v15  ;;  %v312_v23 = vadd.f32 %v1143_v6, %v241_v19  ;;  %v313_v11 = vadd.f32 %v1143_v6, %v242_v14 }
  0x2e   :  { %v246_v16 = vmul.f32 %v1114_v1, %v175_v5  ;;  %v177_v27 = vmul.f32 %v1103_v25, %v1820_v39  ;;  %v314_v32 = vadd.f32 %v1143_v6, %v243_v22  ;;  %v315_v3 = vadd.f32 %v1143_v6, %v244_v10 }
  0x2f   :  { %v316_v26 = vadd.f32 %v1143_v6, %v245_v54  ;;  %v247_v24 = vmul.f32 %v1114_v1, %v176_v60  ;;  %vm376_vm9 = vcmp.gt.f32.partialorder %v312_v23, 0.0  ;;  %v440_v44 = vmul.f32 0.2, %v312_v23 }
  0x30   :  { %vm377_vm10 = vcmp.gt.f32.partialorder %v313_v11, 0.0  ;;  %v441_v4 = vmul.f32 0.2, %v313_v11  ;;  %vm378_vm11 = vcmp.gt.f32.partialorder %v314_v32, 0.0  ;;  %v442_v37 = vmul.f32 0.2, %v314_v32 }
  0x31   :  { %vm379_vm12 = vcmp.gt.f32.partialorder %v315_v3, 0.0  ;;  %v443_v17 = vmul.f32 0.2, %v315_v3  ;;  %v504_v12 = vsel %vm376_vm9, %v312_v23, %v440_v44  ;;  %vm380_vm13 = vcmp.gt.f32.partialorder %v316_v26, 0.0 }
  0x32   :  { %v505_v28 = vsel %vm377_vm10, %v313_v11, %v441_v4  ;;  %v444_v18 = vmul.f32 0.2, %v316_v26  ;;  %569 = vst.msk [vmem:[%s1773_s4 + $0x40] sm:$0xff] %vm560_vm0, %v504_v12  ;;  %v506_v8 = vsel %vm378_vm11, %v314_v32, %v442_v37  ;;  %v317_v19 = vadd.f32 %v1143_v6, %v246_v16 }
  0x33   :  { %570 = vst.msk [vmem:[%s1773_s4 + $0x48] sm:$0xff] %vm560_vm0, %v505_v28  ;;  %v507_v33 = vsel %vm379_vm12, %v315_v3, %v443_v17  ;;  %v318_v14 = vadd.f32 %v1143_v6, %v247_v24  ;;  %571 = vst.msk [vmem:[%s1773_s4 + $0x50] sm:$0xff] %vm560_vm0, %v506_v8  ;;  %v248_v5 = vmul.f32 %v1114_v1, %v177_v27 }
  0x34   :  { %572 = vst.msk [vmem:[%s1773_s4 + $0x58] sm:$0xff] %vm560_vm0, %v507_v33  ;;  %v508_v20 = vsel %vm380_vm13, %v316_v26, %v444_v18  ;;  %v1821_v22 = vsub.f32 %v754_v29, %v674_v9  ;;  %v1822_v54 = vsub.f32 %v759_v30, %v674_v9  ;;  %vm381_vm14 = vcmp.gt.f32.partialorder %v317_v19, 0.0 }
  0x35   :  { %573 = vst.msk [vmem:[%s1773_s4 + $0x60] sm:$0xff] %vm560_vm0, %v508_v20  ;;  %v445_v60 = vmul.f32 0.2, %v317_v19  ;;  %vm382_vm15 = vcmp.gt.f32.partialorder %v318_v14, 0.0  ;;  %v446_v23 = vmul.f32 0.2, %v318_v14  ;;  %v319_v11 = vadd.f32 %v1143_v6, %v248_v5 }
  0x36   :  { %v178_v10 = vmul.f32 %v1103_v25, %v1821_v22  ;;  %v179_v15 = vmul.f32 %v1103_v25, %v1822_v54  ;;  %v1823_v30 = vsub.f32 %v770_v34, %v674_v9  ;;  %v1824_v3 = vsub.f32 %v775_v35, %v674_v9 }
  0x37   :  { %v509_v27 = vsel %vm381_vm14, %v317_v19, %v445_v60  ;;  %v510_v32 = vsel %vm382_vm15, %v318_v14, %v446_v23  ;;  %v1825_v24 = vsub.f32 %v780_v36, %v674_v9  ;;  %vm383_vm1 = vcmp.gt.f32.partialorder %v319_v11, 0.0 }
  0x38   :  { %v249_v29 = vmul.f32 %v1114_v1, %v178_v10  ;;  %v250_v16 = vmul.f32 %v1114_v1, %v179_v15  ;;  %v180_v39 = vmul.f32 %v1103_v25, %v1823_v30  ;;  %v181_v26 = vmul.f32 %v1103_v25, %v1824_v3  ;;  %574 = vst.msk [vmem:[%s1773_s4 + $0x68] sm:$0xff] %vm560_vm0, %v509_v27 }
  0x39   :  { %v182_v44 = vmul.f32 %v1103_v25, %v1825_v24  ;;  %575 = vst.msk [vmem:[%s1773_s4 + $0x70] sm:$0xff] %vm560_vm0, %v510_v32  ;;  %v447_v34 = vmul.f32 0.2, %v319_v11  ;;  %v1826_v12 = vsub.f32 %v793_v41, %v674_v9  ;;  %v1827_v22 = vsub.f32 %v798_v42, %v674_v9 }
  0x3a   :  { %v320_v35 = vadd.f32 %v1143_v6, %v249_v29  ;;  %v321_v4 = vadd.f32 %v1143_v6, %v250_v16  ;;  %v251_v36 = vmul.f32 %v1114_v1, %v180_v39  ;;  %v252_v37 = vmul.f32 %v1114_v1, %v181_v26 }
  0x3b   :  { %v253_v17 = vmul.f32 %v1114_v1, %v182_v44  ;;  %v183_v28 = vmul.f32 %v1103_v25, %v1826_v12  ;;  %v511_v18 = vsel %vm383_vm1, %v319_v11, %v447_v34  ;;  %v184_v10 = vmul.f32 %v1103_v25, %v1827_v22 }
  0x3c   :  { %vm384_vm2 = vcmp.gt.f32.partialorder %v320_v35, 0.0  ;;  %v448_v8 = vmul.f32 0.2, %v320_v35  ;;  %vm385_vm3 = vcmp.gt.f32.partialorder %v321_v4, 0.0  ;;  %576 = vst.msk [vmem:[%s1773_s4 + $0x78] sm:$0xff] %vm560_vm0, %v511_v18  ;;  %v322_v19 = vadd.f32 %v1143_v6, %v251_v36 }
  0x3d   :  { %v449_v33 = vmul.f32 0.2, %v321_v4  ;;  %v323_v14 = vadd.f32 %v1143_v6, %v252_v37  ;;  %v324_v20 = vadd.f32 %v1143_v6, %v253_v17  ;;  %v254_v41 = vmul.f32 %v1114_v1, %v183_v28 }
  0x3e   :  { %v512_v5 = vsel %vm384_vm2, %v320_v35, %v448_v8  ;;  %v1828_v54 = vsub.f32 %v803_v43, %v674_v9  ;;  %vm386_vm4 = vcmp.gt.f32.partialorder %v322_v19, 0.0  ;;  %v450_v23 = vmul.f32 0.2, %v322_v19 }
  0x3f   :  { %577 = vst.msk [vmem:[%s1773_s4 + $0x80] sm:$0xff] %vm560_vm0, %v512_v5  ;;  %v513_v60 = vsel %vm385_vm3, %v321_v4, %v449_v33  ;;  %vm387_vm5 = vcmp.gt.f32.partialorder %v323_v14, 0.0  ;;  %v451_v42 = vmul.f32 0.2, %v323_v14  ;;  %vm388_vm6 = vcmp.gt.f32.partialorder %v324_v20, 0.0 }
  0x40   :  { %v185_v15 = vmul.f32 %v1103_v25, %v1828_v54  ;;  %578 = vst.msk [vmem:[%s1773_s4 + $0x88] sm:$0xff] %vm560_vm0, %v513_v60  ;;  %v452_v11 = vmul.f32 0.2, %v324_v20  ;;  %v325_v43 = vadd.f32 %v1143_v6, %v254_v41  ;;  %v514_v29 = vsel %vm386_vm4, %v322_v19, %v450_v23 }
  0x41   :  { %v255_v16 = vmul.f32 %v1114_v1, %v184_v10  ;;  %v1829_v39 = vsub.f32 %v816_v48, %v674_v9  ;;  %579 = vst.msk [vmem:[%s1773_s4 + $0x90] sm:$0xff] %vm560_vm0, %v514_v29  ;;  %v515_v32 = vsel %vm387_vm5, %v323_v14, %v451_v42  ;;  %v1830_v34 = vsub.f32 %v821_v49, %v674_v9 }
  0x42   :  { %v256_v30 = vmul.f32 %v1114_v1, %v185_v15  ;;  %v516_v3 = vsel %vm388_vm6, %v324_v20, %v452_v11  ;;  %vm389_vm7 = vcmp.gt.f32.partialorder %v325_v43, 0.0  ;;  %v453_v26 = vmul.f32 0.2, %v325_v43  ;;  %580 = vst.msk [vmem:[%s1773_s4 + $0x98] sm:$0xff] %vm560_vm0, %v515_v32 }
  0x43   :  { %v186_v27 = vmul.f32 %v1103_v25, %v1829_v39  ;;  %581 = vst.msk [vmem:[%s1773_s4 + $0xa0] sm:$0xff] %vm560_vm0, %v516_v3  ;;  %v326_v48 = vadd.f32 %v1143_v6, %v255_v16  ;;  %v187_v35 = vmul.f32 %v1103_v25, %v1830_v34  ;;  %v1831_v36 = vsub.f32 %v826_v50, %v674_v9 }
  0x44   :  { %v327_v24 = vadd.f32 %v1143_v6, %v256_v30  ;;  %v517_v4 = vsel %vm389_vm7, %v325_v43, %v453_v26  ;;  %v1832_v17 = vsub.f32 %v839_v55, %v674_v9  ;;  %v1833_v28 = vsub.f32 %v844_v56, %v674_v9 }
  0x45   :  { %v257_v44 = vmul.f32 %v1114_v1, %v186_v27  ;;  %v188_v37 = vmul.f32 %v1103_v25, %v1831_v36  ;;  %582 = vst.msk [vmem:[%s1773_s4 + $0xa8] sm:$0xff] %vm560_vm0, %v517_v4  ;;  %vm390_vm8 = vcmp.gt.f32.partialorder %v326_v48, 0.0  ;;  %v454_v49 = vmul.f32 0.2, %v326_v48 }
  0x46   :  { %v189_v12 = vmul.f32 %v1103_v25, %v1832_v17  ;;  %v190_v18 = vmul.f32 %v1103_v25, %v1833_v28  ;;  %vm391_vm9 = vcmp.gt.f32.partialorder %v327_v24, 0.0  ;;  %v455_v50 = vmul.f32 0.2, %v327_v24 }
  0x47   :  { %v328_v8 = vadd.f32 %v1143_v6, %v257_v44  ;;  %v258_v55 = vmul.f32 %v1114_v1, %v187_v35  ;;  %v259_v33 = vmul.f32 %v1114_v1, %v188_v37  ;;  %v518_v56 = vsel %vm390_vm8, %v326_v48, %v454_v49 }
  0x48   :  { %v260_v19 = vmul.f32 %v1114_v1, %v189_v12  ;;  %v519_v14 = vsel %vm391_vm9, %v327_v24, %v455_v50  ;;  %v261_v20 = vmul.f32 %v1114_v1, %v190_v18  ;;  %v1834_v5 = vsub.f32 %v849_v57, %v674_v9  ;;  %583 = vst.msk [vmem:[%s1773_s4 + $0xb0] sm:$0xff] %vm560_vm0, %v518_v56 }
  0x49   :  { %584 = vst.msk [vmem:[%s1773_s4 + $0xb8] sm:$0xff] %vm560_vm0, %v519_v14  ;;  %vm392_vm10 = vcmp.gt.f32.partialorder %v328_v8, 0.0  ;;  %v456_v22 = vmul.f32 0.2, %v328_v8  ;;  %v329_v10 = vadd.f32 %v1143_v6, %v258_v55  ;;  %v330_v54 = vadd.f32 %v1143_v6, %v259_v33 }
  0x4a   :  { %v191_v41 = vmul.f32 %v1103_v25, %v1834_v5  ;;  %v331_v57 = vadd.f32 %v1143_v6, %v260_v19  ;;  %v332_v15 = vadd.f32 %v1143_v6, %v261_v20  ;;  %v1835_v23 = vsub.f32 %v862_v62, %v674_v9 }
  0x4b   :  { %v520_v11 = vsel %vm392_vm10, %v328_v8, %v456_v22  ;;  %vm393_vm11 = vcmp.gt.f32.partialorder %v329_v10, 0.0  ;;  %v457_v43 = vmul.f32 0.2, %v329_v10  ;;  %vm394_vm12 = vcmp.gt.f32.partialorder %v330_v54, 0.0 }
  0x4c   :  { %v262_v60 = vmul.f32 %v1114_v1, %v191_v41  ;;  %v192_v42 = vmul.f32 %v1103_v25, %v1835_v23  ;;  %585 = vst.msk [vmem:[%s1773_s4 + $0xc0] sm:$0xff] %vm560_vm0, %v520_v11  ;;  %v458_v29 = vmul.f32 0.2, %v330_v54  ;;  %vm395_vm13 = vcmp.gt.f32.partialorder %v331_v57, 0.0 }
  0x4d   :  { %v459_v16 = vmul.f32 0.2, %v331_v57  ;;  %vm396_vm14 = vcmp.gt.f32.partialorder %v332_v15, 0.0  ;;  %v521_v30 = vsel %vm393_vm11, %v329_v10, %v457_v43  ;;  %v460_v39 = vmul.f32 0.2, %v332_v15 }
  0x4e   :  { %v333_v27 = vadd.f32 %v1143_v6, %v262_v60  ;;  %v263_v62 = vmul.f32 %v1114_v1, %v192_v42  ;;  %586 = vst.msk [vmem:[%s1773_s4 + $0xc8] sm:$0xff] %vm560_vm0, %v521_v30  ;;  %v522_v32 = vsel %vm394_vm12, %v330_v54, %v458_v29  ;;  %v1836_v26 = vsub.f32 %v867_v63, %v674_v9 }
  0x4f   :  { %v523_v3 = vsel %vm395_vm13, %v331_v57, %v459_v16  ;;  %v1837_v24 = vsub.f32 %v872_v0, %v674_v9  ;;  %587 = vst.msk [vmem:[%s1773_s4 + $0xd0] sm:$0xff] %vm560_vm0, %v522_v32  ;;  %v524_v34 = vsel %vm396_vm14, %v332_v15, %v460_v39  ;;  %v1838_v36 = vsub.f32 %v931_v58, %v674_v9 }
  0x50   :  { %v193_v48 = vmul.f32 %v1103_v25, %v1836_v26  ;;  %588 = vst.msk [vmem:[%s1773_s4 + $0xd8] sm:$0xff] %vm560_vm0, %v523_v3  ;;  %vm397_vm15 = vcmp.gt.f32.partialorder %v333_v27, 0.0  ;;  %v461_v63 = vmul.f32 0.2, %v333_v27  ;;  %v334_v35 = vadd.f32 %v1143_v6, %v263_v62  ;;  %589 = vst.msk [vmem:[%s1773_s4 + $0xe0] sm:$0xff] %vm560_vm0, %v524_v34 }
  0x51   :  { %v194_v44 = vmul.f32 %v1103_v25, %v1837_v24  ;;  %v195_v37 = vmul.f32 %v1103_v25, %v1838_v36  ;;  %v1839_v17 = vsub.f32 %v951_v59, %v674_v9  ;;  %v1840_v49 = vsub.f32 %v956_v2, %v674_v9 }
  0x52   :  { %v264_v0 = vmul.f32 %v1114_v1, %v193_v48  ;;  %v525_v28 = vsel %vm397_vm15, %v333_v27, %v461_v63  ;;  %vm398_vm1 = vcmp.gt.f32.partialorder %v334_v35, 0.0  ;;  %v462_v18 = vmul.f32 0.2, %v334_v35 }
  0x53   :  { %v265_v4 = vmul.f32 %v1114_v1, %v194_v44  ;;  %v196_v12 = vmul.f32 %v1103_v25, %v1839_v17  ;;  %v197_v50 = vmul.f32 %v1103_v25, %v1840_v49  ;;  %590 = vst.msk [vmem:[%s1773_s4 + $0xe8] sm:$0xff] %vm560_vm0, %v525_v28  ;;  %v266_v59 = vmul.f32 %v1114_v1, %v195_v37 }
  0x54   :  { %v335_v58 = vadd.f32 %v1143_v6, %v264_v0  ;;  %v526_v33 = vsel %vm398_vm1, %v334_v35, %v462_v18  ;;  %v1841_v2 = vsub.f32 %v961_v53, %v674_v9  ;;  %v1842_v14 = vsub.f32 %v966_v52, %v674_v9 }
  0x55   :  { %v336_v8 = vadd.f32 %v1143_v6, %v265_v4  ;;  %v267_v55 = vmul.f32 %v1114_v1, %v196_v12  ;;  %v268_v19 = vmul.f32 %v1114_v1, %v197_v50  ;;  %591 = vst.msk [vmem:[%s1773_s4 + $0xf0] sm:$0xff] %vm560_vm0, %v526_v33  ;;  %v337_v22 = vadd.f32 %v1143_v6, %v266_v59 }
  0x56   :  { %v198_v56 = vmul.f32 %v1103_v25, %v1841_v2  ;;  %v199_v20 = vmul.f32 %v1103_v25, %v1842_v14  ;;  %vm399_vm2 = vcmp.gt.f32.partialorder %v335_v58, 0.0  ;;  %v463_v5 = vmul.f32 0.2, %v335_v58 }
  0x57   :  { %vm400_vm3 = vcmp.gt.f32.partialorder %v336_v8, 0.0  ;;  %v464_v41 = vmul.f32 0.2, %v336_v8  ;;  %v338_v53 = vadd.f32 %v1143_v6, %v267_v55  ;;  %v339_v10 = vadd.f32 %v1143_v6, %v268_v19 }
  0x58   :  { %v269_v54 = vmul.f32 %v1114_v1, %v198_v56  ;;  %v527_v52 = vsel %vm399_vm2, %v335_v58, %v463_v5  ;;  %v270_v15 = vmul.f32 %v1114_v1, %v199_v20  ;;  %v1843_v60 = vsub.f32 %v994_v46, %v674_v9 }
  0x59   :  { %v528_v57 = vsel %vm400_vm3, %v336_v8, %v464_v41  ;;  %592 = vst.msk [vmem:[%s1773_s4 + $0xf8] sm:$0xff] %vm560_vm0, %v527_v52  ;;  %vm401_vm4 = vcmp.gt.f32.partialorder %v337_v22, 0.0  ;;  %v465_v42 = vmul.f32 0.2, %v337_v22  ;;  %vm402_vm5 = vcmp.gt.f32.partialorder %v338_v53, 0.0 }
  0x5a   :  { %v200_v23 = vmul.f32 %v1103_v25, %v1843_v60  ;;  %593 = vst.msk [vmem:[%s1773_s4 + $0x100] sm:$0xff] %vm560_vm0, %v528_v57  ;;  %v466_v11 = vmul.f32 0.2, %v338_v53  ;;  %vm403_vm6 = vcmp.gt.f32.partialorder %v339_v10, 0.0  ;;  %v467_v43 = vmul.f32 0.2, %v339_v10 }
  0x5b   :  { %v340_v46 = vadd.f32 %v1143_v6, %v269_v54  ;;  %v341_v29 = vadd.f32 %v1143_v6, %v270_v15  ;;  %v529_v16 = vsel %vm401_vm4, %v337_v22, %v465_v42  ;;  %v1844_v27 = vsub.f32 %v999_v45, %v674_v9 }
  0x5c   :  { %v530_v30 = vsel %vm402_vm5, %v338_v53, %v466_v11  ;;  %v271_v39 = vmul.f32 %v1114_v1, %v200_v23  ;;  %594 = vst.msk [vmem:[%s1773_s4 + $0x108] sm:$0xff] %vm560_vm0, %v529_v16  ;;  %v531_v32 = vsel %vm403_vm6, %v339_v10, %v467_v43  ;;  %v1845_v24 = vsub.f32 %v1050_v51, %v674_v9  ;;  %v1854_v16 = vld [vmem:[#allocation2_spill] sm:$0xff] }
  0x5d   :  { %v201_v62 = vmul.f32 %v1103_v25, %v1844_v27  ;;  %595 = vst.msk [vmem:[%s1773_s4 + $0x110] sm:$0xff] %vm560_vm0, %v530_v30  ;;  %vm404_vm7 = vcmp.gt.f32.partialorder %v340_v46, 0.0  ;;  %v468_v3 = vmul.f32 0.2, %v340_v46  ;;  %vm405_vm8 = vcmp.gt.f32.partialorder %v341_v29, 0.0  ;;  %596 = vst.msk [vmem:[%s1773_s4 + $0x118] sm:$0xff] %vm560_vm0, %v531_v32 }
  0x5e   :  { %v469_v45 = vmul.f32 0.2, %v341_v29  ;;  %v342_v26 = vadd.f32 %v1143_v6, %v271_v39  ;;  %v202_v44 = vmul.f32 %v1103_v25, %v1845_v24  ;;  %v1846_v63 = vsub.f32 %v1055_v31, %v674_v9  ;;  %v1856_v27 = vld [vmem:[#allocation3_spill] sm:$0xff] }
  0x5f   :  { %v272_v48 = vmul.f32 %v1114_v1, %v201_v62  ;;  %v532_v34 = vsel %vm404_vm7, %v340_v46, %v468_v3  ;;  %v1847_v0 = vsub.f32 %v1075_v38, %v674_v9  ;;  %v1848_v36 = vsub.f32 %v1080_v47, %v674_v9 }
  0x60   :  { %v203_v35 = vmul.f32 %v1103_v25, %v1846_v63  ;;  %597 = vst.msk [vmem:[%s1773_s4 + $0x120] sm:$0xff] %vm560_vm0, %v532_v34  ;;  %v533_v51 = vsel %vm405_vm8, %v341_v29, %v469_v45  ;;  %vm406_vm9 = vcmp.gt.f32.partialorder %v342_v26, 0.0  ;;  %v470_v31 = vmul.f32 0.2, %v342_v26 }
  0x61   :  { %v204_v4 = vmul.f32 %v1103_v25, %v1847_v0  ;;  %v205_v37 = vmul.f32 %v1103_v25, %v1848_v36  ;;  %v343_v17 = vadd.f32 %v1143_v6, %v272_v48  ;;  %598 = vst.msk [vmem:[%s1773_s4 + $0x128] sm:$0xff] %vm560_vm0, %v533_v51  ;;  %v273_v38 = vmul.f32 %v1114_v1, %v202_v44 }
  0x62   :  { %v274_v47 = vmul.f32 %v1114_v1, %v203_v35  ;;  %v534_v18 = vsel %vm406_vm9, %v342_v26, %v470_v31  ;;  %v1849_v50 = vsub.f32 %v1085_v40, %v674_v9  ;;  %v1850_v40 = vsub.f32 %v885_v7, %v674_v9  ;;  %v1858_v35 = vld [vmem:[#allocation4_spill] sm:$0xff] }
  0x63   :  { %v275_v12 = vmul.f32 %v1114_v1, %v204_v4  ;;  %v276_v28 = vmul.f32 %v1114_v1, %v205_v37  ;;  %vm407_vm10 = vcmp.gt.f32.partialorder %v343_v17, 0.0  ;;  %v471_v49 = vmul.f32 0.2, %v343_v17  ;;  %599 = vst.msk [vmem:[%s1773_s4 + $0x130] sm:$0xff] %vm560_vm0, %v534_v18 }
  0x64   :  { %v206_v58 = vmul.f32 %v1103_v25, %v1849_v50  ;;  %v344_v8 = vadd.f32 %v1143_v6, %v273_v38  ;;  %v345_v59 = vadd.f32 %v1143_v6, %v274_v47  ;;  %v207_v56 = vmul.f32 %v1103_v25, %v1850_v40  ;;  %v1864_v40 = vld [vmem:[#allocation7_spill] sm:$0xff] }
  0x65   :  { %v346_v55 = vadd.f32 %v1143_v6, %v275_v12  ;;  %v347_v33 = vadd.f32 %v1143_v6, %v276_v28  ;;  %v535_v19 = vsel %vm407_vm10, %v343_v17, %v471_v49  ;;  %v1851_v14 = vsub.f32 %v890_v13, %v674_v9  ;;  %v1860_v28 = vld [vmem:[#allocation5_spill] sm:$0xff] }
  0x66   :  { %v277_v2 = vmul.f32 %v1114_v1, %v206_v58  ;;  %600 = vst.msk [vmem:[%s1773_s4 + $0x138] sm:$0xff] %vm560_vm0, %v535_v19  ;;  %vm408_vm11 = vcmp.gt.f32.partialorder %v344_v8, 0.0  ;;  %v472_v5 = vmul.f32 0.2, %v344_v8  ;;  %vm409_vm12 = vcmp.gt.f32.partialorder %v345_v59, 0.0 }
  0x67   :  { %v208_v20 = vmul.f32 %v1103_v25, %v1851_v14  ;;  %v473_v41 = vmul.f32 0.2, %v345_v59  ;;  %vm410_vm13 = vcmp.gt.f32.partialorder %v346_v55, 0.0  ;;  %v474_v22 = vmul.f32 0.2, %v346_v55 }
  0x68   :  { %vm411_vm14 = vcmp.gt.f32.partialorder %v347_v33, 0.0  ;;  %v475_v7 = vmul.f32 0.2, %v347_v33  ;;  %v536_v53 = vsel %vm408_vm11, %v344_v8, %v472_v5  ;;  %v348_v54 = vadd.f32 %v1143_v6, %v277_v2 }
  0x69   :  { %v537_v10 = vsel %vm409_vm12, %v345_v59, %v473_v41  ;;  %v278_v13 = vmul.f32 %v1114_v1, %v207_v56  ;;  %601 = vst.msk [vmem:[%s1773_s4 + $0x140] sm:$0xff] %vm560_vm0, %v536_v53  ;;  %v538_v52 = vsel %vm410_vm13, %v346_v55, %v474_v22  ;;  %v279_v15 = vmul.f32 %v1114_v1, %v208_v20  ;;  %v1866_v41 = vld [vmem:[#allocation8_spill] sm:$0xff] }
  0x6a   :  { %602 = vst.msk [vmem:[%s1773_s4 + $0x148] sm:$0xff] %vm560_vm0, %v537_v10  ;;  %v539_v57 = vsel %vm411_vm14, %v347_v33, %v475_v7  ;;  %v1852_v60 = vsub.f32 %v895_v21, %v674_v9  ;;  %603 = vst.msk [vmem:[%s1773_s4 + $0x150] sm:$0xff] %vm560_vm0, %v538_v52  ;;  %vm412_vm15 = vcmp.gt.f32.partialorder %v348_v54, 0.0  ;;  %v476_v42 = vmul.f32 0.2, %v348_v54  ;;  %v1862_v33 = vld [vmem:[#allocation6_spill] sm:$0xff] }
  0x6b   :  { %604 = vst.msk [vmem:[%s1773_s4 + $0x158] sm:$0xff] %vm560_vm0, %v539_v57  ;;  %v349_v11 = vadd.f32 %v1143_v6, %v278_v13  ;;  %v1853_v43 = vsub.f32 %v908_v61, %v674_v9  ;;  %v350_v46 = vadd.f32 %v1143_v6, %v279_v15  ;;  %v1855_v30 = vsub.f32 %v1854_v16, %v674_v9  ;;  %v1868_v13 = vld [vmem:[#allocation9_spill] sm:$0xff] }
  0x6c   :  { %v209_v23 = vmul.f32 %v1103_v25, %v1852_v60  ;;  %v1857_v62 = vsub.f32 %v1856_v27, %v674_v9  ;;  %v540_v3 = vsel %vm412_vm15, %v348_v54, %v476_v42  ;;  %v1859_v0 = vsub.f32 %v1858_v35, %v674_v9 }
  0x6d   :  { %v210_v21 = vmul.f32 %v1103_v25, %v1853_v43  ;;  %v211_v39 = vmul.f32 %v1103_v25, %v1855_v30  ;;  %vm413_vm1 = vcmp.gt.f32.partialorder %v349_v11, 0.0  ;;  %v477_v45 = vmul.f32 0.2, %v349_v11  ;;  %605 = vst.msk [vmem:[%s1773_s4 + $0x160] sm:$0xff] %vm560_vm0, %v540_v3  ;;  %v1872_v43 = vld [vmem:[#allocation11_spill] sm:$0xff] }
  0x6e   :  { %v280_v29 = vmul.f32 %v1114_v1, %v209_v23  ;;  %v212_v32 = vmul.f32 %v1103_v25, %v1857_v62  ;;  %vm414_vm2 = vcmp.gt.f32.partialorder %v350_v46, 0.0  ;;  %v478_v26 = vmul.f32 0.2, %v350_v46  ;;  %v1870_v23 = vld [vmem:[#allocation10_spill] sm:$0xff] }
  0x6f   :  { %v281_v61 = vmul.f32 %v1114_v1, %v210_v21  ;;  %v282_v24 = vmul.f32 %v1114_v1, %v211_v39  ;;  %v541_v44 = vsel %vm413_vm1, %v349_v11, %v477_v45  ;;  %v213_v4 = vmul.f32 %v1103_v25, %v1859_v0 }
  0x70   :  { %v351_v48 = vadd.f32 %v1143_v6, %v280_v29  ;;  %v283_v63 = vmul.f32 %v1114_v1, %v212_v32  ;;  %606 = vst.msk [vmem:[%s1773_s4 + $0x168] sm:$0xff] %vm560_vm0, %v541_v44  ;;  %v542_v36 = vsel %vm414_vm2, %v350_v46, %v478_v26  ;;  %v1861_v18 = vsub.f32 %v1860_v28, %v674_v9 }
  0x71   :  { %v352_v34 = vadd.f32 %v1143_v6, %v281_v61  ;;  %v353_v51 = vadd.f32 %v1143_v6, %v282_v24  ;;  %607 = vst.msk [vmem:[%s1773_s4 + $0x170] sm:$0xff] %vm560_vm0, %v542_v36  ;;  %v284_v38 = vmul.f32 %v1114_v1, %v213_v4  ;;  %v1863_v19 = vsub.f32 %v1862_v33, %v674_v9 }
  0x72   :  { %vm415_vm3 = vcmp.gt.f32.partialorder %v351_v48, 0.0  ;;  %v479_v37 = vmul.f32 0.2, %v351_v48  ;;  %v354_v17 = vadd.f32 %v1143_v6, %v283_v63  ;;  %v214_v49 = vmul.f32 %v1103_v25, %v1861_v18  ;;  %v1874_v63 = vld [vmem:[#allocation12_spill] sm:$0xff]  ;;  %v1878_v18 = vld [vmem:[#allocation14_spill] sm:$0xff] }
  0x73   :  { %vm416_vm4 = vcmp.gt.f32.partialorder %v352_v34, 0.0  ;;  %v480_v31 = vmul.f32 0.2, %v352_v34  ;;  %vm417_vm5 = vcmp.gt.f32.partialorder %v353_v51, 0.0  ;;  %v481_v12 = vmul.f32 0.2, %v353_v51 }
  0x74   :  { %v543_v47 = vsel %vm415_vm3, %v351_v48, %v479_v37  ;;  %vm418_vm6 = vcmp.gt.f32.partialorder %v354_v17, 0.0  ;;  %v482_v58 = vmul.f32 0.2, %v354_v17  ;;  %v355_v8 = vadd.f32 %v1143_v6, %v284_v38 }
  0x75   :  { %608 = vst.msk [vmem:[%s1773_s4 + $0x178] sm:$0xff] %vm560_vm0, %v543_v47  ;;  %v544_v50 = vsel %vm416_vm4, %v352_v34, %v480_v31  ;;  %v545_v59 = vsel %vm417_vm5, %v353_v51, %v481_v12  ;;  %v285_v55 = vmul.f32 %v1114_v1, %v214_v49  ;;  %v215_v2 = vmul.f32 %v1103_v25, %v1863_v19  ;;  %v1876_v47 = vld [vmem:[#allocation13_spill] sm:$0xff]  ;;  %v1882_v19 = vld [vmem:[#allocation16_spill] sm:$0xff] }
  0x76   :  { %609 = vst.msk [vmem:[%s1773_s4 + $0x180] sm:$0xff] %vm560_vm0, %v544_v50  ;;  %v1865_v56 = vsub.f32 %v1864_v40, %v674_v9  ;;  %610 = vst.msk [vmem:[%s1773_s4 + $0x188] sm:$0xff] %vm560_vm0, %v545_v59  ;;  %v546_v20 = vsel %vm418_vm6, %v354_v17, %v482_v58  ;;  %vm419_vm7 = vcmp.gt.f32.partialorder %v355_v8, 0.0  ;;  %v483_v5 = vmul.f32 0.2, %v355_v8  ;;  %v1880_v59 = vld [vmem:[#allocation15_spill] sm:$0xff] }
  0x77   :  { %v1867_v22 = vsub.f32 %v1866_v41, %v674_v9  ;;  %611 = vst.msk [vmem:[%s1773_s4 + $0x190] sm:$0xff] %vm560_vm0, %v546_v20  ;;  %v356_v53 = vadd.f32 %v1143_v6, %v285_v55  ;;  %v286_v10 = vmul.f32 %v1114_v1, %v215_v2  ;;  %v1869_v52 = vsub.f32 %v1868_v13, %v674_v9 }
  0x78   :  { %v216_v14 = vmul.f32 %v1103_v25, %v1865_v56  ;;  %v547_v15 = vsel %vm419_vm7, %v355_v8, %v483_v5  ;;  %v1871_v42 = vsub.f32 %v1870_v23, %v674_v9  ;;  %v1873_v21 = vsub.f32 %v1872_v43, %v674_v9 }
  0x79   :  { %v217_v7 = vmul.f32 %v1103_v25, %v1867_v22  ;;  %v218_v57 = vmul.f32 %v1103_v25, %v1869_v52  ;;  %612 = vst.msk [vmem:[%s1773_s4 + $0x198] sm:$0xff] %vm560_vm0, %v547_v15  ;;  %vm420_vm8 = vcmp.gt.f32.partialorder %v356_v53, 0.0  ;;  %v484_v29 = vmul.f32 0.2, %v356_v53 }
  0x7a   :  { %v287_v54 = vmul.f32 %v1114_v1, %v216_v14  ;;  %v219_v11 = vmul.f32 %v1103_v25, %v1871_v42  ;;  %v220_v46 = vmul.f32 %v1103_v25, %v1873_v21  ;;  %v357_v16 = vadd.f32 %v1143_v6, %v286_v10 }
  0x7b   :  { %v288_v60 = vmul.f32 %v1114_v1, %v217_v7  ;;  %v289_v27 = vmul.f32 %v1114_v1, %v218_v57  ;;  %v548_v3 = vsel %vm420_vm8, %v356_v53, %v484_v29  ;;  %v1875_v35 = vsub.f32 %v1874_v63, %v674_v9 }
  0x7c   :  { %v358_v30 = vadd.f32 %v1143_v6, %v287_v54  ;;  %v290_v62 = vmul.f32 %v1114_v1, %v219_v11  ;;  %v291_v32 = vmul.f32 %v1114_v1, %v220_v46  ;;  %vm421_vm9 = vcmp.gt.f32.partialorder %v357_v16, 0.0  ;;  %613 = vst.msk [vmem:[%s1773_s4 + $0x1a0] sm:$0xff] %vm560_vm0, %v548_v3 }
  0x7d   :  { %v359_v39 = vadd.f32 %v1143_v6, %v288_v60  ;;  %v485_v45 = vmul.f32 0.2, %v357_v16  ;;  %v360_v48 = vadd.f32 %v1143_v6, %v289_v27  ;;  %v221_v0 = vmul.f32 %v1103_v25, %v1875_v35 }
  0x7e   :  { %vm422_vm10 = vcmp.gt.f32.partialorder %v358_v30, 0.0  ;;  %v486_v61 = vmul.f32 0.2, %v358_v30  ;;  %v361_v44 = vadd.f32 %v1143_v6, %v290_v62  ;;  %v362_v34 = vadd.f32 %v1143_v6, %v291_v32 }
  0x7f   :  { %vm423_vm11 = vcmp.gt.f32.partialorder %v359_v39, 0.0  ;;  %v487_v26 = vmul.f32 0.2, %v359_v39  ;;  %v549_v24 = vsel %vm421_vm9, %v357_v16, %v485_v45  ;;  %vm424_vm12 = vcmp.gt.f32.partialorder %v360_v48, 0.0 }
  0x80   :  { %614 = vst.msk [vmem:[%s1773_s4 + $0x1a8] sm:$0xff] %vm560_vm0, %v549_v24  ;;  %v550_v4 = vsel %vm422_vm10, %v358_v30, %v486_v61  ;;  %v488_v37 = vmul.f32 0.2, %v360_v48  ;;  %vm425_vm13 = vcmp.gt.f32.partialorder %v361_v44, 0.0  ;;  %v489_v51 = vmul.f32 0.2, %v361_v44 }
  0x81   :  { %v551_v36 = vsel %vm423_vm11, %v359_v39, %v487_v26  ;;  %615 = vst.msk [vmem:[%s1773_s4 + $0x1b0] sm:$0xff] %vm560_vm0, %v550_v4  ;;  %vm426_vm14 = vcmp.gt.f32.partialorder %v362_v34, 0.0  ;;  %v490_v31 = vmul.f32 0.2, %v362_v34  ;;  %v292_v38 = vmul.f32 %v1114_v1, %v221_v0 }
  0x82   :  { %616 = vst.msk [vmem:[%s1773_s4 + $0x1b8] sm:$0xff] %vm560_vm0, %v551_v36  ;;  %v552_v17 = vsel %vm424_vm12, %v360_v48, %v488_v37  ;;  %v1877_v12 = vsub.f32 %v1876_v47, %v674_v9  ;;  %v1879_v49 = vsub.f32 %v1878_v18, %v674_v9  ;;  %v553_v58 = vsel %vm425_vm13, %v361_v44, %v489_v51 }
  0x83   :  { %617 = vst.msk [vmem:[%s1773_s4 + $0x1c0] sm:$0xff] %vm560_vm0, %v552_v17  ;;  %v554_v8 = vsel %vm426_vm14, %v362_v34, %v490_v31  ;;  %v1881_v55 = vsub.f32 %v1880_v59, %v674_v9  ;;  %v1883_v2 = vsub.f32 %v1882_v19, %v674_v9  ;;  %618 = vst.msk [vmem:[%s1773_s4 + $0x1c8] sm:$0xff] %vm560_vm0, %v553_v58 }
  0x84   :  { %v222_v28 = vmul.f32 %v1103_v25, %v1877_v12  ;;  %v223_v50 = vmul.f32 %v1103_v25, %v1879_v49  ;;  %619 = vst.msk [vmem:[%s1773_s4 + $0x1d0] sm:$0xff] %vm560_vm0, %v554_v8  ;;  %v363_v56 = vadd.f32 %v1143_v6, %v292_v38 }
  0x85   :  { %v224_v33 = vmul.f32 %v1103_v25, %v1881_v55  ;;  %v225_v40 = vmul.f32 %v1103_v25, %v1883_v2 }
  0x86   :  { %v293_v14 = vmul.f32 %v1114_v1, %v222_v28  ;;  %v294_v20 = vmul.f32 %v1114_v1, %v223_v50  ;;  %vm427_vm15 = vcmp.gt.f32.partialorder %v363_v56, 0.0  ;;  %v491_v5 = vmul.f32 0.2, %v363_v56 }
  0x87   :  { %v295_v9 = vmul.f32 %v1114_v1, %v224_v33  ;;  %v296_v25 = vmul.f32 %v1114_v1, %v225_v40 }
  0x88   :  { %v364_v41 = vadd.f32 %v1143_v6, %v293_v14  ;;  %v365_v22 = vadd.f32 %v1143_v6, %v294_v20  ;;  %v555_v10 = vsel %vm427_vm15, %v363_v56, %v491_v5 }
  0x89   :  { %v366_v7 = vadd.f32 %v1143_v6, %v295_v9  ;;  %v367_v53 = vadd.f32 %v1143_v6, %v296_v25  ;;  %620 = vst.msk [vmem:[%s1773_s4 + $0x1d8] sm:$0xff] %vm560_vm0, %v555_v10 }
  0x8a   :  { %vm428_vm1 = vcmp.gt.f32.partialorder %v364_v41, 0.0  ;;  %v492_v54 = vmul.f32 0.2, %v364_v41  ;;  %vm429_vm2 = vcmp.gt.f32.partialorder %v365_v22, 0.0  ;;  %v493_v1 = vmul.f32 0.2, %v365_v22 }
  0x8b   :  { %vm430_vm3 = vcmp.gt.f32.partialorder %v366_v7, 0.0  ;;  %v494_v13 = vmul.f32 0.2, %v366_v7  ;;  %vm431_vm4 = vcmp.gt.f32.partialorder %v367_v53, 0.0  ;;  %v495_v57 = vmul.f32 0.2, %v367_v53 }
  0x8c   :  { %v556_v52 = vsel %vm428_vm1, %v364_v41, %v492_v54  ;;  %v557_v6 = vsel %vm429_vm2, %v365_v22, %v493_v1 }
  0x8d   :  { %621 = vst.msk [vmem:[%s1773_s4 + $0x1e0] sm:$0xff] %vm560_vm0, %v556_v52  ;;  %v558_v15 = vsel %vm430_vm3, %v366_v7, %v494_v13  ;;  %622 = vst.msk [vmem:[%s1773_s4 + $0x1e8] sm:$0xff] %vm560_vm0, %v557_v6  ;;  %v559_v60 = vsel %vm431_vm4, %v367_v53, %v495_v57 }
  0x8e   :  { %623 = vst.msk [vmem:[%s1773_s4 + $0x1f0] sm:$0xff] %vm560_vm0, %v558_v15  ;;  %624 = vst.msk [vmem:[%s1773_s4 + $0x1f8] sm:$0xff] %vm560_vm0, %v559_v60 }

// kernel: discriminator_forward.11
= control target key start
LH: loop header
LB: loop body
LE: loop exit
PB: predicated region body
PF: predicated region fallthrough
CT: control target
= control target key end

     0   :  { %v1026_v0 = vmov 0   ;;  %vm408_vm0 = vcmask 130048   ;;  %vm805_vm1 = vcmask 254976   ;;  %v1027_v58 = vmov 0.0   ;;  %s1381_s1 = inlined_call_operand.vmem [shape: bf16[400,32], index: 1, kind: input, shape index: {}]   ;;  %s1382_s0 = inlined_call_operand.vmem [shape: bf16[128,400], index: 0, kind: input, shape index: {}]   ;;  %s1383_s4 = inlined_call_operand.vmem [shape: f32[2,32], index: 4, kind: output, shape index: {1}]   ;;  %s1384_s2 = inlined_call_operand.vmem [shape: f32[1,32], index: 2, kind: input, shape index: {}]   ;;  %s1385_s3 = inlined_call_operand.vmem [shape: f32[128,32], index: 3, kind: output, shape index: {0}]  }
   0x1   :  { %530 = vmatprep.subr.bf16.mxu1 %v1026_v0  ;;  %v953_v1 = vld [vmem:[%s1381_s1 + $0x78] sm:$0xff]   ;;  %v956_v4 = vld [vmem:[%s1381_s1 + $0x70] sm:$0xff]   ;;  %v959_v7 = vld [vmem:[%s1381_s1 + $0x68] sm:$0xff]   ;;  %806 = vst.msk [vmem:[%s1383_s4] sm:$0x3] %vm805_vm1, %v1027_v58  ;;  %vm627_vm2 = vcmask 261120  }
   0x2   :  { %v954_v2 = vld [vmem:[%s1381_s1 + $0xb8] sm:$0xff]   ;;  %887 = vmatprep.subr.bf16.mxu0 %v953_v1  ;;  %v957_v5 = vld [vmem:[%s1381_s1 + $0xb0] sm:$0xff]   ;;  %v960_v8 = vld [vmem:[%s1381_s1 + $0xa8] sm:$0xff]   ;;  %vm808_vm3 = vcmask 1040384  }
   0x3   :  { %v955_v3 = vld [vmem:[%s1381_s1 + $0x38] sm:$0xff]   ;;  %531 = vmatpush1.bf16.msra.mxu1 %v954_v2  ;;  %v958_v6 = vld [vmem:[%s1381_s1 + $0x30] sm:$0xff]   ;;  %v961_v9 = vld [vmem:[%s1381_s1 + $0x28] sm:$0xff]  }
   0x4   :  { %888 = vmatpush3.bf16.msra.mxu0 %v955_v3  ;;  %532 = vmatprep.subr.bf16.mxu1 %v1026_v0  ;;  %v962_v10 = vld [vmem:[%s1381_s1 + $0x60] sm:$0xff]   ;;  %v965_v13 = vld [vmem:[%s1381_s1 + $0x58] sm:$0xff]   ;;  %v968_v16 = vld [vmem:[%s1381_s1 + $0x50] sm:$0xff]  }
   0x5   :  { %889 = vmatprep.subr.bf16.mxu0 %v956_v4  ;;  %v963_v11 = vld [vmem:[%s1381_s1 + $0xa0] sm:$0xff]   ;;  %v966_v14 = vld [vmem:[%s1381_s1 + $0x98] sm:$0xff]   ;;  %v969_v17 = vld [vmem:[%s1381_s1 + $0x90] sm:$0xff]  }
   0x6   :  { %v964_v12 = vld [vmem:[%s1381_s1 + $0x20] sm:$0xff]   ;;  %v967_v15 = vld [vmem:[%s1381_s1 + $0x18] sm:$0xff]   ;;  %v970_v18 = vld [vmem:[%s1381_s1 + $0x10] sm:$0xff]  }
   0x7   :  { %533 = vmatpush1.bf16.msra.mxu1 %v957_v5  ;;  %v971_v19 = vld [vmem:[%s1381_s1 + $0x48] sm:$0xff]   ;;  %v974_v22 = vld [vmem:[%s1381_s1 + $0x40] sm:$0xff]  }
   0x8   :  { %890 = vmatpush3.bf16.msra.mxu0 %v958_v6  ;;  %534 = vmatprep.subr.bf16.mxu1 %v1026_v0  ;;  %v972_v20 = vld [vmem:[%s1381_s1 + $0x88] sm:$0xff]   ;;  %v979_v23 = vld [vmem:[%s1382_s0 + $0x4] ss:$16 sps:$4 sm:$0xff]   ;;  %v977_v27 = vld [vmem:[%s1382_s0] ss:$16 sps:$4 sm:$0xff]  }
   0x9   :  { %891 = vmatprep.subr.bf16.mxu0 %v959_v7  ;;  %v973_v21 = vld [vmem:[%s1381_s1 + $0x8] sm:$0xff]   ;;  %v975_v24 = vld [vmem:[%s1381_s1 + $0x80] sm:$0xff]   ;;  %465 = vmatprep.mubr.bf16.mxu0 %v979_v23 }
   0xa   :  { %v983_v25 = vld [vmem:[%s1382_s0 + $0xc] ss:$16 sps:$4 sm:$0xff]   ;;  %v976_v26 = vld [vmem:[%s1381_s1] sm:$0xff]   ;;  %v981_v30 = vld [vmem:[%s1382_s0 + $0x8] ss:$16 sps:$4 sm:$0xff]  }
   0xb   :  { %535 = vmatpush1.bf16.msra.mxu1 %v960_v8  ;;  %879 = vmatprep.mubr.msk.bf16.mxu1 %vm408_vm0, %v983_v25  ;;  %v980_v28 = vld [vmem:[%s1381_s1 + $0xc0] sm:$0xff]   ;;  %v987_v31 = vld [vmem:[%s1382_s0 + $0x2c] ss:$16 sps:$4 sm:$0xff]   ;;  %v989_v34 = vld [vmem:[%s1382_s0 + $0x28] ss:$16 sps:$4 sm:$0xff]  }
   0xc   :  { %892 = vmatpush3.bf16.msra.mxu0 %v961_v9  ;;  %536 = vmatprep.subr.bf16.mxu1 %v1026_v0  ;;  %v984_v29 = vld [vmem:[%s1382_s0 + $0x24] ss:$16 sps:$4 sm:$0xff]   ;;  %v986_v32 = vld [vmem:[%s1382_s0 + $0x20] ss:$16 sps:$4 sm:$0xff]   ;;  %v993_v35 = vld [vmem:[%s1382_s0 + $0x4c] ss:$16 sps:$4 sm:$0xff]  }
   0xd   :  { %893 = vmatprep.subr.bf16.mxu0 %v962_v10  ;;  %v990_v33 = vld [vmem:[%s1382_s0 + $0x44] ss:$16 sps:$4 sm:$0xff]   ;;  %v992_v36 = vld [vmem:[%s1382_s0 + $0x40] ss:$16 sps:$4 sm:$0xff]   ;;  %v995_v38 = vld [vmem:[%s1382_s0 + $0x48] ss:$16 sps:$4 sm:$0xff]  }
   0xe   :  { %v996_v37 = vld [vmem:[%s1382_s0 + $0x64] ss:$16 sps:$4 sm:$0xff]   ;;  %v999_v39 = vld [vmem:[%s1382_s0 + $0x6c] ss:$16 sps:$4 sm:$0xff]   ;;  %v998_v40 = vld [vmem:[%s1382_s0 + $0x60] ss:$16 sps:$4 sm:$0xff]  }
   0xf   :  { %537 = vmatpush1.bf16.msra.mxu1 %v963_v11  ;;  %v1002_v41 = vld [vmem:[%s1382_s0 + $0x84] ss:$16 sps:$4 sm:$0xff]   ;;  %v1001_v42 = vld [vmem:[%s1382_s0 + $0x68] ss:$16 sps:$4 sm:$0xff]   ;;  %v1005_v43 = vld [vmem:[%s1382_s0 + $0x8c] ss:$16 sps:$4 sm:$0xff]  }
  0x10   :  { %894 = vmatpush3.bf16.msra.mxu0 %v964_v12  ;;  %538 = vmatprep.subr.bf16.mxu1 %v1026_v0  ;;  %v1004_v44 = vld [vmem:[%s1382_s0 + $0x80] ss:$16 sps:$4 sm:$0xff]   ;;  %v1008_v45 = vld [vmem:[%s1382_s0 + $0xa4] ss:$16 sps:$4 sm:$0xff]   ;;  %v1007_v46 = vld [vmem:[%s1382_s0 + $0x88] ss:$16 sps:$4 sm:$0xff]  }
  0x11   :  { %895 = vmatprep.subr.bf16.mxu0 %v965_v13  ;;  %v1011_v47 = vld [vmem:[%s1382_s0 + $0xac] ss:$16 sps:$4 sm:$0xff]   ;;  %v1010_v48 = vld [vmem:[%s1382_s0 + $0xa0] ss:$16 sps:$4 sm:$0xff]   ;;  %v1014_v49 = vld [vmem:[%s1382_s0 + $0xc4] ss:$16 sps:$4 sm:$0xff]  }
  0x12   :  { %v1013_v50 = vld [vmem:[%s1382_s0 + $0xa8] ss:$16 sps:$4 sm:$0xff]   ;;  %v1017_v51 = vld [vmem:[%s1382_s0 + $0xcc] ss:$16 sps:$4 sm:$0xff]   ;;  %v1016_v52 = vld [vmem:[%s1382_s0 + $0xc0] ss:$16 sps:$4 sm:$0xff]  }
  0x13   :  { %539 = vmatpush1.bf16.msra.mxu1 %v966_v14  ;;  %v1020_v53 = vld [vmem:[%s1382_s0 + $0xe4] ss:$16 sps:$4 sm:$0xff]   ;;  %v1019_v54 = vld [vmem:[%s1382_s0 + $0xc8] ss:$16 sps:$4 sm:$0xff]   ;;  %v1023_v55 = vld [vmem:[%s1382_s0 + $0xec] ss:$16 sps:$4 sm:$0xff]  }
  0x14   :  { %896 = vmatpush3.bf16.msra.mxu0 %v967_v15  ;;  %540 = vmatprep.subr.bf16.mxu1 %v1026_v0  ;;  %v1022_v56 = vld [vmem:[%s1382_s0 + $0xe0] ss:$16 sps:$4 sm:$0xff]   ;;  %v1025_v57 = vld [vmem:[%s1382_s0 + $0xe8] ss:$16 sps:$4 sm:$0xff]  }
  0x15   :  { %897 = vmatprep.subr.bf16.mxu0 %v968_v16  ;;  %v1248_v61 = vld [vmem:[%s1384_s2] ss:$0 sm:$0xff] }
  0x17   :  { %541 = vmatpush1.bf16.msra.mxu1 %v969_v17 }
  0x18   :  { %898 = vmatpush3.bf16.msra.mxu0 %v970_v18  ;;  %542 = vmatprep.subr.bf16.mxu1 %v1026_v0 }
  0x19   :  { %899 = vmatprep.subr.bf16.mxu0 %v971_v19 }
  0x1b   :  { %543 = vmatpush1.bf16.msra.mxu1 %v972_v20 }
  0x1c   :  { %900 = vmatpush3.bf16.msra.mxu0 %v973_v21  ;;  %544 = vmatprep.subr.bf16.mxu1 %v1026_v0 }
  0x1d   :  { %901 = vmatprep.subr.bf16.mxu0 %v974_v22 }
  0x1f   :  { %545 = vmatpush1.bf16.msra.mxu1 %v975_v24 }
  0x20   :  { %902 = vmatpush3.bf16.msra.mxu0 %v976_v26  ;;  %560 = vmatprep.subr.bf16.mxu1 %v1026_v0 }
  0x23   :  { %466 = vmatmul.mubr.bf16.vlgmr.msra.gmra.mxu0 %v977_v27  ;;  %561 = vmatpush2.bf16.msra.mxu1 %v980_v28 }
  0x24   :  { %473 = vmatprep.mubr.bf16.mxu0 %v984_v29 }
  0x26   :  { %563 = vmatmul.mubr.bf16.vlgmr.msra.gmra.mxu1 %v981_v30 }
  0x27   :  { %880 = vmatprep.mubr.msk.bf16.mxu1 %vm408_vm0, %v987_v31 }
  0x2b   :  { %474 = vmatmul.mubr.bf16.gmra.mxu0 %v986_v32 }
  0x2c   :  { %481 = vmatprep.mubr.bf16.mxu0 %v990_v33 }
  0x2e   :  { %571 = vmatmul.mubr.bf16.gmra.mxu1 %v989_v34 }
  0x2f   :  { %881 = vmatprep.mubr.msk.bf16.mxu1 %vm408_vm0, %v993_v35 }
  0x33   :  { %482 = vmatmul.mubr.bf16.gmra.mxu0 %v992_v36 }
  0x34   :  { %489 = vmatprep.mubr.bf16.mxu0 %v996_v37 }
  0x36   :  { %579 = vmatmul.mubr.bf16.gmra.mxu1 %v995_v38 }
  0x37   :  { %882 = vmatprep.mubr.msk.bf16.mxu1 %vm408_vm0, %v999_v39 }
  0x3b   :  { %490 = vmatmul.mubr.bf16.gmra.mxu0 %v998_v40 }
  0x3c   :  { %497 = vmatprep.mubr.bf16.mxu0 %v1002_v41 }
  0x3e   :  { %587 = vmatmul.mubr.bf16.gmra.mxu1 %v1001_v42 }
  0x3f   :  { %883 = vmatprep.mubr.msk.bf16.mxu1 %vm408_vm0, %v1005_v43 }
  0x43   :  { %498 = vmatmul.mubr.bf16.gmra.mxu0 %v1004_v44 }
  0x44   :  { %505 = vmatprep.mubr.bf16.mxu0 %v1008_v45 }
  0x46   :  { %595 = vmatmul.mubr.bf16.gmra.mxu1 %v1007_v46 }
  0x47   :  { %884 = vmatprep.mubr.msk.bf16.mxu1 %vm408_vm0, %v1011_v47 }
  0x4b   :  { %506 = vmatmul.mubr.bf16.gmra.mxu0 %v1010_v48 }
  0x4c   :  { %513 = vmatprep.mubr.bf16.mxu0 %v1014_v49 }
  0x4e   :  { %603 = vmatmul.mubr.bf16.gmra.mxu1 %v1013_v50 }
  0x4f   :  { %885 = vmatprep.mubr.msk.bf16.mxu1 %vm408_vm0, %v1017_v51 }
  0x53   :  { %514 = vmatmul.mubr.bf16.gmra.mxu0 %v1016_v52 }
  0x54   :  { %521 = vmatprep.mubr.bf16.mxu0 %v1020_v53 }
  0x56   :  { %611 = vmatmul.mubr.bf16.gmra.mxu1 %v1019_v54 }
  0x57   :  { %886 = vmatprep.mubr.msk.bf16.mxu1 %vm408_vm0, %v1023_v55 }
  0x5b   :  { %522 = vmatmul.mubr.bf16.gmra.mxu0 %v1022_v56 }
  0x5e   :  { %619 = vmatmul.mubr.bf16.gmra.mxu1 %v1025_v57 }
  0xe3   :  { %v903_v59 = vpop.f32.mrf.mxu0 }
  0xe5   :  { %v904_v60 = vpop.f32.mrf.mxu0 }
  0xe6   :  { %v905_v62 = vadd.f32 %v904_v60, %v903_v59  ;;  %v564_v63 = vpop.f32.mrf.mxu1 }
  0xe7   :  { %v906_v0 = vpop.f32.mrf.mxu0 }
  0xe8   :  { %v468_v1 = vadd.f32 %v905_v62, %v1248_v61  ;;  %v566_v2 = vpop.f32.mrf.mxu1 }
  0xe9   :  { %v907_v3 = vpop.f32.mrf.mxu0 }
  0xea   :  { %v1251_v4 = vadd.f32 %v564_v63, %v468_v1  ;;  %v908_v5 = vadd.f32 %v907_v3, %v906_v0  ;;  %v567_v6 = vpop.f32.mrf.mxu1 }
  0xeb   :  { %v909_v7 = vpop.f32.mrf.mxu0 }
  0xec   :  { %628 = vst.msk [vmem:[%s1385_s3] sm:$0xff] %vm627_vm2, %v1251_v4  ;;  %v471_v8 = vadd.f32 %v908_v5, %v1248_v61  ;;  %v569_v9 = vpop.f32.mrf.mxu1  ;;  %v748_v60 = vmul.f32 %v1251_v4, %v1251_v4  ;;  %v711_v5 = vsel %vm627_vm2, %v1251_v4, 0.0 }
  0xed   :  { %v910_v10 = vpop.f32.mrf.mxu0 }
  0xee   :  { %v568_v11 = vadd.f32 %v567_v6, %v471_v8  ;;  %v911_v12 = vadd.f32 %v910_v10, %v909_v7  ;;  %v572_v13 = vpop.f32.mrf.mxu1 }
  0xef   :  { %v912_v14 = vpop.f32.mrf.mxu0 }
  0xf0   :  { %629 = vst.msk [vmem:[%s1385_s3 + $0x8] sm:$0xff] %vm627_vm2, %v568_v11  ;;  %v476_v15 = vadd.f32 %v911_v12, %v1248_v61  ;;  %v574_v16 = vpop.f32.mrf.mxu1  ;;  %v749_v57 = vmul.f32 %v568_v11, %v568_v11  ;;  %v712_v0 = vsel %vm627_vm2, %v568_v11, 0.0  ;;  %v764_v12 = vsel %vm627_vm2, %v748_v60, 0.0 }
  0xf1   :  { %v913_v17 = vpop.f32.mrf.mxu0 }
  0xf2   :  { %v573_v18 = vadd.f32 %v572_v13, %v476_v15  ;;  %v914_v19 = vadd.f32 %v913_v17, %v912_v14  ;;  %v575_v20 = vpop.f32.mrf.mxu1  ;;  %v765_v7 = vsel %vm627_vm2, %v749_v57, 0.0  ;;  %v713_v13 = vadd.f32 %v712_v0, %v711_v5 }
  0xf3   :  { %v915_v21 = vpop.f32.mrf.mxu0 }
  0xf4   :  { %630 = vst.msk [vmem:[%s1385_s3 + $0x10] sm:$0xff] %vm627_vm2, %v573_v18  ;;  %v479_v22 = vadd.f32 %v914_v19, %v1248_v61  ;;  %v577_v23 = vpop.f32.mrf.mxu1  ;;  %v750_v62 = vmul.f32 %v573_v18, %v573_v18  ;;  %v714_v8 = vsel %vm627_vm2, %v573_v18, 0.0 }
  0xf5   :  { %v916_v24 = vpop.f32.mrf.mxu0 }
  0xf6   :  { %v576_v25 = vadd.f32 %v575_v20, %v479_v22  ;;  %v917_v26 = vadd.f32 %v916_v24, %v915_v21  ;;  %v580_v27 = vpop.f32.mrf.mxu1  ;;  %v767_v14 = vsel %vm627_vm2, %v750_v62, 0.0  ;;  %v766_v20 = vadd.f32 %v765_v7, %v764_v12 }
  0xf7   :  { %v918_v28 = vpop.f32.mrf.mxu0  ;;  %v715_v21 = vadd.f32 %v714_v8, %v713_v13 }
  0xf8   :  { %631 = vst.msk [vmem:[%s1385_s3 + $0x18] sm:$0xff] %vm627_vm2, %v576_v25  ;;  %v484_v29 = vadd.f32 %v917_v26, %v1248_v61  ;;  %v582_v30 = vpop.f32.mrf.mxu1  ;;  %v751_v9 = vmul.f32 %v576_v25, %v576_v25  ;;  %v716_v15 = vsel %vm627_vm2, %v576_v25, 0.0 }
  0xf9   :  { %v919_v31 = vpop.f32.mrf.mxu0 }
  0xfa   :  { %v581_v32 = vadd.f32 %v580_v27, %v484_v29  ;;  %v920_v33 = vadd.f32 %v919_v31, %v918_v28  ;;  %v583_v34 = vpop.f32.mrf.mxu1  ;;  %v769_v23 = vsel %vm627_vm2, %v751_v9, 0.0  ;;  %v768_v28 = vadd.f32 %v767_v14, %v766_v20 }
  0xfb   :  { %v921_v35 = vpop.f32.mrf.mxu0  ;;  %v717_v29 = vadd.f32 %v716_v15, %v715_v21 }
  0xfc   :  { %632 = vst.msk [vmem:[%s1385_s3 + $0x20] sm:$0xff] %vm627_vm2, %v581_v32  ;;  %v487_v36 = vadd.f32 %v920_v33, %v1248_v61  ;;  %v585_v37 = vpop.f32.mrf.mxu1  ;;  %v752_v16 = vmul.f32 %v581_v32, %v581_v32  ;;  %v718_v24 = vsel %vm627_vm2, %v581_v32, 0.0 }
  0xfd   :  { %v922_v38 = vpop.f32.mrf.mxu0  ;;  %v770_v37 = vadd.f32 %v769_v23, %v768_v28 }
  0xfe   :  { %v584_v39 = vadd.f32 %v583_v34, %v487_v36  ;;  %v923_v40 = vadd.f32 %v922_v38, %v921_v35  ;;  %v588_v41 = vpop.f32.mrf.mxu1  ;;  %v771_v33 = vsel %vm627_vm2, %v752_v16, 0.0  ;;  %v719_v38 = vadd.f32 %v718_v24, %v717_v29 }
  0xff   :  { %v924_v42 = vpop.f32.mrf.mxu0 }
 0x100   :  { %633 = vst.msk [vmem:[%s1385_s3 + $0x28] sm:$0xff] %vm627_vm2, %v584_v39  ;;  %v492_v43 = vadd.f32 %v923_v40, %v1248_v61  ;;  %v590_v44 = vpop.f32.mrf.mxu1  ;;  %v753_v26 = vmul.f32 %v584_v39, %v584_v39  ;;  %v720_v34 = vsel %vm627_vm2, %v584_v39, 0.0 }
 0x101   :  { %v925_v45 = vpop.f32.mrf.mxu0 }
 0x102   :  { %v589_v46 = vadd.f32 %v588_v41, %v492_v43  ;;  %v926_v47 = vadd.f32 %v925_v45, %v924_v42  ;;  %v591_v48 = vpop.f32.mrf.mxu1  ;;  %v773_v41 = vsel %vm627_vm2, %v753_v26, 0.0  ;;  %v772_v45 = vadd.f32 %v771_v33, %v770_v37 }
 0x103   :  { %v927_v49 = vpop.f32.mrf.mxu0 }
 0x104   :  { %634 = vst.msk [vmem:[%s1385_s3 + $0x30] sm:$0xff] %vm627_vm2, %v589_v46  ;;  %v495_v50 = vadd.f32 %v926_v47, %v1248_v61  ;;  %v593_v51 = vpop.f32.mrf.mxu1  ;;  %v754_v30 = vmul.f32 %v589_v46, %v589_v46  ;;  %v722_v42 = vsel %vm627_vm2, %v589_v46, 0.0  ;;  %v721_v47 = vadd.f32 %v720_v34, %v719_v38 }
 0x105   :  { %v928_v52 = vpop.f32.mrf.mxu0 }
 0x106   :  { %v1289_v53 = vadd.f32 %v591_v48, %v495_v50  ;;  %v929_v54 = vadd.f32 %v928_v52, %v927_v49  ;;  %v596_v55 = vpop.f32.mrf.mxu1  ;;  %v775_v48 = vsel %vm627_vm2, %v754_v30, 0.0 }
 0x107   :  { %v930_v56 = vpop.f32.mrf.mxu0 }
 0x108   :  { %635 = vst.msk [vmem:[%s1385_s3 + $0x38] sm:$0xff] %vm627_vm2, %v1289_v53  ;;  %v500_v58 = vadd.f32 %v929_v54, %v1248_v61  ;;  %v598_v59 = vpop.f32.mrf.mxu1  ;;  %v755_v43 = vmul.f32 %v1289_v53, %v1289_v53  ;;  %v724_v50 = vsel %vm627_vm2, %v1289_v53, 0.0 }
 0x109   :  { %v931_v63 = vpop.f32.mrf.mxu0 }
 0x10a   :  { %v597_v1 = vadd.f32 %v596_v55, %v500_v58  ;;  %v932_v2 = vadd.f32 %v931_v63, %v930_v56  ;;  %v599_v3 = vpop.f32.mrf.mxu1  ;;  %v774_v55 = vadd.f32 %v773_v41, %v772_v45  ;;  %v723_v56 = vadd.f32 %v722_v42, %v721_v47 }
 0x10b   :  { %v933_v6 = vpop.f32.mrf.mxu0  ;;  %v777_v58 = vsel %vm627_vm2, %v755_v43, 0.0 }
 0x10c   :  { %636 = vst.msk [vmem:[%s1385_s3 + $0x40] sm:$0xff] %vm627_vm2, %v597_v1  ;;  %v503_v10 = vadd.f32 %v932_v2, %v1248_v61  ;;  %v601_v11 = vpop.f32.mrf.mxu1  ;;  %v756_v46 = vmul.f32 %v597_v1, %v597_v1  ;;  %v726_v59 = vsel %vm627_vm2, %v597_v1, 0.0  ;;  %v776_v63 = vadd.f32 %v775_v48, %v774_v55 }
 0x10d   :  { %v934_v4 = vpop.f32.mrf.mxu0  ;;  %v725_v0 = vadd.f32 %v724_v50, %v723_v56 }
 0x10e   :  { %v600_v17 = vadd.f32 %v599_v3, %v503_v10  ;;  %v935_v18 = vadd.f32 %v934_v4, %v933_v6  ;;  %v604_v19 = vpop.f32.mrf.mxu1  ;;  %v779_v5 = vsel %vm627_vm2, %v756_v46, 0.0  ;;  %v778_v9 = vadd.f32 %v777_v58, %v776_v63 }
 0x10f   :  { %v936_v22 = vpop.f32.mrf.mxu0  ;;  %v727_v10 = vadd.f32 %v726_v59, %v725_v0 }
 0x110   :  { %637 = vst.msk [vmem:[%s1385_s3 + $0x48] sm:$0xff] %vm627_vm2, %v600_v17  ;;  %v508_v27 = vadd.f32 %v935_v18, %v1248_v61  ;;  %v606_v25 = vpop.f32.mrf.mxu1  ;;  %v757_v60 = vmul.f32 %v600_v17, %v600_v17  ;;  %v728_v6 = vsel %vm627_vm2, %v600_v17, 0.0  ;;  %v780_v16 = vadd.f32 %v779_v5, %v778_v9  ;;  %v807_v9 = vld [vmem:[%s1383_s4] sm:$0x3] }
 0x111   :  { %v937_v31 = vpop.f32.mrf.mxu0  ;;  %v729_v17 = vadd.f32 %v728_v6, %v727_v10 }
 0x112   :  { %v605_v35 = vadd.f32 %v604_v19, %v508_v27  ;;  %v938_v36 = vadd.f32 %v937_v31, %v936_v22  ;;  %v607_v32 = vpop.f32.mrf.mxu1  ;;  %v781_v12 = vsel %vm627_vm2, %v757_v60, 0.0 }
 0x113   :  { %v939_v40 = vpop.f32.mrf.mxu0  ;;  %v782_v26 = vadd.f32 %v781_v12, %v780_v16 }
 0x114   :  { %638 = vst.msk [vmem:[%s1385_s3 + $0x50] sm:$0xff] %vm627_vm2, %v605_v35  ;;  %v511_v39 = vadd.f32 %v938_v36, %v1248_v61  ;;  %v609_v44 = vpop.f32.mrf.mxu1  ;;  %v758_v2 = vmul.f32 %v605_v35, %v605_v35  ;;  %v730_v13 = vsel %vm627_vm2, %v605_v35, 0.0 }
 0x115   :  { %v940_v49 = vpop.f32.mrf.mxu0  ;;  %v731_v27 = vadd.f32 %v730_v13, %v729_v17 }
 0x116   :  { %v608_v51 = vadd.f32 %v607_v32, %v511_v39  ;;  %v941_v52 = vadd.f32 %v940_v49, %v939_v40  ;;  %v612_v54 = vpop.f32.mrf.mxu1  ;;  %v783_v18 = vsel %vm627_vm2, %v758_v2, 0.0 }
 0x117   :  { %v942_v57 = vpop.f32.mrf.mxu0  ;;  %v784_v34 = vadd.f32 %v783_v18, %v782_v26 }
 0x118   :  { %639 = vst.msk [vmem:[%s1385_s3 + $0x58] sm:$0xff] %vm627_vm2, %v608_v51  ;;  %v516_v62 = vadd.f32 %v941_v52, %v1248_v61  ;;  %v614_v53 = vpop.f32.mrf.mxu1  ;;  %v759_v14 = vmul.f32 %v608_v51, %v608_v51  ;;  %v732_v20 = vsel %vm627_vm2, %v608_v51, 0.0 }
 0x119   :  { %v943_v3 = vpop.f32.mrf.mxu0  ;;  %v733_v35 = vadd.f32 %v732_v20, %v731_v27 }
 0x11a   :  { %v613_v7 = vadd.f32 %v612_v54, %v516_v62  ;;  %v944_v8 = vadd.f32 %v943_v3, %v942_v57  ;;  %v615_v1 = vpop.f32.mrf.mxu1  ;;  %v785_v28 = vsel %vm627_vm2, %v759_v14, 0.0 }
 0x11b   :  { %v945_v11 = vpop.f32.mrf.mxu0  ;;  %v786_v42 = vadd.f32 %v785_v28, %v784_v34 }
 0x11c   :  { %640 = vst.msk [vmem:[%s1385_s3 + $0x60] sm:$0xff] %vm627_vm2, %v613_v7  ;;  %v519_v4 = vadd.f32 %v944_v8, %v1248_v61  ;;  %v617_v15 = vpop.f32.mrf.mxu1  ;;  %v760_v21 = vmul.f32 %v613_v7, %v613_v7  ;;  %v734_v29 = vsel %vm627_vm2, %v613_v7, 0.0 }
 0x11d   :  { %v946_v19 = vpop.f32.mrf.mxu0  ;;  %v735_v43 = vadd.f32 %v734_v29, %v733_v35 }
 0x11e   :  { %v616_v22 = vadd.f32 %v615_v1, %v519_v4  ;;  %v947_v23 = vadd.f32 %v946_v19, %v945_v11  ;;  %v620_v24 = vpop.f32.mrf.mxu1  ;;  %v787_v32 = vsel %vm627_vm2, %v760_v21, 0.0 }
 0x11f   :  { %v948_v25 = vpop.f32.mrf.mxu0  ;;  %v788_v49 = vadd.f32 %v787_v32, %v786_v42 }
 0x120   :  { %641 = vst.msk [vmem:[%s1385_s3 + $0x68] sm:$0xff] %vm627_vm2, %v616_v22  ;;  %v761_v30 = vmul.f32 %v616_v22, %v616_v22  ;;  %v524_v31 = vadd.f32 %v947_v23, %v1248_v61  ;;  %v622_v33 = vpop.f32.mrf.mxu1  ;;  %v736_v37 = vsel %vm627_vm2, %v616_v22, 0.0 }
 0x121   :  { %v949_v36 = vpop.f32.mrf.mxu0  ;;  %v737_v50 = vadd.f32 %v736_v37, %v735_v43 }
 0x122   :  { %v621_v38 = vadd.f32 %v620_v24, %v524_v31  ;;  %v950_v40 = vadd.f32 %v949_v36, %v948_v25  ;;  %v623_v41 = vpop.f32.mrf.mxu1  ;;  %v789_v39 = vsel %vm627_vm2, %v761_v30, 0.0 }
 0x123   :  { %v790_v52 = vadd.f32 %v789_v39, %v788_v49 }
 0x124   :  { %642 = vst.msk [vmem:[%s1385_s3 + $0x70] sm:$0xff] %vm627_vm2, %v621_v38  ;;  %v738_v44 = vsel %vm627_vm2, %v621_v38, 0.0  ;;  %v762_v45 = vmul.f32 %v621_v38, %v621_v38  ;;  %v527_v47 = vadd.f32 %v950_v40, %v1248_v61  ;;  %v625_v48 = vpop.f32.mrf.mxu1 }
 0x125   :  { %v739_v54 = vadd.f32 %v738_v44, %v737_v50 }
 0x126   :  { %v791_v46 = vsel %vm627_vm2, %v762_v45, 0.0  ;;  %v624_v51 = vadd.f32 %v623_v41, %v527_v47 }
 0x127   :  { %v792_v57 = vadd.f32 %v791_v46, %v790_v52 }
 0x128   :  { %643 = vst.msk [vmem:[%s1385_s3 + $0x78] sm:$0xff] %vm627_vm2, %v624_v51  ;;  %v740_v55 = vsel %vm627_vm2, %v624_v51, 0.0  ;;  %v763_v56 = vmul.f32 %v624_v51, %v624_v51 }
 0x129   :  { %v741_v58 = vadd.f32 %v740_v55, %v739_v54 }
 0x12a   :  { %v793_v61 = vsel %vm627_vm2, %v763_v56, 0.0 }
 0x12b   :  { %v742_v59 = vrot.slane %v741_v58, 4  ;;  %v794_v60 = vadd.f32 %v793_v61, %v792_v57 }
 0x12d   :  { %v743_v62 = vadd.f32 %v742_v59, %v741_v58  ;;  %v795_v53 = vrot.slane %v794_v60, 4 }
 0x12f   :  { %v744_v63 = vrot.slane %v743_v62, 2  ;;  %v796_v0 = vadd.f32 %v795_v53, %v794_v60 }
 0x131   :  { %v745_v2 = vadd.f32 %v744_v63, %v743_v62  ;;  %v797_v3 = vrot.slane %v796_v0, 2 }
 0x133   :  { %v746_v5 = vrot.slane %v745_v2, 1  ;;  %v798_v6 = vadd.f32 %v797_v3, %v796_v0 }
 0x135   :  { %v799_v7 = vrot.slane %v798_v6, 1  ;;  %v747_v8 = vadd.f32 %v746_v5, %v745_v2 }
 0x137   :  { %v800_v1 = vadd.f32 %v799_v7, %v798_v6 }
 0x139   :  { %v809_v10 = vsel %vm808_vm3, %v747_v8, %v800_v1 }
 0x13a   :  { %v810_v11 = vadd.f32 %v809_v10, %v807_v9 }
 0x13c   :  { %812 = vst.msk [vmem:[%s1383_s4] sm:$0x3] %vm805_vm1, %v810_v11 }

// kernel: discriminator_forward.12
= control target key start
LH: loop header
LB: loop body
LE: loop exit
PB: predicated region body
PF: predicated region fallthrough
CT: control target
= control target key end

     0   :  { %v40_v4 = vlaneseq  ;;  %vm176_vm0 = vcmask 261120   ;;  %s464_s1 = inlined_call_operand.vmem [shape: f32[2,32], index: 1, kind: input, shape index: {}]   ;;  %s465_s0 = inlined_call_operand.vmem [shape: f32[128,32], index: 0, kind: input, shape index: {}]   ;;  %s466_s2 = inlined_call_operand.vmem [shape: f32[1,32], index: 2, kind: input, shape index: {}]   ;;  %s467_s3 = inlined_call_operand.vmem [shape: f32[1,32], index: 3, kind: input, shape index: {}]   ;;  %s468_s4 = inlined_call_operand.vmem [shape: f32[128,32], index: 4, kind: output, shape index: {}]  }
   0x1   :  { %v33_v0 = vld [vmem:[%s464_s1] sm:$0x3]  ;;  %v18_v11 = vld [vmem:[%s465_s0 + $0x8] sm:$0xff]  ;;  %v19_v12 = vld [vmem:[%s465_s0 + $0x10] sm:$0xff] }
   0x2   :  { %v34_v1 = vmul.f32 0.0078125, %v33_v0  ;;  %v41_v7 = vshrl.u32 %v40_v4, 7  ;;  %v17_v9 = vld [vmem:[%s465_s0] sm:$0xff]  ;;  %v20_v13 = vld [vmem:[%s465_s0 + $0x18] sm:$0xff]  ;;  %v22_v15 = vld [vmem:[%s465_s0 + $0x28] sm:$0xff] }
   0x3   :  { %v21_v14 = vld [vmem:[%s465_s0 + $0x20] sm:$0xff]  ;;  %v23_v16 = vld [vmem:[%s465_s0 + $0x30] sm:$0xff]  ;;  %v24_v18 = vld [vmem:[%s465_s0 + $0x38] sm:$0xff] }
   0x4   :  { %v35_v2 = vmul.f32 %v34_v1, %v34_v1  ;;  %v42_v8 = vsub.s32 0, %v41_v7  ;;  %v64_v17 = vsub.s32 1, %v41_v7  ;;  %v258_v19 = vld [vmem:[%s465_s0 + $0x40] sm:$0xff]  ;;  %v263_v20 = vld [vmem:[%s465_s0 + $0x48] sm:$0xff]  ;;  %v269_v22 = vld [vmem:[%s465_s0 + $0x50] sm:$0xff] }
   0x5   :  { %v274_v23 = vld [vmem:[%s465_s0 + $0x58] sm:$0xff]  ;;  %v279_v24 = vld [vmem:[%s465_s0 + $0x60] sm:$0xff]  ;;  %v288_v29 = vld [vmem:[%s465_s0 + $0x68] sm:$0xff] }
   0x6   :  { %v37_v3 = vrot.slane %v35_v2, 7  ;;  %v232_v10 = vrot.slane %v34_v1, %v42_v8  ;;  %v293_v30 = vld [vmem:[%s465_s0 + $0x70] sm:$0xff]  ;;  %v298_v31 = vld [vmem:[%s465_s0 + $0x78] sm:$0xff]  ;;  %v316_v41 = vld [vmem:[%s466_s2] ss:$0 sm:$0xff] }
   0x7   :  { %v333_v50 = vld [vmem:[%s467_s3] ss:$0 sm:$0xff] }
   0x8   :  { %v39_v5 = vsub.f32 %v34_v1, %v37_v3  ;;  %v44_v21 = vsub.f32 %v17_v9, %v232_v10  ;;  %v45_v25 = vsub.f32 %v18_v11, %v232_v10  ;;  %v46_v26 = vsub.f32 %v19_v12, %v232_v10 }
   0x9   :  { %v47_v27 = vsub.f32 %v20_v13, %v232_v10  ;;  %v48_v28 = vsub.f32 %v21_v14, %v232_v10  ;;  %v49_v33 = vsub.f32 %v22_v15, %v232_v10  ;;  %v50_v34 = vsub.f32 %v23_v16, %v232_v10 }
   0xa   :  { %v60_v6 = vadd.f32 1e-05, %v39_v5  ;;  %v51_v35 = vsub.f32 %v24_v18, %v232_v10  ;;  %v52_v36 = vsub.f32 %v258_v19, %v232_v10  ;;  %v53_v38 = vsub.f32 %v263_v20, %v232_v10 }
   0xb   :  { %v54_v39 = vsub.f32 %v269_v22, %v232_v10  ;;  %v55_v40 = vsub.f32 %v274_v23, %v232_v10  ;;  %v56_v42 = vsub.f32 %v279_v24, %v232_v10  ;;  %v57_v43 = vsub.f32 %v288_v29, %v232_v10 }
   0xc   :  { %199 = vrsqrt.f32 %v60_v6  ;;  %v58_v44 = vsub.f32 %v293_v30, %v232_v10  ;;  %v59_v45 = vsub.f32 %v298_v31, %v232_v10 }
  0x19   :  { %v200_v32 = vpop.eup %199 }
  0x1a   :  { %v305_v37 = vrot.slane %v200_v32, %v64_v17 }
  0x1c   :  { %v66_v46 = vmul.f32 %v305_v37, %v44_v21  ;;  %v67_v47 = vmul.f32 %v305_v37, %v45_v25  ;;  %v68_v48 = vmul.f32 %v305_v37, %v46_v26  ;;  %v69_v49 = vmul.f32 %v305_v37, %v47_v27 }
  0x1d   :  { %v70_v51 = vmul.f32 %v305_v37, %v48_v28  ;;  %v71_v52 = vmul.f32 %v305_v37, %v49_v33  ;;  %v72_v53 = vmul.f32 %v305_v37, %v50_v34  ;;  %v73_v54 = vmul.f32 %v305_v37, %v51_v35 }
  0x1e   :  { %v89_v55 = vmul.f32 %v316_v41, %v66_v46  ;;  %v90_v56 = vmul.f32 %v316_v41, %v67_v47  ;;  %v91_v57 = vmul.f32 %v316_v41, %v68_v48  ;;  %v92_v58 = vmul.f32 %v316_v41, %v69_v49 }
  0x1f   :  { %v93_v59 = vmul.f32 %v316_v41, %v70_v51  ;;  %v94_v60 = vmul.f32 %v316_v41, %v71_v52  ;;  %v95_v61 = vmul.f32 %v316_v41, %v72_v53  ;;  %v96_v62 = vmul.f32 %v316_v41, %v73_v54 }
  0x20   :  { %v112_v63 = vadd.f32 %v333_v50, %v89_v55  ;;  %v113_v0 = vadd.f32 %v333_v50, %v90_v56  ;;  %v114_v1 = vadd.f32 %v333_v50, %v91_v57  ;;  %v115_v2 = vadd.f32 %v333_v50, %v92_v58 }
  0x21   :  { %v116_v3 = vadd.f32 %v333_v50, %v93_v59  ;;  %v117_v4 = vadd.f32 %v333_v50, %v94_v60  ;;  %v118_v5 = vadd.f32 %v333_v50, %v95_v61  ;;  %v119_v6 = vadd.f32 %v333_v50, %v96_v62 }
  0x22   :  { %vm128_vm1 = vcmp.gt.f32.partialorder %v112_v63, 0.0  ;;  %v144_v7 = vmul.f32 0.2, %v112_v63  ;;  %vm129_vm2 = vcmp.gt.f32.partialorder %v113_v0, 0.0  ;;  %v145_v8 = vmul.f32 0.2, %v113_v0 }
  0x23   :  { %vm130_vm3 = vcmp.gt.f32.partialorder %v114_v1, 0.0  ;;  %v146_v9 = vmul.f32 0.2, %v114_v1  ;;  %vm131_vm4 = vcmp.gt.f32.partialorder %v115_v2, 0.0  ;;  %v147_v11 = vmul.f32 0.2, %v115_v2 }
  0x24   :  { %v160_v12 = vsel %vm128_vm1, %v112_v63, %v144_v7  ;;  %v161_v13 = vsel %vm129_vm2, %v113_v0, %v145_v8  ;;  %vm132_vm5 = vcmp.gt.f32.partialorder %v116_v3, 0.0  ;;  %v148_v14 = vmul.f32 0.2, %v116_v3 }
  0x25   :  { %177 = vst.msk [vmem:[%s468_s4] sm:$0xff] %vm176_vm0, %v160_v12  ;;  %178 = vst.msk [vmem:[%s468_s4 + $0x8] sm:$0xff] %vm176_vm0, %v161_v13  ;;  %v162_v15 = vsel %vm130_vm3, %v114_v1, %v146_v9  ;;  %v163_v16 = vsel %vm131_vm4, %v115_v2, %v147_v11  ;;  %vm133_vm6 = vcmp.gt.f32.partialorder %v117_v4, 0.0  ;;  %v149_v17 = vmul.f32 0.2, %v117_v4 }
  0x26   :  { %179 = vst.msk [vmem:[%s468_s4 + $0x10] sm:$0xff] %vm176_vm0, %v162_v15  ;;  %180 = vst.msk [vmem:[%s468_s4 + $0x18] sm:$0xff] %vm176_vm0, %v163_v16  ;;  %v164_v18 = vsel %vm132_vm5, %v116_v3, %v148_v14  ;;  %vm134_vm7 = vcmp.gt.f32.partialorder %v118_v5, 0.0  ;;  %v150_v20 = vmul.f32 0.2, %v118_v5  ;;  %vm135_vm8 = vcmp.gt.f32.partialorder %v119_v6, 0.0 }
  0x27   :  { %181 = vst.msk [vmem:[%s468_s4 + $0x20] sm:$0xff] %vm176_vm0, %v164_v18  ;;  %v165_v21 = vsel %vm133_vm6, %v117_v4, %v149_v17  ;;  %v151_v25 = vmul.f32 0.2, %v119_v6  ;;  %v74_v26 = vmul.f32 %v305_v37, %v52_v36  ;;  %v75_v27 = vmul.f32 %v305_v37, %v53_v38 }
  0x28   :  { %182 = vst.msk [vmem:[%s468_s4 + $0x28] sm:$0xff] %vm176_vm0, %v165_v21  ;;  %v166_v28 = vsel %vm134_vm7, %v118_v5, %v150_v20  ;;  %v76_v32 = vmul.f32 %v305_v37, %v54_v39  ;;  %v77_v19 = vmul.f32 %v305_v37, %v55_v40  ;;  %v78_v33 = vmul.f32 %v305_v37, %v56_v42 }
  0x29   :  { %183 = vst.msk [vmem:[%s468_s4 + $0x30] sm:$0xff] %vm176_vm0, %v166_v28  ;;  %v167_v34 = vsel %vm135_vm8, %v119_v6, %v151_v25  ;;  %v97_v22 = vmul.f32 %v316_v41, %v74_v26  ;;  %v98_v35 = vmul.f32 %v316_v41, %v75_v27  ;;  %v79_v23 = vmul.f32 %v305_v37, %v57_v43 }
  0x2a   :  { %184 = vst.msk [vmem:[%s468_s4 + $0x38] sm:$0xff] %vm176_vm0, %v167_v34  ;;  %v99_v24 = vmul.f32 %v316_v41, %v76_v32  ;;  %v100_v36 = vmul.f32 %v316_v41, %v77_v19  ;;  %v101_v38 = vmul.f32 %v316_v41, %v78_v33  ;;  %v80_v39 = vmul.f32 %v305_v37, %v58_v44 }
  0x2b   :  { %v120_v29 = vadd.f32 %v333_v50, %v97_v22  ;;  %v121_v40 = vadd.f32 %v333_v50, %v98_v35  ;;  %v102_v42 = vmul.f32 %v316_v41, %v79_v23  ;;  %v81_v43 = vmul.f32 %v305_v37, %v59_v45 }
  0x2c   :  { %v122_v46 = vadd.f32 %v333_v50, %v99_v24  ;;  %v123_v47 = vadd.f32 %v333_v50, %v100_v36  ;;  %v124_v48 = vadd.f32 %v333_v50, %v101_v38  ;;  %v103_v30 = vmul.f32 %v316_v41, %v80_v39 }
  0x2d   :  { %vm136_vm9 = vcmp.gt.f32.partialorder %v120_v29, 0.0  ;;  %v152_v44 = vmul.f32 0.2, %v120_v29  ;;  %vm137_vm10 = vcmp.gt.f32.partialorder %v121_v40, 0.0  ;;  %v153_v49 = vmul.f32 0.2, %v121_v40 }
  0x2e   :  { %vm138_vm11 = vcmp.gt.f32.partialorder %v122_v46, 0.0  ;;  %v154_v51 = vmul.f32 0.2, %v122_v46  ;;  %vm139_vm12 = vcmp.gt.f32.partialorder %v123_v47, 0.0  ;;  %v155_v52 = vmul.f32 0.2, %v123_v47 }
  0x2f   :  { %v168_v53 = vsel %vm136_vm9, %v120_v29, %v152_v44  ;;  %v169_v10 = vsel %vm137_vm10, %v121_v40, %v153_v49  ;;  %vm140_vm13 = vcmp.gt.f32.partialorder %v124_v48, 0.0  ;;  %v156_v31 = vmul.f32 0.2, %v124_v48 }
  0x30   :  { %185 = vst.msk [vmem:[%s468_s4 + $0x40] sm:$0xff] %vm176_vm0, %v168_v53  ;;  %186 = vst.msk [vmem:[%s468_s4 + $0x48] sm:$0xff] %vm176_vm0, %v169_v10  ;;  %v170_v37 = vsel %vm138_vm11, %v122_v46, %v154_v51  ;;  %v171_v45 = vsel %vm139_vm12, %v123_v47, %v155_v52  ;;  %v125_v54 = vadd.f32 %v333_v50, %v102_v42 }
  0x31   :  { %v126_v55 = vadd.f32 %v333_v50, %v103_v30  ;;  %187 = vst.msk [vmem:[%s468_s4 + $0x50] sm:$0xff] %vm176_vm0, %v170_v37  ;;  %188 = vst.msk [vmem:[%s468_s4 + $0x58] sm:$0xff] %vm176_vm0, %v171_v45  ;;  %v172_v56 = vsel %vm140_vm13, %v124_v48, %v156_v31  ;;  %v104_v57 = vmul.f32 %v316_v41, %v81_v43 }
  0x32   :  { %189 = vst.msk [vmem:[%s468_s4 + $0x60] sm:$0xff] %vm176_vm0, %v172_v56  ;;  %vm141_vm14 = vcmp.gt.f32.partialorder %v125_v54, 0.0  ;;  %v157_v58 = vmul.f32 0.2, %v125_v54 }
  0x33   :  { %vm142_vm15 = vcmp.gt.f32.partialorder %v126_v55, 0.0  ;;  %v158_v59 = vmul.f32 0.2, %v126_v55  ;;  %v127_v60 = vadd.f32 %v333_v50, %v104_v57 }
  0x34   :  { %v173_v61 = vsel %vm141_vm14, %v125_v54, %v157_v58 }
  0x35   :  { %v174_v62 = vsel %vm142_vm15, %v126_v55, %v158_v59  ;;  %190 = vst.msk [vmem:[%s468_s4 + $0x68] sm:$0xff] %vm176_vm0, %v173_v61  ;;  %vm143_vm1 = vcmp.gt.f32.partialorder %v127_v60, 0.0  ;;  %v159_v41 = vmul.f32 0.2, %v127_v60 }
  0x36   :  { %191 = vst.msk [vmem:[%s468_s4 + $0x70] sm:$0xff] %vm176_vm0, %v174_v62 }
  0x37   :  { %v175_v63 = vsel %vm143_vm1, %v127_v60, %v159_v41 }
  0x38   :  { %192 = vst.msk [vmem:[%s468_s4 + $0x78] sm:$0xff] %vm176_vm0, %v175_v63 }

// kernel: discriminator_forward.13
= control target key start
LH: loop header
LB: loop body
LE: loop exit
PB: predicated region body
PF: predicated region fallthrough
CT: control target
= control target key end

     0   :  { %vm510_vm0 = vcmask 261120   ;;  %vm771_vm1 = vcmask 517120   ;;  %vm713_vm2 = vcmask 523264   ;;  %vm774_vm3 = vcmask 1040384   ;;  %s1277_s1 = inlined_call_operand.vmem [shape: bf16[800,64], index: 1, kind: input, shape index: {}]   ;;  %s1278_s0 = inlined_call_operand.vmem [shape: bf16[32,800], index: 0, kind: input, shape index: {}]   ;;  %s1279_s4 = inlined_call_operand.vmem [shape: f32[2,64], index: 4, kind: output, shape index: {1}]   ;;  %s1280_s2 = inlined_call_operand.vmem [shape: f32[1,64], index: 2, kind: input, shape index: {}]   ;;  %s1281_s3 = inlined_call_operand.vmem [shape: f32[32,64], index: 3, kind: output, shape index: {0}]  }
   0x1   :  { %v951_v0 = vld [vmem:[%s1277_s1 + $0x78] sm:$0xff]   ;;  %v955_v4 = vld [vmem:[%s1277_s1 + $0x70] sm:$0xff]   ;;  %v959_v8 = vld [vmem:[%s1277_s1 + $0x68] sm:$0xff]  }
   0x2   :  { %v952_v1 = vld [vmem:[%s1277_s1 + $0x38] sm:$0xff]   ;;  %854 = vmatprep.subr.bf16.mxu0 %v951_v0  ;;  %v956_v5 = vld [vmem:[%s1277_s1 + $0x30] sm:$0xff]   ;;  %v960_v9 = vld [vmem:[%s1277_s1 + $0x28] sm:$0xff]   ;;  %v1021_v0 = vmov 0.0  }
   0x3   :  { %v953_v2 = vld [vmem:[%s1277_s1 + $0xf8] sm:$0xff]   ;;  %855 = vmatpush3.bf16.msra.mxu0 %v952_v1  ;;  %v957_v6 = vld [vmem:[%s1277_s1 + $0xf0] sm:$0xff]   ;;  %v961_v10 = vld [vmem:[%s1277_s1 + $0xe8] sm:$0xff]   ;;  %772 = vst.msk [vmem:[%s1279_s4] sm:$0x3] %vm771_vm1, %v1021_v0 }
   0x4   :  { %v954_v3 = vld [vmem:[%s1277_s1 + $0xb8] sm:$0xff]   ;;  %882 = vmatprep.subr.bf16.mxu1 %v953_v2  ;;  %856 = vmatprep.subr.bf16.mxu0 %v955_v4  ;;  %v958_v7 = vld [vmem:[%s1277_s1 + $0xb0] sm:$0xff]   ;;  %v962_v11 = vld [vmem:[%s1277_s1 + $0xa8] sm:$0xff]  }
   0x5   :  { %883 = vmatpush3.bf16.msra.mxu1 %v954_v3  ;;  %v963_v12 = vld [vmem:[%s1277_s1 + $0x60] sm:$0xff]   ;;  %v967_v16 = vld [vmem:[%s1277_s1 + $0x58] sm:$0xff]   ;;  %v971_v20 = vld [vmem:[%s1277_s1 + $0x50] sm:$0xff]  }
   0x6   :  { %884 = vmatprep.subr.bf16.mxu1 %v957_v6  ;;  %v964_v13 = vld [vmem:[%s1277_s1 + $0x20] sm:$0xff]   ;;  %v968_v17 = vld [vmem:[%s1277_s1 + $0x18] sm:$0xff]   ;;  %v972_v21 = vld [vmem:[%s1277_s1 + $0x10] sm:$0xff]  }
   0x7   :  { %857 = vmatpush3.bf16.msra.mxu0 %v956_v5  ;;  %v965_v14 = vld [vmem:[%s1277_s1 + $0xe0] sm:$0xff]   ;;  %v969_v18 = vld [vmem:[%s1277_s1 + $0xd8] sm:$0xff]   ;;  %v973_v22 = vld [vmem:[%s1277_s1 + $0xd0] sm:$0xff]  }
   0x8   :  { %858 = vmatprep.subr.bf16.mxu0 %v959_v8  ;;  %v966_v15 = vld [vmem:[%s1277_s1 + $0xa0] sm:$0xff]   ;;  %v970_v19 = vld [vmem:[%s1277_s1 + $0x98] sm:$0xff]   ;;  %v974_v23 = vld [vmem:[%s1277_s1 + $0x90] sm:$0xff]  }
   0x9   :  { %885 = vmatpush3.bf16.msra.mxu1 %v958_v7  ;;  %v975_v24 = vld [vmem:[%s1277_s1 + $0x48] sm:$0xff]   ;;  %v979_v28 = vld [vmem:[%s1277_s1 + $0x40] sm:$0xff]   ;;  %v986_v34 = vld [vmem:[%s1277_s1 + $0x178] sm:$0xff]  }
   0xa   :  { %886 = vmatprep.subr.bf16.mxu1 %v961_v10  ;;  %v976_v25 = vld [vmem:[%s1277_s1 + $0x8] sm:$0xff]   ;;  %v980_v29 = vld [vmem:[%s1277_s1] sm:$0xff]   ;;  %v990_v37 = vld [vmem:[%s1277_s1 + $0x138] sm:$0xff]  }
   0xb   :  { %859 = vmatpush3.bf16.msra.mxu0 %v960_v9  ;;  %v977_v26 = vld [vmem:[%s1277_s1 + $0xc8] sm:$0xff]   ;;  %v981_v30 = vld [vmem:[%s1277_s1 + $0xc0] sm:$0xff]   ;;  %v991_v38 = vld [vmem:[%s1277_s1 + $0x170] sm:$0xff]  }
   0xc   :  { %860 = vmatprep.subr.bf16.mxu0 %v963_v12  ;;  %v978_v27 = vld [vmem:[%s1277_s1 + $0x88] sm:$0xff]   ;;  %v982_v31 = vld [vmem:[%s1278_s0] ss:$28 sps:$4 sm:$0xff]   ;;  %v992_v39 = vld [vmem:[%s1277_s1 + $0x130] sm:$0xff]  }
   0xd   :  { %887 = vmatpush3.bf16.msra.mxu1 %v962_v11  ;;  %v984_v32 = vld [vmem:[%s1278_s0 + $0x4] ss:$28 sps:$4 sm:$0xff]   ;;  %v989_v36 = vld [vmem:[%s1278_s0 + $0xc] ss:$28 sps:$4 sm:$0xff]   ;;  %v998_v44 = vld [vmem:[%s1278_s0 + $0x3c] ss:$28 sps:$4 sm:$0xff]  }
   0xe   :  { %888 = vmatprep.subr.bf16.mxu1 %v965_v14  ;;  %v985_v33 = vld [vmem:[%s1277_s1 + $0x80] sm:$0xff]   ;;  %549 = vmatprep.mubr.bf16.mxu0 %v984_v32  ;;  %v993_v40 = vld [vmem:[%s1277_s1 + $0x168] sm:$0xff]   ;;  %v997_v45 = vld [vmem:[%s1277_s1 + $0x158] sm:$0xff]  }
   0xf   :  { %861 = vmatpush3.bf16.msra.mxu0 %v964_v13  ;;  %v987_v35 = vld [vmem:[%s1278_s0 + $0x8] ss:$28 sps:$4 sm:$0xff]   ;;  %598 = vmatprep.mubr.bf16.mxu1 %v989_v36  ;;  %v1001_v46 = vld [vmem:[%s1278_s0 + $0x38] ss:$28 sps:$4 sm:$0xff]   ;;  %v1004_v48 = vld [vmem:[%s1278_s0 + $0x40] ss:$28 sps:$4 sm:$0xff]  }
  0x10   :  { %862 = vmatprep.subr.bf16.mxu0 %v967_v16  ;;  %v994_v41 = vld [vmem:[%s1277_s1 + $0x128] sm:$0xff]   ;;  %v995_v42 = vld [vmem:[%s1277_s1 + $0x160] sm:$0xff]   ;;  %v1000_v49 = vld [vmem:[%s1277_s1 + $0x118] sm:$0xff]  }
  0x11   :  { %889 = vmatpush3.bf16.msra.mxu1 %v966_v15  ;;  %v996_v43 = vld [vmem:[%s1277_s1 + $0x120] sm:$0xff]   ;;  %v1007_v50 = vld [vmem:[%s1277_s1 + $0x188] sm:$0xff]   ;;  %v1005_v51 = vld [vmem:[%s1277_s1 + $0x150] sm:$0xff]  }
  0x12   :  { %890 = vmatprep.subr.bf16.mxu1 %v969_v18  ;;  %v1002_v47 = vld [vmem:[%s1278_s0 + $0x44] ss:$28 sps:$4 sm:$0xff]   ;;  %v1006_v52 = vld [vmem:[%s1277_s1 + $0x110] sm:$0xff]   ;;  %v1008_v53 = vld [vmem:[%s1277_s1 + $0x148] sm:$0xff]  }
  0x13   :  { %863 = vmatpush3.bf16.msra.mxu0 %v968_v17  ;;  %v1012_v54 = vld [vmem:[%s1277_s1 + $0x180] sm:$0xff]   ;;  %v1009_v55 = vld [vmem:[%s1277_s1 + $0x108] sm:$0xff]   ;;  %v1015_v56 = vld [vmem:[%s1278_s0 + $0x14] ss:$28 sps:$4 sm:$0xff]  }
  0x14   :  { %864 = vmatprep.subr.bf16.mxu0 %v971_v20  ;;  %v1016_v57 = vld [vmem:[%s1278_s0 + $0x18] ss:$28 sps:$4 sm:$0xff]   ;;  %v1017_v58 = vld [vmem:[%s1278_s0 + $0x50] ss:$28 sps:$4 sm:$0xff]   ;;  %v1010_v59 = vld [vmem:[%s1277_s1 + $0x140] sm:$0xff]  }
  0x15   :  { %891 = vmatpush3.bf16.msra.mxu1 %v970_v19  ;;  %v1011_v60 = vld [vmem:[%s1277_s1 + $0x100] sm:$0xff]   ;;  %v1013_v61 = vld [vmem:[%s1278_s0 + $0x10] ss:$28 sps:$4 sm:$0xff]  }
  0x16   :  { %892 = vmatprep.subr.bf16.mxu1 %v973_v22  ;;  %v1018_v62 = vld [vmem:[%s1278_s0 + $0x4c] ss:$28 sps:$4 sm:$0xff]   ;;  %v787_v16 = vld [vmem:[%s1280_s2] ss:$0 sm:$0xff] }
  0x17   :  { %865 = vmatpush3.bf16.msra.mxu0 %v972_v21  ;;  %v1020_v63 = vld [vmem:[%s1278_s0 + $0x48] ss:$28 sps:$4 sm:$0xff]  }
  0x18   :  { %866 = vmatprep.subr.bf16.mxu0 %v975_v24 }
  0x19   :  { %893 = vmatpush3.bf16.msra.mxu1 %v974_v23 }
  0x1a   :  { %894 = vmatprep.subr.bf16.mxu1 %v977_v26 }
  0x1b   :  { %867 = vmatpush3.bf16.msra.mxu0 %v976_v25 }
  0x1c   :  { %868 = vmatprep.subr.bf16.mxu0 %v979_v28 }
  0x1d   :  { %895 = vmatpush3.bf16.msra.mxu1 %v978_v27 }
  0x1e   :  { %896 = vmatprep.subr.bf16.mxu1 %v981_v30 }
  0x1f   :  { %869 = vmatpush3.bf16.msra.mxu0 %v980_v29 }
  0x20   :  { %910 = vmatprep.subr.bf16.mxu0 %v986_v34 }
  0x21   :  { %897 = vmatpush3.bf16.msra.mxu1 %v985_v33 }
  0x22   :  { %550 = vmatmul.mubr.bf16.vlgmr.msra.gmra.mxu0 %v982_v31  ;;  %942 = vmatprep.subr.bf16.mxu1 %v1007_v50 }
  0x23   :  { %911 = vmatpush3.bf16.msra.mxu0 %v990_v37  ;;  %557 = vmatprep.mubr.bf16.mxu0 %v998_v44 }
  0x24   :  { %599 = vmatmul.mubr.bf16.vlgmr.msra.gmra.mxu1 %v987_v35  ;;  %912 = vmatprep.subr.bf16.mxu0 %v991_v38 }
  0x25   :  { %606 = vmatprep.mubr.bf16.mxu1 %v1002_v47  ;;  %943 = vmatpush3.bf16.msra.mxu1 %v1007_v50 }
  0x26   :  { %944 = vmatprep.subr.bf16.mxu1 %v1012_v54 }
  0x27   :  { %913 = vmatpush3.bf16.msra.mxu0 %v992_v39 }
  0x28   :  { %914 = vmatprep.subr.bf16.mxu0 %v993_v40 }
  0x29   :  { %945 = vmatpush3.bf16.msra.mxu1 %v1012_v54 }
  0x2a   :  { %558 = vmatmul.mubr.bf16.gmra.mxu0 %v1001_v46 }
  0x2b   :  { %915 = vmatpush3.bf16.msra.mxu0 %v994_v41  ;;  %647 = vmatprep.mubr.bf16.mxu0 %v1015_v56 }
  0x2c   :  { %916 = vmatprep.subr.bf16.mxu0 %v995_v42  ;;  %607 = vmatmul.mubr.bf16.gmra.mxu1 %v1004_v48 }
  0x2d   :  { %946 = vmatprep.mubr.msk.bf16.mxu1 %vm510_vm0, %v1016_v57 }
  0x2f   :  { %917 = vmatpush3.bf16.msra.mxu0 %v996_v43 }
  0x30   :  { %918 = vmatprep.subr.bf16.mxu0 %v997_v45 }
  0x33   :  { %919 = vmatpush3.bf16.msra.mxu0 %v1000_v49 }
  0x34   :  { %920 = vmatprep.subr.bf16.mxu0 %v1005_v51  ;;  %947 = vmatmul.mubr.msk.bf16.vlgmr.msra.gmra.mxu1 %vm510_vm0, %v1017_v58 }
  0x37   :  { %921 = vmatpush3.bf16.msra.mxu0 %v1006_v52 }
  0x38   :  { %922 = vmatprep.subr.bf16.mxu0 %v1008_v53 }
  0x3b   :  { %923 = vmatpush3.bf16.msra.mxu0 %v1009_v55 }
  0x3c   :  { %924 = vmatprep.subr.bf16.mxu0 %v1010_v59 }
  0x3f   :  { %925 = vmatpush3.bf16.msra.mxu0 %v1011_v60 }
  0x42   :  { %648 = vmatmul.mubr.bf16.vlgmr.msra.gmra.mxu0 %v1013_v61 }
  0x43   :  { %655 = vmatprep.mubr.bf16.mxu0 %v1018_v62 }
  0x4a   :  { %656 = vmatmul.mubr.bf16.gmra.mxu0 %v1020_v63 }
  0xe2   :  { %v870_v2 = vpop.f32.mrf.mxu0 }
  0xe4   :  { %v898_v1 = vpop.f32.mrf.mxu1  ;;  %v871_v4 = vpop.f32.mrf.mxu0 }
  0xe5   :  { %v872_v15 = vadd.f32 %v871_v4, %v870_v2 }
  0xe6   :  { %v899_v3 = vpop.f32.mrf.mxu1  ;;  %v873_v6 = vpop.f32.mrf.mxu0 }
  0xe7   :  { %v552_v21 = vadd.f32 %v872_v15, %v787_v16  ;;  %v900_v22 = vadd.f32 %v899_v3, %v898_v1 }
  0xe8   :  { %v901_v5 = vpop.f32.mrf.mxu1  ;;  %v874_v8 = vpop.f32.mrf.mxu0 }
  0xe9   :  { %v875_v18 = vadd.f32 %v874_v8, %v873_v6  ;;  %v601_v28 = vadd.f32 %v900_v22, %v552_v21 }
  0xea   :  { %v902_v7 = vpop.f32.mrf.mxu1  ;;  %v876_v10 = vpop.f32.mrf.mxu0 }
  0xeb   :  { %v555_v24 = vadd.f32 %v875_v18, %v787_v16  ;;  %v903_v25 = vadd.f32 %v902_v7, %v901_v5 }
  0xec   :  { %v904_v9 = vpop.f32.mrf.mxu1  ;;  %v877_v12 = vpop.f32.mrf.mxu0 }
  0xed   :  { %v878_v29 = vadd.f32 %v877_v12, %v876_v10  ;;  %v604_v33 = vadd.f32 %v903_v25, %v555_v24  ;;  %v773_v24 = vld [vmem:[%s1279_s4] sm:$0x3] }
  0xee   :  { %v905_v11 = vpop.f32.mrf.mxu1  ;;  %v879_v14 = vpop.f32.mrf.mxu0 }
  0xef   :  { %v560_v37 = vadd.f32 %v878_v29, %v787_v16  ;;  %v906_v38 = vadd.f32 %v905_v11, %v904_v9 }
  0xf0   :  { %v907_v13 = vpop.f32.mrf.mxu1  ;;  %v880_v19 = vpop.f32.mrf.mxu0 }
  0xf1   :  { %v881_v34 = vadd.f32 %v880_v19, %v879_v14  ;;  %v609_v47 = vadd.f32 %v906_v38, %v560_v37 }
  0xf2   :  { %v908_v17 = vpop.f32.mrf.mxu1 }
  0xf3   :  { %v563_v43 = vadd.f32 %v881_v34, %v787_v16  ;;  %v909_v44 = vadd.f32 %v908_v17, %v907_v13 }
  0xf4   :  { %v948_v20 = vpop.f32.mrf.mxu1 }
  0xf5   :  { %v612_v53 = vadd.f32 %v909_v44, %v563_v43 }
  0xf6   :  { %v698_v27 = vpop.f32.mrf.mxu1 }
  0xf8   :  { %v949_v36 = vpop.f32.mrf.mxu1 }
  0xfa   :  { %v701_v45 = vpop.f32.mrf.mxu1 }
 0x102   :  { %v926_v23 = vpop.f32.mrf.mxu0 }
 0x104   :  { %v927_v26 = vpop.f32.mrf.mxu0 }
 0x105   :  { %v928_v30 = vadd.f32 %v927_v26, %v926_v23 }
 0x106   :  { %v929_v31 = vpop.f32.mrf.mxu0 }
 0x107   :  { %v650_v32 = vadd.f32 %v928_v30, %v601_v28 }
 0x108   :  { %v930_v35 = vpop.f32.mrf.mxu0 }
 0x109   :  { %v699_v39 = vadd.f32 %v698_v27, %v650_v32  ;;  %v931_v40 = vadd.f32 %v930_v35, %v929_v31 }
 0x10a   :  { %v932_v41 = vpop.f32.mrf.mxu0 }
 0x10b   :  { %714 = vst.msk [vmem:[%s1281_s3] sm:$0xff] %vm713_vm2, %v699_v39  ;;  %v653_v42 = vadd.f32 %v931_v40, %v604_v33  ;;  %v750_v55 = vmul.f32 %v699_v39, %v699_v39  ;;  %v737_v59 = vsel %vm713_vm2, %v699_v39, 0.0 }
 0x10c   :  { %v933_v46 = vpop.f32.mrf.mxu0 }
 0x10d   :  { %v702_v48 = vadd.f32 %v701_v45, %v653_v42  ;;  %v934_v49 = vadd.f32 %v933_v46, %v932_v41  ;;  %v754_v1 = vsel %vm713_vm2, %v750_v55, 0.0 }
 0x10e   :  { %v935_v50 = vpop.f32.mrf.mxu0 }
 0x10f   :  { %715 = vst.msk [vmem:[%s1281_s3 + $0x8] sm:$0xff] %vm713_vm2, %v702_v48  ;;  %v751_v51 = vmul.f32 %v702_v48, %v702_v48  ;;  %v658_v52 = vadd.f32 %v934_v49, %v609_v47  ;;  %v738_v56 = vsel %vm713_vm2, %v702_v48, 0.0 }
 0x110   :  { %v936_v54 = vpop.f32.mrf.mxu0  ;;  %v739_v0 = vadd.f32 %v738_v56, %v737_v59 }
 0x111   :  { %v707_v57 = vadd.f32 %v948_v20, %v658_v52  ;;  %v937_v58 = vadd.f32 %v936_v54, %v935_v50  ;;  %v755_v60 = vsel %vm713_vm2, %v751_v51, 0.0 }
 0x112   :  { %v756_v4 = vadd.f32 %v755_v60, %v754_v1 }
 0x113   :  { %716 = vst.msk [vmem:[%s1281_s3 + $0x10] sm:$0xff] %vm713_vm2, %v707_v57  ;;  %v740_v61 = vsel %vm713_vm2, %v707_v57, 0.0  ;;  %v752_v62 = vmul.f32 %v707_v57, %v707_v57  ;;  %v661_v63 = vadd.f32 %v937_v58, %v612_v53 }
 0x114   :  { %v741_v5 = vadd.f32 %v740_v61, %v739_v0 }
 0x115   :  { %v757_v2 = vsel %vm713_vm2, %v752_v62, 0.0  ;;  %v710_v3 = vadd.f32 %v949_v36, %v661_v63 }
 0x116   :  { %v758_v8 = vadd.f32 %v757_v2, %v756_v4 }
 0x117   :  { %717 = vst.msk [vmem:[%s1281_s3 + $0x18] sm:$0xff] %vm713_vm2, %v710_v3  ;;  %v742_v6 = vsel %vm713_vm2, %v710_v3, 0.0  ;;  %v753_v7 = vmul.f32 %v710_v3, %v710_v3 }
 0x118   :  { %v743_v9 = vadd.f32 %v742_v6, %v741_v5 }
 0x119   :  { %v759_v10 = vsel %vm713_vm2, %v753_v7, 0.0 }
 0x11a   :  { %v744_v11 = vrot.slane %v743_v9, 4  ;;  %v760_v12 = vadd.f32 %v759_v10, %v758_v8 }
 0x11c   :  { %v745_v13 = vadd.f32 %v744_v11, %v743_v9  ;;  %v761_v14 = vrot.slane %v760_v12, 4 }
 0x11e   :  { %v746_v15 = vrot.slane %v745_v13, 2  ;;  %v762_v16 = vadd.f32 %v761_v14, %v760_v12 }
 0x120   :  { %v747_v17 = vadd.f32 %v746_v15, %v745_v13  ;;  %v763_v18 = vrot.slane %v762_v16, 2 }
 0x122   :  { %v748_v19 = vrot.slane %v747_v17, 1  ;;  %v764_v20 = vadd.f32 %v763_v18, %v762_v16 }
 0x124   :  { %v765_v21 = vrot.slane %v764_v20, 1  ;;  %v749_v22 = vadd.f32 %v748_v19, %v747_v17 }
 0x126   :  { %v766_v23 = vadd.f32 %v765_v21, %v764_v20 }
 0x128   :  { %v775_v25 = vsel %vm774_vm3, %v749_v22, %v766_v23 }
 0x129   :  { %v776_v26 = vadd.f32 %v775_v25, %v773_v24 }
 0x12b   :  { %778 = vst.msk [vmem:[%s1279_s4] sm:$0x3] %vm771_vm1, %v776_v26 }

// kernel: discriminator_forward.14
= control target key start
LH: loop header
LB: loop body
LE: loop exit
PB: predicated region body
PF: predicated region fallthrough
CT: control target
= control target key end

     0   :  { %v28_v5 = vlaneseq  ;;  %vm80_vm0 = vcmask 523264   ;;  %s155_s1 = inlined_call_operand.vmem [shape: f32[2,64], index: 1, kind: input, shape index: {}]   ;;  %s156_s0 = inlined_call_operand.vmem [shape: f32[32,64], index: 0, kind: input, shape index: {}]   ;;  %s157_s2 = inlined_call_operand.vmem [shape: f32[1,64], index: 2, kind: input, shape index: {}]   ;;  %s158_s3 = inlined_call_operand.vmem [shape: f32[1,64], index: 3, kind: input, shape index: {}]   ;;  %s159_s4 = inlined_call_operand.vmem [shape: f32[32,64], index: 4, kind: output, shape index: {}]  }
   0x1   :  { %v21_v0 = vld [vmem:[%s155_s1] sm:$0x3]  ;;  %v18_v11 = vld [vmem:[%s156_s0 + $0x8] sm:$0xff]  ;;  %v19_v12 = vld [vmem:[%s156_s0 + $0x10] sm:$0xff] }
   0x2   :  { %v22_v1 = vmul.f32 0.03125, %v21_v0  ;;  %v29_v7 = vshrl.u32 %v28_v5, 7  ;;  %v17_v9 = vld [vmem:[%s156_s0] sm:$0xff]  ;;  %v20_v13 = vld [vmem:[%s156_s0 + $0x18] sm:$0xff] }
   0x3   :  { %v89_v21 = vld [vmem:[%s157_s2] ss:$0 sm:$0xff] }
   0x4   :  { %v23_v2 = vmul.f32 %v22_v1, %v22_v1  ;;  %v30_v8 = vsub.s32 0, %v29_v7  ;;  %v40_v14 = vsub.s32 1, %v29_v7  ;;  %v90_v26 = vld [vmem:[%s158_s3] ss:$0 sm:$0xff] }
   0x6   :  { %v25_v3 = vrot.slane %v23_v2, 7  ;;  %v31_v10 = vrot.slane %v22_v1, %v30_v8 }
   0x8   :  { %v27_v4 = vsub.f32 %v22_v1, %v25_v3  ;;  %v32_v15 = vsub.f32 %v17_v9, %v31_v10  ;;  %v33_v16 = vsub.f32 %v18_v11, %v31_v10  ;;  %v34_v17 = vsub.f32 %v19_v12, %v31_v10 }
   0x9   :  { %v35_v18 = vsub.f32 %v20_v13, %v31_v10 }
   0xa   :  { %v36_v6 = vadd.f32 1e-05, %v27_v4 }
   0xc   :  { %91 = vrsqrt.f32 %v36_v6 }
  0x19   :  { %v92_v19 = vpop.eup %91 }
  0x1a   :  { %v41_v20 = vrot.slane %v92_v19, %v40_v14 }
  0x1c   :  { %v42_v22 = vmul.f32 %v41_v20, %v32_v15  ;;  %v43_v23 = vmul.f32 %v41_v20, %v33_v16  ;;  %v44_v24 = vmul.f32 %v41_v20, %v34_v17  ;;  %v45_v25 = vmul.f32 %v41_v20, %v35_v18 }
  0x1e   :  { %v53_v27 = vmul.f32 %v89_v21, %v42_v22  ;;  %v54_v28 = vmul.f32 %v89_v21, %v43_v23  ;;  %v55_v29 = vmul.f32 %v89_v21, %v44_v24  ;;  %v56_v30 = vmul.f32 %v89_v21, %v45_v25 }
  0x20   :  { %v64_v31 = vadd.f32 %v90_v26, %v53_v27  ;;  %v65_v32 = vadd.f32 %v90_v26, %v54_v28  ;;  %v66_v33 = vadd.f32 %v90_v26, %v55_v29  ;;  %v67_v34 = vadd.f32 %v90_v26, %v56_v30 }
  0x22   :  { %vm68_vm1 = vcmp.gt.f32.partialorder %v64_v31, 0.0  ;;  %v72_v35 = vmul.f32 0.2, %v64_v31  ;;  %vm69_vm2 = vcmp.gt.f32.partialorder %v65_v32, 0.0  ;;  %v73_v36 = vmul.f32 0.2, %v65_v32 }
  0x23   :  { %vm70_vm3 = vcmp.gt.f32.partialorder %v66_v33, 0.0  ;;  %v74_v37 = vmul.f32 0.2, %v66_v33  ;;  %vm71_vm4 = vcmp.gt.f32.partialorder %v67_v34, 0.0  ;;  %v75_v38 = vmul.f32 0.2, %v67_v34 }
  0x24   :  { %v76_v39 = vsel %vm68_vm1, %v64_v31, %v72_v35  ;;  %v77_v40 = vsel %vm69_vm2, %v65_v32, %v73_v36 }
  0x25   :  { %81 = vst.msk [vmem:[%s159_s4] sm:$0xff] %vm80_vm0, %v76_v39  ;;  %82 = vst.msk [vmem:[%s159_s4 + $0x8] sm:$0xff] %vm80_vm0, %v77_v40  ;;  %v78_v41 = vsel %vm70_vm3, %v66_v33, %v74_v37  ;;  %v79_v42 = vsel %vm71_vm4, %v67_v34, %v75_v38 }
  0x26   :  { %83 = vst.msk [vmem:[%s159_s4 + $0x10] sm:$0xff] %vm80_vm0, %v78_v41  ;;  %84 = vst.msk [vmem:[%s159_s4 + $0x18] sm:$0xff] %vm80_vm0, %v79_v42 }

// kernel: discriminator_forward.15
= control target key start
LH: loop header
LB: loop body
LE: loop exit
PB: predicated region body
PF: predicated region fallthrough
CT: control target
= control target key end

     0   :  { %vm733_vm0 = vcmask 7168   ;;  %s1206_s1 = inlined_call_operand.vmem [shape: bf16[1024,1], index: 1, kind: input, shape index: {}]   ;;  %s1207_s0 = inlined_call_operand.vmem [shape: bf16[8,1024], index: 0, kind: input, shape index: {}]   ;;  %s1208_s2 = inlined_call_operand.<no memory space> [shape: f32[1,1], index: 2, kind: input, shape index: {}]   ;;  %s1209_s3 = inlined_call_operand.vmem [shape: f32[8,1], index: 3, kind: output, shape index: {}]  }
   0x1   :  { %v900_v0 = vld [vmem:[%s1206_s1 + $0x78] sm:$0xff]   ;;  %v904_v4 = vld [vmem:[%s1206_s1 + $0x70] sm:$0xff]   ;;  %v908_v8 = vld [vmem:[%s1206_s1 + $0x68] sm:$0xff]  }
   0x2   :  { %v901_v1 = vld [vmem:[%s1206_s1 + $0xf8] sm:$0xff]   ;;  %812 = vmatprep.subr.bf16.mxu0 %v900_v0  ;;  %v905_v5 = vld [vmem:[%s1206_s1 + $0xf0] sm:$0xff]   ;;  %v909_v9 = vld [vmem:[%s1206_s1 + $0xe8] sm:$0xff]  }
   0x3   :  { %v902_v2 = vld [vmem:[%s1206_s1 + $0x38] sm:$0xff]   ;;  %834 = vmatprep.subr.bf16.mxu1 %v901_v1  ;;  %v906_v6 = vld [vmem:[%s1206_s1 + $0x30] sm:$0xff]   ;;  %v910_v10 = vld [vmem:[%s1206_s1 + $0x28] sm:$0xff]  }
   0x4   :  { %v903_v3 = vld [vmem:[%s1206_s1 + $0xb8] sm:$0xff]   ;;  %813 = vmatpush3.bf16.msra.mxu0 %v902_v2  ;;  %v907_v7 = vld [vmem:[%s1206_s1 + $0xb0] sm:$0xff]   ;;  %v911_v11 = vld [vmem:[%s1206_s1 + $0xa8] sm:$0xff]  }
   0x5   :  { %835 = vmatpush3.bf16.msra.mxu1 %v903_v3  ;;  %814 = vmatprep.subr.bf16.mxu0 %v904_v4  ;;  %v912_v12 = vld [vmem:[%s1206_s1 + $0x60] sm:$0xff]   ;;  %v916_v16 = vld [vmem:[%s1206_s1 + $0x58] sm:$0xff]   ;;  %v920_v20 = vld [vmem:[%s1206_s1 + $0x50] sm:$0xff]  }
   0x6   :  { %836 = vmatprep.subr.bf16.mxu1 %v905_v5  ;;  %v913_v13 = vld [vmem:[%s1206_s1 + $0xe0] sm:$0xff]   ;;  %v917_v17 = vld [vmem:[%s1206_s1 + $0xd8] sm:$0xff]   ;;  %v921_v21 = vld [vmem:[%s1206_s1 + $0xd0] sm:$0xff]  }
   0x7   :  { %v914_v14 = vld [vmem:[%s1206_s1 + $0x20] sm:$0xff]   ;;  %v918_v18 = vld [vmem:[%s1206_s1 + $0x18] sm:$0xff]   ;;  %v922_v22 = vld [vmem:[%s1206_s1 + $0x10] sm:$0xff]  }
   0x8   :  { %815 = vmatpush3.bf16.msra.mxu0 %v906_v6  ;;  %v915_v15 = vld [vmem:[%s1206_s1 + $0xa0] sm:$0xff]   ;;  %v919_v19 = vld [vmem:[%s1206_s1 + $0x98] sm:$0xff]   ;;  %v923_v23 = vld [vmem:[%s1206_s1 + $0x90] sm:$0xff]  }
   0x9   :  { %837 = vmatpush3.bf16.msra.mxu1 %v907_v7  ;;  %816 = vmatprep.subr.bf16.mxu0 %v908_v8  ;;  %v924_v24 = vld [vmem:[%s1206_s1 + $0x48] sm:$0xff]   ;;  %v928_v28 = vld [vmem:[%s1206_s1 + $0x40] sm:$0xff]   ;;  %v936_v38 = vld [vmem:[%s1206_s1 + $0x178] sm:$0xff]  }
   0xa   :  { %838 = vmatprep.subr.bf16.mxu1 %v909_v9  ;;  %v925_v25 = vld [vmem:[%s1206_s1 + $0xc8] sm:$0xff]   ;;  %v929_v29 = vld [vmem:[%s1206_s1 + $0xc0] sm:$0xff]   ;;  %v937_v39 = vld [vmem:[%s1206_s1 + $0x1f8] sm:$0xff]  }
   0xb   :  { %v926_v26 = vld [vmem:[%s1206_s1 + $0x8] sm:$0xff]   ;;  %v930_v30 = vld [vmem:[%s1206_s1] sm:$0xff]   ;;  %v938_v40 = vld [vmem:[%s1206_s1 + $0x138] sm:$0xff]  }
   0xc   :  { %817 = vmatpush3.bf16.msra.mxu0 %v910_v10  ;;  %v927_v27 = vld [vmem:[%s1206_s1 + $0x88] sm:$0xff]   ;;  %v931_v31 = vld [vmem:[%s1206_s1 + $0x80] sm:$0xff]   ;;  %v939_v41 = vld [vmem:[%s1206_s1 + $0x1b8] sm:$0xff]  }
   0xd   :  { %839 = vmatpush3.bf16.msra.mxu1 %v911_v11  ;;  %818 = vmatprep.subr.bf16.mxu0 %v912_v12  ;;  %v17_v32 = vld [vmem:[%s1207_s0] sm:$0xff]  ;;  %v18_v33 = vld [vmem:[%s1207_s0 + $0x8] sm:$0xff]  ;;  %v940_v42 = vld [vmem:[%s1206_s1 + $0x170] sm:$0xff]   ;;  %v8_v12 = vstv %s1208_s2 }
   0xe   :  { %840 = vmatprep.subr.bf16.mxu1 %v913_v13  ;;  %v740_v34 = vcombine.low %v17_v32, %v17_v32  ;;  %v741_v35 = vcombine.high %v17_v32, %v17_v32  ;;  %v742_v36 = vcombine.low %v18_v33, %v18_v33  ;;  %v743_v37 = vcombine.high %v18_v33, %v18_v33  ;;  %v941_v43 = vld [vmem:[%s1206_s1 + $0x1f0] sm:$0xff]   ;;  %v944_v46 = vld [vmem:[%s1206_s1 + $0x168] sm:$0xff]   ;;  %v948_v50 = vld [vmem:[%s1206_s1 + $0x160] sm:$0xff]  }
   0xf   :  { %v942_v44 = vld [vmem:[%s1206_s1 + $0x130] sm:$0xff]   ;;  %v945_v47 = vld [vmem:[%s1206_s1 + $0x1e8] sm:$0xff]   ;;  %v949_v51 = vld [vmem:[%s1206_s1 + $0x1e0] sm:$0xff]   ;;  %9 = vst [vmem:[#allocation2] sm:$0x1] %v8_v12 }
  0x10   :  { %819 = vmatpush3.bf16.msra.mxu0 %v914_v14  ;;  %600 = vmatprep.mubr.bf16.mxu0 %v741_v35  ;;  %v943_v45 = vld [vmem:[%s1206_s1 + $0x1b0] sm:$0xff]   ;;  %v946_v48 = vld [vmem:[%s1206_s1 + $0x128] sm:$0xff]   ;;  %v950_v52 = vld [vmem:[%s1206_s1 + $0x120] sm:$0xff]  }
  0x11   :  { %841 = vmatpush3.bf16.msra.mxu1 %v915_v15  ;;  %820 = vmatprep.subr.bf16.mxu0 %v916_v16  ;;  %v947_v49 = vld [vmem:[%s1206_s1 + $0x1a8] sm:$0xff]   ;;  %v951_v53 = vld [vmem:[%s1206_s1 + $0x1a0] sm:$0xff]   ;;  %v952_v54 = vld [vmem:[%s1206_s1 + $0x158] sm:$0xff]  }
  0x12   :  { %842 = vmatprep.subr.bf16.mxu1 %v917_v17  ;;  %640 = vmatprep.mubr.bf16.mxu1 %v743_v37  ;;  %v953_v55 = vld [vmem:[%s1206_s1 + $0x1d8] sm:$0xff]   ;;  %v956_v58 = vld [vmem:[%s1206_s1 + $0x150] sm:$0xff]   ;;  %v960_v62 = vld [vmem:[%s1206_s1 + $0x148] sm:$0xff]  }
  0x13   :  { %v954_v56 = vld [vmem:[%s1206_s1 + $0x118] sm:$0xff]   ;;  %v957_v59 = vld [vmem:[%s1206_s1 + $0x1d0] sm:$0xff]   ;;  %v961_v63 = vld [vmem:[%s1206_s1 + $0x1c8] sm:$0xff]  }
  0x14   :  { %821 = vmatpush3.bf16.msra.mxu0 %v918_v18  ;;  %v955_v57 = vld [vmem:[%s1206_s1 + $0x198] sm:$0xff]   ;;  %v958_v60 = vld [vmem:[%s1206_s1 + $0x110] sm:$0xff]   ;;  %v962_v0 = vld [vmem:[%s1206_s1 + $0x108] sm:$0xff]  }
  0x15   :  { %843 = vmatpush3.bf16.msra.mxu1 %v919_v19  ;;  %822 = vmatprep.subr.bf16.mxu0 %v920_v20  ;;  %v959_v61 = vld [vmem:[%s1206_s1 + $0x190] sm:$0xff]   ;;  %v963_v1 = vld [vmem:[%s1206_s1 + $0x188] sm:$0xff]   ;;  %v964_v2 = vld [vmem:[%s1206_s1 + $0x140] sm:$0xff]  }
  0x16   :  { %844 = vmatprep.subr.bf16.mxu1 %v921_v21  ;;  %v965_v3 = vld [vmem:[%s1206_s1 + $0x1c0] sm:$0xff]   ;;  %v19_v6 = vld [vmem:[%s1207_s0 + $0x10] sm:$0xff]  ;;  %v20_v9 = vld [vmem:[%s1207_s0 + $0x18] sm:$0xff] }
  0x17   :  { %v966_v4 = vld [vmem:[%s1206_s1 + $0x100] sm:$0xff]   ;;  %v744_v7 = vcombine.low %v19_v6, %v19_v6  ;;  %v745_v8 = vcombine.high %v19_v6, %v19_v6  ;;  %v746_v10 = vcombine.low %v20_v9, %v20_v9  ;;  %v747_v11 = vcombine.high %v20_v9, %v20_v9 }
  0x18   :  { %823 = vmatpush3.bf16.msra.mxu0 %v922_v22  ;;  %v967_v5 = vld [vmem:[%s1206_s1 + $0x180] sm:$0xff]  }
  0x19   :  { %845 = vmatpush3.bf16.msra.mxu1 %v923_v23  ;;  %824 = vmatprep.subr.bf16.mxu0 %v924_v24  ;;  %v739_v22 = vld [vmem:[#allocation2] ss:$0 sm:$0xff] }
  0x1a   :  { %846 = vmatprep.subr.bf16.mxu1 %v925_v25 }
  0x1c   :  { %825 = vmatpush3.bf16.msra.mxu0 %v926_v26 }
  0x1d   :  { %847 = vmatpush3.bf16.msra.mxu1 %v927_v27  ;;  %826 = vmatprep.subr.bf16.mxu0 %v928_v28 }
  0x1e   :  { %848 = vmatprep.subr.bf16.mxu1 %v929_v29 }
  0x20   :  { %827 = vmatpush3.bf16.msra.mxu0 %v930_v30 }
  0x21   :  { %849 = vmatpush3.bf16.msra.mxu1 %v931_v31  ;;  %856 = vmatprep.subr.bf16.mxu0 %v936_v38 }
  0x22   :  { %878 = vmatprep.subr.bf16.mxu1 %v937_v39 }
  0x23   :  { %601 = vmatmul.mubr.bf16.vlgmr.msra.gmra.mxu0 %v740_v34 }
  0x24   :  { %641 = vmatmul.mubr.bf16.vlgmr.msra.gmra.mxu1 %v742_v36  ;;  %857 = vmatpush3.bf16.msra.mxu0 %v938_v40 }
  0x25   :  { %879 = vmatpush3.bf16.msra.mxu1 %v939_v41  ;;  %858 = vmatprep.subr.bf16.mxu0 %v940_v42 }
  0x26   :  { %880 = vmatprep.subr.bf16.mxu1 %v941_v43  ;;  %680 = vmatprep.mubr.bf16.mxu0 %v745_v8 }
  0x27   :  { %720 = vmatprep.mubr.bf16.mxu1 %v747_v11 }
  0x28   :  { %859 = vmatpush3.bf16.msra.mxu0 %v942_v44 }
  0x29   :  { %881 = vmatpush3.bf16.msra.mxu1 %v943_v45  ;;  %860 = vmatprep.subr.bf16.mxu0 %v944_v46 }
  0x2a   :  { %882 = vmatprep.subr.bf16.mxu1 %v945_v47 }
  0x2c   :  { %861 = vmatpush3.bf16.msra.mxu0 %v946_v48 }
  0x2d   :  { %883 = vmatpush3.bf16.msra.mxu1 %v947_v49  ;;  %862 = vmatprep.subr.bf16.mxu0 %v948_v50 }
  0x2e   :  { %884 = vmatprep.subr.bf16.mxu1 %v949_v51 }
  0x30   :  { %863 = vmatpush3.bf16.msra.mxu0 %v950_v52 }
  0x31   :  { %885 = vmatpush3.bf16.msra.mxu1 %v951_v53  ;;  %864 = vmatprep.subr.bf16.mxu0 %v952_v54 }
  0x32   :  { %886 = vmatprep.subr.bf16.mxu1 %v953_v55 }
  0x34   :  { %865 = vmatpush3.bf16.msra.mxu0 %v954_v56 }
  0x35   :  { %887 = vmatpush3.bf16.msra.mxu1 %v955_v57  ;;  %866 = vmatprep.subr.bf16.mxu0 %v956_v58 }
  0x36   :  { %888 = vmatprep.subr.bf16.mxu1 %v957_v59 }
  0x38   :  { %867 = vmatpush3.bf16.msra.mxu0 %v958_v60 }
  0x39   :  { %889 = vmatpush3.bf16.msra.mxu1 %v959_v61  ;;  %868 = vmatprep.subr.bf16.mxu0 %v960_v62 }
  0x3a   :  { %890 = vmatprep.subr.bf16.mxu1 %v961_v63 }
  0x3c   :  { %869 = vmatpush3.bf16.msra.mxu0 %v962_v0 }
  0x3d   :  { %891 = vmatpush3.bf16.msra.mxu1 %v963_v1  ;;  %870 = vmatprep.subr.bf16.mxu0 %v964_v2 }
  0x3e   :  { %892 = vmatprep.subr.bf16.mxu1 %v965_v3 }
  0x40   :  { %871 = vmatpush3.bf16.msra.mxu0 %v966_v4 }
  0x41   :  { %893 = vmatpush3.bf16.msra.mxu1 %v967_v5 }
  0x43   :  { %681 = vmatmul.mubr.bf16.vlgmr.msra.gmra.mxu0 %v744_v7 }
  0x44   :  { %721 = vmatmul.mubr.bf16.vlgmr.msra.gmra.mxu1 %v746_v10 }
  0xe3   :  { %v828_v13 = vpop.f32.mrf.mxu0 }
  0xe4   :  { %v850_v14 = vpop.f32.mrf.mxu1 }
  0xe5   :  { %v829_v15 = vpop.f32.mrf.mxu0 }
  0xe6   :  { %v851_v16 = vpop.f32.mrf.mxu1  ;;  %v830_v21 = vadd.f32 %v829_v15, %v828_v13 }
  0xe7   :  { %v831_v17 = vpop.f32.mrf.mxu0  ;;  %v852_v24 = vadd.f32 %v851_v16, %v850_v14 }
  0xe8   :  { %v853_v18 = vpop.f32.mrf.mxu1  ;;  %v603_v23 = vadd.f32 %v830_v21, %v739_v22 }
  0xe9   :  { %v832_v19 = vpop.f32.mrf.mxu0 }
  0xea   :  { %v854_v20 = vpop.f32.mrf.mxu1  ;;  %v643_v29 = vadd.f32 %v852_v24, %v603_v23 }
 0x103   :  { %v872_v25 = vpop.f32.mrf.mxu0 }
 0x104   :  { %v894_v26 = vpop.f32.mrf.mxu1 }
 0x105   :  { %v873_v27 = vpop.f32.mrf.mxu0 }
 0x106   :  { %v895_v28 = vpop.f32.mrf.mxu1  ;;  %v874_v30 = vadd.f32 %v873_v27, %v872_v25 }
 0x107   :  { %v875_v31 = vpop.f32.mrf.mxu0  ;;  %v896_v34 = vadd.f32 %v895_v28, %v894_v26 }
 0x108   :  { %v897_v32 = vpop.f32.mrf.mxu1  ;;  %v683_v33 = vadd.f32 %v874_v30, %v643_v29 }
 0x109   :  { %v876_v35 = vpop.f32.mrf.mxu0 }
 0x10a   :  { %v898_v36 = vpop.f32.mrf.mxu1  ;;  %v723_v37 = vadd.f32 %v896_v34, %v683_v33 }
 0x10c   :  { %v728_v38 = vsub.f32 0.0, %v723_v37 }
 0x10e   :  { %v729_v39 = vmul.f32 1.442695, %v728_v38 }
 0x110   :  { %972 = vpow2.f32 %v729_v39 }
 0x11d   :  { %v973_v40 = vpop.eup %972 }
 0x11e   :  { %v731_v41 = vadd.f32 1.0, %v973_v40 }
 0x120   :  { %974 = vrcp.f32 %v731_v41 }
 0x12d   :  { %v975_v42 = vpop.eup %974 }
 0x12e   :  { %734 = vst.msk [vmem:[%s1209_s3] sm:$0xff] %vm733_vm0, %v975_v42 }

</bundles_post_ra>
